<compile_context>
chip_gen: v5e
topology: v5e:2x2
jax: 0.10.0
libtpu: 0.0.40
codegen_flags: <defaults>
</compile_context>

<pallas_src>
import jax
import jax.numpy as jnp
from jax import lax
from jax.experimental import pallas as pl
from jax.experimental.pallas import tpu as pltpu

# --- model hyper-parameters (from transformer.py) ---
BLOCK_SIZE = 256
N_EMBD = 32
N_HEAD = 4
N_LAYERS = 4
HEAD_SIZE = N_EMBD // N_HEAD
LN_EPS = 1e-5
NEG_INF = -1e30
LANE = 128
QTILE = 128          # query-tile rows for causal skipping


def _layernorm(x, gamma, beta):
    """Single-pass layernorm: mean and mean-of-squares computed together."""
    mu = jnp.mean(x, axis=-1, keepdims=True)
    mu2 = jnp.mean(x * x, axis=-1, keepdims=True)
    var = mu2 - mu * mu
    return (x - mu) * lax.rsqrt(var + LN_EPS) * gamma + beta


# -----------------------------------------------------------------------------
# Kernel factory (whole forward pass; one grid step per BT-sized batch block)
# -----------------------------------------------------------------------------
def _make_kernel(BT, T, vpad):
    C = N_EMBD
    HS = HEAD_SIZE
    M = BT * T

    # Static query tiles: (row_offset, rows, kv_len).  Only columns <= the
    # tile's last row are ever unmasked, so we skip the rest entirely.
    if T % QTILE == 0 and T // QTILE >= 2:
        q_tiles = [(qi * QTILE, QTILE, (qi + 1) * QTILE)
                   for qi in range(T // QTILE)]
    else:
        q_tiles = [(0, T, T)]

    def attn_rows(q_blk, kT_h, v_h, row0, kv_len):
        # q_blk: (rows, HS) bf16; kT_h: (HS, T) bf16; v_h: (T, HS) bf16
        s = jnp.dot(q_blk, kT_h[:, :kv_len],
                    preferred_element_type=jnp.float32)          # (rows, kv)
        r = lax.broadcasted_iota(jnp.int32, s.shape, 0) + row0
        c = lax.broadcasted_iota(jnp.int32, s.shape, 1)
        s = jnp.where(r >= c, s, NEG_INF)                        # causal mask
        s = s - jnp.max(s, axis=-1, keepdims=True)
        p = jnp.exp(s)
        p = p * pl.reciprocal(jnp.sum(p, axis=-1, keepdims=True), approx=True)
        return jnp.dot(p.astype(jnp.bfloat16), v_h[:kv_len],
                       preferred_element_type=jnp.float32)       # (rows, HS)

    def kernel(x_ref,               # (BT, T, C)   f32  embeddings
               vec_ref,             # (L, 6, C)    f32  [ln1_g,ln1_b,bproj,ln2_g,ln2_b,b2]
               wqkv_ref,            # (L, C, 3C)   bf16 [Wq*scale | Wk | Wv]
               wproj_ref,           # (L, C, C)    bf16
               w1_ref,              # (L, C, 4C)   bf16
               b1_ref,              # (L, 1, 4C)   f32
               w2_ref,              # (L, 4C, C)   bf16
               lnf_ref,             # (2, C)       f32  [lnf_g; lnf_b]
               wlm_ref,             # (C, vpad)    bf16
               blm_ref,             # (1, vpad)    f32
               o_ref):              # (BT, T, vpad) f32
        x = x_ref[...].reshape(M, C)                             # (M, C) f32

        for l in range(N_LAYERS):                 # static: fully unrolled
            vec = vec_ref[l]                                     # (6, C)

            # ---- multi-head self-attention ----
            xn = _layernorm(x, vec[0:1], vec[1:2])
            qkv = jnp.dot(xn.astype(jnp.bfloat16), wqkv_ref[l],
                          preferred_element_type=jnp.float32)    # (M, 3C) f32

            pv_rows = []
            for e in range(BT):                   # static per-element loop
                rows = slice(e * T, (e + 1) * T)
                q_e = qkv[rows, 0:C].astype(jnp.bfloat16)        # (T, C)
                kT_e = qkv[rows, C:2 * C].T.astype(jnp.bfloat16)  # (C, T)
                v_e = qkv[rows, 2 * C:3 * C].astype(jnp.bfloat16)  # (T, C)

                head_outs = []
                for h in range(N_HEAD):
                    q_h = q_e[:, h * HS:(h + 1) * HS]
                    kT_h = kT_e[h * HS:(h + 1) * HS, :]
                    v_h = v_e[:, h * HS:(h + 1) * HS]
                    pv_tiles = [attn_rows(q_h[r0:r0 + rs], kT_h, v_h, r0, kvl)
                                for (r0, rs, kvl) in q_tiles]
                    pv = (jnp.concatenate(pv_tiles, axis=0)
                          if len(pv_tiles) > 1 else pv_tiles[0])  # (T, HS) f32
                    head_outs.append(pv.astype(jnp.bfloat16))
                pv_rows.append(jnp.concatenate(head_outs, axis=1))  # (T, C)

            pv_all = (jnp.concatenate(pv_rows, axis=0)
                      if BT > 1 else pv_rows[0])                 # (M, C) bf16
            # ONE output projection per layer with full M = BT*T.
            attn = jnp.dot(pv_all, wproj_ref[l],
                           preferred_element_type=jnp.float32)
            x = x + attn + vec[2:3]

            # ---- feed-forward ----
            yn = _layernorm(x, vec[3:4], vec[4:5])
            h1 = jnp.dot(yn.astype(jnp.bfloat16), w1_ref[l],
                         preferred_element_type=jnp.float32) + b1_ref[l]
            h1 = jnp.maximum(h1, 0.0)
            ff = jnp.dot(h1.astype(jnp.bfloat16), w2_ref[l],
                         preferred_element_type=jnp.float32) + vec[5:6]
            x = x + ff

        # ---- final layernorm + (vocab-padded, lane-dense) LM head ----
        lnf = lnf_ref[...]
        xn = _layernorm(x, lnf[0:1], lnf[1:2])
        logits = jnp.dot(xn.astype(jnp.bfloat16), wlm_ref[...],
                         preferred_element_type=jnp.float32) + blm_ref[...]
        o_ref[...] = logits.reshape(BT, T, vpad)

    return kernel


# -----------------------------------------------------------------------------
# Weight packing + wrapper
# -----------------------------------------------------------------------------
def _const_spec(arr):
    n = arr.ndim
    return pl.BlockSpec(arr.shape, lambda b, n=n: (0,) * n)


def pack_params(params):
    """Stack per-layer weights to (L, ...), fuse QKV (scale folded into Wq),
    pack small per-layer vectors into one array, cast matmul weights to bf16,
    pad the LM head to a 128-lane vocab."""
    scale = 1.0 / (N_EMBD ** 0.5)     # module scales by n_embd, not head_size
    blocks = params["blocks"]

    def fuse_qkv(p):
        # (H, C, HS) -> (C, H*HS); head h occupies columns [h*HS, (h+1)*HS).
        wq = jnp.transpose(p["wq"], (1, 0, 2)).reshape(N_EMBD, N_EMBD) * scale
        wk = jnp.transpose(p["wk"], (1, 0, 2)).reshape(N_EMBD, N_EMBD)
        wv = jnp.transpose(p["wv"], (1, 0, 2)).reshape(N_EMBD, N_EMBD)
        return jnp.concatenate([wq, wk, wv], axis=1)              # (C, 3C)

    def stack(name):
        return jnp.stack([b[name] for b in blocks], axis=0)

    # Pack the seven 1-row C-wide f32 vectors per layer into one (L, 6, C).
    vec = jnp.stack([jnp.concatenate(
        [b["ln1_g"], b["ln1_b"], b["bproj"], b["ln2_g"], b["ln2_b"], b["b2"]],
        axis=0) for b in blocks], axis=0)

    f = params["final"]
    vocab = f["wlm"].shape[1]
    vpad = ((vocab + LANE - 1) // LANE) * LANE
    wlm_pad = jnp.zeros((N_EMBD, vpad), jnp.float32).at[:, :vocab].set(f["wlm"])
    blm_pad = jnp.zeros((1, vpad), jnp.float32).at[:, :vocab].set(f["blm"])
    lnf = jnp.concatenate([f["lnf_g"], f["lnf_b"]], axis=0)       # (2, C)

    return {
        "vec": vec,
        "w_qkv": jnp.stack([fuse_qkv(b) for b in blocks]).astype(jnp.bfloat16),
        "w_proj": stack("wproj").astype(jnp.bfloat16),
        "w1": stack("w1").astype(jnp.bfloat16),
        "b1": stack("b1"),
        "w2": stack("w2").astype(jnp.bfloat16),
        "lnf": lnf,
        "wlm": wlm_pad.astype(jnp.bfloat16),
        "blm": blm_pad,
        "vocab": vocab,
    }


def _choose_bt(B):
    """Batch-block size: amortize per-step cost but keep >=2 grid steps
    (megacore on v7x) and bound unrolled code size / VMEM."""
    return max(1, min(8, B // 2))


def bigram_lm_forward(idx, params):
    """idx: [B, T] int32 token ids.  Returns logits [B, T, vocab] (f32)."""
    B, T = idx.shape
    C = N_EMBD
    packed = pack_params(params)
    vocab = packed["vocab"]
    vpad = packed["wlm"].shape[1]

    # Embedding gathers are glue (plain JAX).
    tok = jnp.take(params["tok_emb"], idx, axis=0)                # (B, T, C)
    pos = params["pos_emb"][:T][None, :, :]                       # (1, T, C)
    x = (tok + pos).astype(jnp.float32)

    BT = _choose_bt(B)
    nb = -(-B // BT)                  # cdiv
    Bpad = nb * BT
    if Bpad != B:
        x = jnp.pad(x, ((0, Bpad - B), (0, 0), (0, 0)))

    weights = [packed["vec"], packed["w_qkv"], packed["w_proj"],
               packed["w1"], packed["b1"], packed["w2"],
               packed["lnf"], packed["wlm"], packed["blm"]]

    kernel = _make_kernel(BT, T, vpad)
    logits_pad = pl.pallas_call(
        kernel,
        out_shape=jax.ShapeDtypeStruct((Bpad, T, vpad), jnp.float32),
        grid_spec=pltpu.PrefetchScalarGridSpec(
            num_scalar_prefetch=0,
            grid=(nb,),
            in_specs=[pl.BlockSpec((BT, T, C), lambda b: (b, 0, 0))]
                     + [_const_spec(w) for w in weights],
            out_specs=pl.BlockSpec((BT, T, vpad), lambda b: (b, 0, 0)),
        ),
        compiler_params=pltpu.CompilerParams(
            dimension_semantics=("parallel",)),
    )(x, *weights)

    return logits_pad[:B, :, :vocab]


# -----------------------------------------------------------------------------
# Deterministic parameter init (PyTorch-like per-layer layout)
# -----------------------------------------------------------------------------
def init_params(key, vocab_size):
    def nrm(key, shape, scale=0.02):
        return scale * jax.random.normal(key, shape, dtype=jnp.float32)

    keys = jax.random.split(key, 4 + N_LAYERS)
    params = {
        "tok_emb": nrm(keys[0], (vocab_size, N_EMBD)),
        "pos_emb": nrm(keys[1], (BLOCK_SIZE, N_EMBD)),
        "blocks": [],
        "final": {
            "lnf_g": jnp.ones((1, N_EMBD), jnp.float32),
            "lnf_b": jnp.zeros((1, N_EMBD), jnp.float32),
            "wlm": nrm(keys[2], (N_EMBD, vocab_size)),
            "blm": nrm(keys[3], (1, vocab_size)),
        },
    }
    for l in range(N_LAYERS):
        lk = jax.random.split(keys[4 + l], 8)
        params["blocks"].append({
            "ln1_g": jnp.ones((1, N_EMBD), jnp.float32),
            "ln1_b": jnp.zeros((1, N_EMBD), jnp.float32),
            "wq": nrm(lk[0], (N_HEAD, N_EMBD, HEAD_SIZE)),
            "wk": nrm(lk[1], (N_HEAD, N_EMBD, HEAD_SIZE)),
            "wv": nrm(lk[2], (N_HEAD, N_EMBD, HEAD_SIZE)),
            "wproj": nrm(lk[3], (N_EMBD, N_EMBD)),
            "bproj": nrm(lk[4], (1, N_EMBD)),
            "ln2_g": jnp.ones((1, N_EMBD), jnp.float32),
            "ln2_b": jnp.zeros((1, N_EMBD), jnp.float32),
            "w1": nrm(lk[5], (N_EMBD, 4 * N_EMBD)),
            "b1": jnp.zeros((1, 4 * N_EMBD), jnp.float32),
            "w2": nrm(lk[6], (4 * N_EMBD, N_EMBD)),
            "b2": jnp.zeros((1, N_EMBD), jnp.float32),
        })
    return params


# -----------------------------------------------------------------------------
# Pure-JAX f32 reference (matches the PyTorch module semantics)
# -----------------------------------------------------------------------------
def reference_forward(idx, params):
    B, T = idx.shape
    x = jnp.take(params["tok_emb"], idx, axis=0) + params["pos_emb"][:T][None]

    def ln(x, g, b):
        mu = jnp.mean(x, -1, keepdims=True)
        var = jnp.mean((x - mu) ** 2, -1, keepdims=True)
        return (x - mu) / jnp.sqrt(var + LN_EPS) * g[0] + b[0]

    mask = jnp.tril(jnp.ones((T, T), bool))
    for p in params["blocks"]:
        xn = ln(x, p["ln1_g"], p["ln1_b"])
        outs = []
        for h in range(N_HEAD):
            q = xn @ p["wq"][h]
            k = xn @ p["wk"][h]
            v = xn @ p["wv"][h]
            s = jnp.einsum("btd,bsd->bts", q, k) / (N_EMBD ** 0.5)
            s = jnp.where(mask[None], s, -jnp.inf)
            w = jax.nn.softmax(s, axis=-1)
            outs.append(jnp.einsum("bts,bsd->btd", w, v))
        attn = jnp.concatenate(outs, -1) @ p["wproj"] + p["bproj"][0]
        x = x + attn
        yn = ln(x, p["ln2_g"], p["ln2_b"])
        ff = jnp.maximum(yn @ p["w1"] + p["b1"][0], 0.0) @ p["w2"] + p["b2"][0]
        x = x + ff
    f = params["final"]
    return ln(x, f["lnf_g"], f["lnf_b"]) @ f["wlm"] + f["blm"][0]


if __name__ == "__main__":
    VOCAB = 65
    key = jax.random.PRNGKey(0)
    pkey, ikey = jax.random.split(key)
    params = init_params(pkey, VOCAB)

    def check(idx, tag):
        logits = jax.block_until_ready(bigram_lm_forward(idx, params))
        ref = reference_forward(idx, params)
        assert logits.shape == ref.shape == idx.shape + (VOCAB,)
        err = float(jnp.max(jnp.abs(logits - ref)))
        assert jnp.allclose(logits, ref, atol=2e-2, rtol=2e-2), (
            f"mismatch vs reference ({tag}), max abs err = {err}")

    # --- primary small-shape check (B=2, T=8; BT=1, grid=(2,)) ---
    check(jax.random.randint(ikey, (2, 8), 0, VOCAB, dtype=jnp.int32), "B2T8")

    # --- batched-block path (B=4, T=64; BT=2, grid=(2,)) ---
    check(jax.random.randint(jax.random.PRNGKey(2), (4, 64), 0, VOCAB,
                             dtype=jnp.int32), "B4T64")

    # --- full-context check (T == BLOCK_SIZE; exercises query tiling) ---
    check(jax.random.randint(jax.random.PRNGKey(1), (2, BLOCK_SIZE), 0, VOCAB,
                             dtype=jnp.int32), "B2T256")

    print("KERNEL_OK")
</pallas_src>

<mosaic_0001>
module attributes {stable_mosaic.version = 11 : i64} {
  func.func @kernel(%arg0: i32, %arg1: memref<1x8x32xf32, #tpu.memory_space<vmem>>, %arg2: memref<4x6x32xf32, #tpu.memory_space<vmem>>, %arg3: memref<4x32x96xbf16, #tpu.memory_space<vmem>>, %arg4: memref<4x32x32xbf16, #tpu.memory_space<vmem>>, %arg5: memref<4x32x128xbf16, #tpu.memory_space<vmem>>, %arg6: memref<4x1x128xf32, #tpu.memory_space<vmem>>, %arg7: memref<4x128x32xbf16, #tpu.memory_space<vmem>>, %arg8: memref<2x32xf32, #tpu.memory_space<vmem>>, %arg9: memref<32x128xbf16, #tpu.memory_space<vmem>>, %arg10: memref<1x128xf32, #tpu.memory_space<vmem>>, %arg11: memref<1x8x128xf32, #tpu.memory_space<vmem>>) attributes {dimension_semantics = [#tpu.dimension_semantics<parallel>], iteration_bounds = array<i64: 2>, scalar_prefetch = 0 : i64, scratch_operands = 0 : i64, tpu.core_type = #tpu.core_type<tc>, window_params = [{transform_indices = @transform_0, window_bounds = array<i64: 1, 8, 32>}, {pipeline_mode = #tpu.pipeline_mode<synchronous>, transform_indices = @transform_1, window_bounds = array<i64: 4, 6, 32>}, {pipeline_mode = #tpu.pipeline_mode<synchronous>, transform_indices = @transform_2, window_bounds = array<i64: 4, 32, 96>}, {pipeline_mode = #tpu.pipeline_mode<synchronous>, transform_indices = @transform_3, window_bounds = array<i64: 4, 32, 32>}, {pipeline_mode = #tpu.pipeline_mode<synchronous>, transform_indices = @transform_4, window_bounds = array<i64: 4, 32, 128>}, {pipeline_mode = #tpu.pipeline_mode<synchronous>, transform_indices = @transform_5, window_bounds = array<i64: 4, 1, 128>}, {pipeline_mode = #tpu.pipeline_mode<synchronous>, transform_indices = @transform_6, window_bounds = array<i64: 4, 128, 32>}, {pipeline_mode = #tpu.pipeline_mode<synchronous>, transform_indices = @transform_7, window_bounds = array<i64: 2, 32>}, {pipeline_mode = #tpu.pipeline_mode<synchronous>, transform_indices = @transform_8, window_bounds = array<i64: 32, 128>}, {pipeline_mode = #tpu.pipeline_mode<synchronous>, transform_indices = @transform_9, window_bounds = array<i64: 1, 128>}, {transform_indices = @transform_10, window_bounds = array<i64: 1, 8, 128>}]} {
    %c0 = arith.constant 0 : index
    %c0_0 = arith.constant 0 : index
    %c0_1 = arith.constant 0 : index
    %0 = vector.load %arg1[%c0, %c0_0, %c0_1] : memref<1x8x32xf32, #tpu.memory_space<vmem>>, vector<1x8x32xf32>
    %1 = vector.shape_cast %0 : vector<1x8x32xf32> to vector<8x32xf32>
    %c0_2 = arith.constant 0 : index
    %c0_3 = arith.constant 0 : index
    %c0_4 = arith.constant 0 : index
    %2 = vector.load %arg2[%c0_2, %c0_3, %c0_4] : memref<4x6x32xf32, #tpu.memory_space<vmem>>, vector<1x6x32xf32>
    %3 = vector.shape_cast %2 : vector<1x6x32xf32> to vector<6x32xf32>
    %4 = vector.extract_strided_slice %3 {offsets = [0, 0], sizes = [1, 32], strides = [1, 1]} : vector<6x32xf32> to vector<1x32xf32>
    %5 = vector.extract_strided_slice %3 {offsets = [1, 0], sizes = [1, 32], strides = [1, 1]} : vector<6x32xf32> to vector<1x32xf32>
    %cst = arith.constant dense<0.000000e+00> : vector<8xf32>
    %6 = vector.multi_reduction <add>, %1, %cst [1] : vector<8x32xf32> to vector<8xf32>
    %7 = vector.shape_cast %6 : vector<8xf32> to vector<8x1xf32>
    %cst_5 = arith.constant 3.200000e+01 : f32
    %8 = vector.broadcast %cst_5 : f32 to vector<8x1xf32>
    %9 = arith.divf %7, %8 : vector<8x1xf32>
    %10 = arith.mulf %1, %1 : vector<8x32xf32>
    %cst_6 = arith.constant dense<0.000000e+00> : vector<8xf32>
    %11 = vector.multi_reduction <add>, %10, %cst_6 [1] : vector<8x32xf32> to vector<8xf32>
    %12 = vector.shape_cast %11 : vector<8xf32> to vector<8x1xf32>
    %cst_7 = arith.constant 3.200000e+01 : f32
    %13 = vector.broadcast %cst_7 : f32 to vector<8x1xf32>
    %14 = arith.divf %12, %13 : vector<8x1xf32>
    %15 = arith.mulf %9, %9 : vector<8x1xf32>
    %16 = arith.subf %14, %15 : vector<8x1xf32>
    %17 = vector.broadcast %9 : vector<8x1xf32> to vector<8x32xf32>
    %18 = arith.subf %1, %17 : vector<8x32xf32>
    %cst_8 = arith.constant 9.99999974E-6 : f32
    %19 = vector.broadcast %cst_8 : f32 to vector<8x1xf32>
    %20 = arith.addf %16, %19 : vector<8x1xf32>
    %21 = math.rsqrt %20 : vector<8x1xf32>
    %22 = vector.broadcast %21 : vector<8x1xf32> to vector<8x32xf32>
    %23 = arith.mulf %18, %22 : vector<8x32xf32>
    %24 = vector.broadcast %4 : vector<1x32xf32> to vector<8x32xf32>
    %25 = arith.mulf %23, %24 : vector<8x32xf32>
    %26 = vector.broadcast %5 : vector<1x32xf32> to vector<8x32xf32>
    %27 = arith.addf %25, %26 : vector<8x32xf32>
    %28 = arith.truncf %27 : vector<8x32xf32> to vector<8x32xbf16>
    %c0_9 = arith.constant 0 : index
    %c0_10 = arith.constant 0 : index
    %c0_11 = arith.constant 0 : index
    %29 = vector.load %arg3[%c0_9, %c0_10, %c0_11] : memref<4x32x96xbf16, #tpu.memory_space<vmem>>, vector<1x32x96xbf16>
    %30 = vector.shape_cast %29 : vector<1x32x96xbf16> to vector<32x96xbf16>
    %cst_12 = arith.constant dense<0.000000e+00> : vector<8x96xf32>
    %31 = tpu.matmul %28, %30, %cst_12 {dimension_numbers = #tpu.dot_dimension_numbers<[1], [0], [0], [1], [0, 0, 1, 1], [], []>} : vector<8x32xbf16>, vector<32x96xbf16>, vector<8x96xf32> -> vector<8x96xf32>
    %32 = vector.extract_strided_slice %31 {offsets = [0, 0], sizes = [8, 32], strides = [1, 1]} : vector<8x96xf32> to vector<8x32xf32>
    %33 = arith.truncf %32 : vector<8x32xf32> to vector<8x32xbf16>
    %34 = vector.extract_strided_slice %31 {offsets = [0, 32], sizes = [8, 32], strides = [1, 1]} : vector<8x96xf32> to vector<8x32xf32>
    %35 = tpu.transpose %34, [1, 0] : vector<8x32xf32> -> vector<32x8xf32>
    %36 = arith.truncf %35 : vector<32x8xf32> to vector<32x8xbf16>
    %37 = vector.extract_strided_slice %31 {offsets = [0, 64], sizes = [8, 32], strides = [1, 1]} : vector<8x96xf32> to vector<8x32xf32>
    %38 = arith.truncf %37 : vector<8x32xf32> to vector<8x32xbf16>
    %39 = vector.extract_strided_slice %33 {offsets = [0, 0], sizes = [8, 8], strides = [1, 1]} : vector<8x32xbf16> to vector<8x8xbf16>
    %40 = vector.extract_strided_slice %36 {offsets = [0, 0], sizes = [8, 8], strides = [1, 1]} : vector<32x8xbf16> to vector<8x8xbf16>
    %41 = vector.extract_strided_slice %38 {offsets = [0, 0], sizes = [8, 8], strides = [1, 1]} : vector<8x32xbf16> to vector<8x8xbf16>
    %cst_13 = arith.constant dense<0.000000e+00> : vector<8x8xf32>
    %42 = tpu.matmul %39, %40, %cst_13 {dimension_numbers = #tpu.dot_dimension_numbers<[1], [0], [0], [1], [0, 0, 1, 1], [], []>} : vector<8x8xbf16>, vector<8x8xbf16>, vector<8x8xf32> -> vector<8x8xf32>
    %43 = tpu.iota {dimensions = array<i32: 0>} : vector<8x8xi32>
    %c0_i32 = arith.constant 0 : i32
    %44 = vector.broadcast %c0_i32 : i32 to vector<8x8xi32>
    %45 = arith.addi %43, %44 : vector<8x8xi32>
    %46 = tpu.iota {dimensions = array<i32: 1>} : vector<8x8xi32>
    %47 = arith.cmpi sge, %45, %46 : vector<8x8xi32>
    %cst_14 = arith.constant -1.000000e+30 : f32
    %48 = vector.broadcast %cst_14 : f32 to vector<8x8xf32>
    %49 = arith.select %47, %42, %48 : vector<8x8xi1>, vector<8x8xf32>
    %cst_15 = arith.constant dense<0xFF800000> : vector<8xf32>
    %50 = vector.multi_reduction <maximumf>, %49, %cst_15 [1] : vector<8x8xf32> to vector<8xf32>
    %51 = vector.shape_cast %50 : vector<8xf32> to vector<8x1xf32>
    %52 = vector.broadcast %51 : vector<8x1xf32> to vector<8x8xf32>
    %53 = arith.subf %49, %52 : vector<8x8xf32>
    %54 = math.exp %53 : vector<8x8xf32>
    %cst_16 = arith.constant dense<0.000000e+00> : vector<8xf32>
    %55 = vector.multi_reduction <add>, %54, %cst_16 [1] : vector<8x8xf32> to vector<8xf32>
    %56 = vector.shape_cast %55 : vector<8xf32> to vector<8x1xf32>
    %57 = tpu.reciprocal %56 {approx = true} : vector<8x1xf32> -> vector<8x1xf32>
    %58 = vector.broadcast %57 : vector<8x1xf32> to vector<8x8xf32>
    %59 = arith.mulf %54, %58 : vector<8x8xf32>
    %60 = arith.truncf %59 : vector<8x8xf32> to vector<8x8xbf16>
    %cst_17 = arith.constant dense<0.000000e+00> : vector<8x8xf32>
    %61 = tpu.matmul %60, %41, %cst_17 {dimension_numbers = #tpu.dot_dimension_numbers<[1], [0], [0], [1], [0, 0, 1, 1], [], []>} : vector<8x8xbf16>, vector<8x8xbf16>, vector<8x8xf32> -> vector<8x8xf32>
    %62 = arith.truncf %61 : vector<8x8xf32> to vector<8x8xbf16>
    %63 = vector.extract_strided_slice %33 {offsets = [0, 8], sizes = [8, 8], strides = [1, 1]} : vector<8x32xbf16> to vector<8x8xbf16>
    %64 = vector.extract_strided_slice %36 {offsets = [8, 0], sizes = [8, 8], strides = [1, 1]} : vector<32x8xbf16> to vector<8x8xbf16>
    %65 = vector.extract_strided_slice %38 {offsets = [0, 8], sizes = [8, 8], strides = [1, 1]} : vector<8x32xbf16> to vector<8x8xbf16>
    %cst_18 = arith.constant dense<0.000000e+00> : vector<8x8xf32>
    %66 = tpu.matmul %63, %64, %cst_18 {dimension_numbers = #tpu.dot_dimension_numbers<[1], [0], [0], [1], [0, 0, 1, 1], [], []>} : vector<8x8xbf16>, vector<8x8xbf16>, vector<8x8xf32> -> vector<8x8xf32>
    %67 = tpu.iota {dimensions = array<i32: 0>} : vector<8x8xi32>
    %c0_i32_19 = arith.constant 0 : i32
    %68 = vector.broadcast %c0_i32_19 : i32 to vector<8x8xi32>
    %69 = arith.addi %67, %68 : vector<8x8xi32>
    %70 = tpu.iota {dimensions = array<i32: 1>} : vector<8x8xi32>
    %71 = arith.cmpi sge, %69, %70 : vector<8x8xi32>
    %cst_20 = arith.constant -1.000000e+30 : f32
    %72 = vector.broadcast %cst_20 : f32 to vector<8x8xf32>
    %73 = arith.select %71, %66, %72 : vector<8x8xi1>, vector<8x8xf32>
    %cst_21 = arith.constant dense<0xFF800000> : vector<8xf32>
    %74 = vector.multi_reduction <maximumf>, %73, %cst_21 [1] : vector<8x8xf32> to vector<8xf32>
    %75 = vector.shape_cast %74 : vector<8xf32> to vector<8x1xf32>
    %76 = vector.broadcast %75 : vector<8x1xf32> to vector<8x8xf32>
    %77 = arith.subf %73, %76 : vector<8x8xf32>
    %78 = math.exp %77 : vector<8x8xf32>
    %cst_22 = arith.constant dense<0.000000e+00> : vector<8xf32>
    %79 = vector.multi_reduction <add>, %78, %cst_22 [1] : vector<8x8xf32> to vector<8xf32>
    %80 = vector.shape_cast %79 : vector<8xf32> to vector<8x1xf32>
    %81 = tpu.reciprocal %80 {approx = true} : vector<8x1xf32> -> vector<8x1xf32>
    %82 = vector.broadcast %81 : vector<8x1xf32> to vector<8x8xf32>
    %83 = arith.mulf %78, %82 : vector<8x8xf32>
    %84 = arith.truncf %83 : vector<8x8xf32> to vector<8x8xbf16>
    %cst_23 = arith.constant dense<0.000000e+00> : vector<8x8xf32>
    %85 = tpu.matmul %84, %65, %cst_23 {dimension_numbers = #tpu.dot_dimension_numbers<[1], [0], [0], [1], [0, 0, 1, 1], [], []>} : vector<8x8xbf16>, vector<8x8xbf16>, vector<8x8xf32> -> vector<8x8xf32>
    %86 = arith.truncf %85 : vector<8x8xf32> to vector<8x8xbf16>
    %87 = vector.extract_strided_slice %33 {offsets = [0, 16], sizes = [8, 8], strides = [1, 1]} : vector<8x32xbf16> to vector<8x8xbf16>
    %88 = vector.extract_strided_slice %36 {offsets = [16, 0], sizes = [8, 8], strides = [1, 1]} : vector<32x8xbf16> to vector<8x8xbf16>
    %89 = vector.extract_strided_slice %38 {offsets = [0, 16], sizes = [8, 8], strides = [1, 1]} : vector<8x32xbf16> to vector<8x8xbf16>
    %cst_24 = arith.constant dense<0.000000e+00> : vector<8x8xf32>
    %90 = tpu.matmul %87, %88, %cst_24 {dimension_numbers = #tpu.dot_dimension_numbers<[1], [0], [0], [1], [0, 0, 1, 1], [], []>} : vector<8x8xbf16>, vector<8x8xbf16>, vector<8x8xf32> -> vector<8x8xf32>
    %91 = tpu.iota {dimensions = array<i32: 0>} : vector<8x8xi32>
    %c0_i32_25 = arith.constant 0 : i32
    %92 = vector.broadcast %c0_i32_25 : i32 to vector<8x8xi32>
    %93 = arith.addi %91, %92 : vector<8x8xi32>
    %94 = tpu.iota {dimensions = array<i32: 1>} : vector<8x8xi32>
    %95 = arith.cmpi sge, %93, %94 : vector<8x8xi32>
    %cst_26 = arith.constant -1.000000e+30 : f32
    %96 = vector.broadcast %cst_26 : f32 to vector<8x8xf32>
    %97 = arith.select %95, %90, %96 : vector<8x8xi1>, vector<8x8xf32>
    %cst_27 = arith.constant dense<0xFF800000> : vector<8xf32>
    %98 = vector.multi_reduction <maximumf>, %97, %cst_27 [1] : vector<8x8xf32> to vector<8xf32>
    %99 = vector.shape_cast %98 : vector<8xf32> to vector<8x1xf32>
    %100 = vector.broadcast %99 : vector<8x1xf32> to vector<8x8xf32>
    %101 = arith.subf %97, %100 : vector<8x8xf32>
    %102 = math.exp %101 : vector<8x8xf32>
    %cst_28 = arith.constant dense<0.000000e+00> : vector<8xf32>
    %103 = vector.multi_reduction <add>, %102, %cst_28 [1] : vector<8x8xf32> to vector<8xf32>
    %104 = vector.shape_cast %103 : vector<8xf32> to vector<8x1xf32>
    %105 = tpu.reciprocal %104 {approx = true} : vector<8x1xf32> -> vector<8x1xf32>
    %106 = vector.broadcast %105 : vector<8x1xf32> to vector<8x8xf32>
    %107 = arith.mulf %102, %106 : vector<8x8xf32>
    %108 = arith.truncf %107 : vector<8x8xf32> to vector<8x8xbf16>
    %cst_29 = arith.constant dense<0.000000e+00> : vector<8x8xf32>
    %109 = tpu.matmul %108, %89, %cst_29 {dimension_numbers = #tpu.dot_dimension_numbers<[1], [0], [0], [1], [0, 0, 1, 1], [], []>} : vector<8x8xbf16>, vector<8x8xbf16>, vector<8x8xf32> -> vector<8x8xf32>
    %110 = arith.truncf %109 : vector<8x8xf32> to vector<8x8xbf16>
    %111 = vector.extract_strided_slice %33 {offsets = [0, 24], sizes = [8, 8], strides = [1, 1]} : vector<8x32xbf16> to vector<8x8xbf16>
    %112 = vector.extract_strided_slice %36 {offsets = [24, 0], sizes = [8, 8], strides = [1, 1]} : vector<32x8xbf16> to vector<8x8xbf16>
    %113 = vector.extract_strided_slice %38 {offsets = [0, 24], sizes = [8, 8], strides = [1, 1]} : vector<8x32xbf16> to vector<8x8xbf16>
    %cst_30 = arith.constant dense<0.000000e+00> : vector<8x8xf32>
    %114 = tpu.matmul %111, %112, %cst_30 {dimension_numbers = #tpu.dot_dimension_numbers<[1], [0], [0], [1], [0, 0, 1, 1], [], []>} : vector<8x8xbf16>, vector<8x8xbf16>, vector<8x8xf32> -> vector<8x8xf32>
    %115 = tpu.iota {dimensions = array<i32: 0>} : vector<8x8xi32>
    %c0_i32_31 = arith.constant 0 : i32
    %116 = vector.broadcast %c0_i32_31 : i32 to vector<8x8xi32>
    %117 = arith.addi %115, %116 : vector<8x8xi32>
    %118 = tpu.iota {dimensions = array<i32: 1>} : vector<8x8xi32>
    %119 = arith.cmpi sge, %117, %118 : vector<8x8xi32>
    %cst_32 = arith.constant -1.000000e+30 : f32
    %120 = vector.broadcast %cst_32 : f32 to vector<8x8xf32>
    %121 = arith.select %119, %114, %120 : vector<8x8xi1>, vector<8x8xf32>
    %cst_33 = arith.constant dense<0xFF800000> : vector<8xf32>
    %122 = vector.multi_reduction <maximumf>, %121, %cst_33 [1] : vector<8x8xf32> to vector<8xf32>
    %123 = vector.shape_cast %122 : vector<8xf32> to vector<8x1xf32>
    %124 = vector.broadcast %123 : vector<8x1xf32> to vector<8x8xf32>
    %125 = arith.subf %121, %124 : vector<8x8xf32>
    %126 = math.exp %125 : vector<8x8xf32>
    %cst_34 = arith.constant dense<0.000000e+00> : vector<8xf32>
    %127 = vector.multi_reduction <add>, %126, %cst_34 [1] : vector<8x8xf32> to vector<8xf32>
    %128 = vector.shape_cast %127 : vector<8xf32> to vector<8x1xf32>
    %129 = tpu.reciprocal %128 {approx = true} : vector<8x1xf32> -> vector<8x1xf32>
    %130 = vector.broadcast %129 : vector<8x1xf32> to vector<8x8xf32>
    %131 = arith.mulf %126, %130 : vector<8x8xf32>
    %132 = arith.truncf %131 : vector<8x8xf32> to vector<8x8xbf16>
    %cst_35 = arith.constant dense<0.000000e+00> : vector<8x8xf32>
    %133 = tpu.matmul %132, %113, %cst_35 {dimension_numbers = #tpu.dot_dimension_numbers<[1], [0], [0], [1], [0, 0, 1, 1], [], []>} : vector<8x8xbf16>, vector<8x8xbf16>, vector<8x8xf32> -> vector<8x8xf32>
    %134 = arith.truncf %133 : vector<8x8xf32> to vector<8x8xbf16>
    %135 = tpu.concatenate %62, %86, %110, %134 in 1 : vector<8x8xbf16>, vector<8x8xbf16>, vector<8x8xbf16>, vector<8x8xbf16> -> vector<8x32xbf16>
    %c0_36 = arith.constant 0 : index
    %c0_37 = arith.constant 0 : index
    %c0_38 = arith.constant 0 : index
    %136 = vector.load %arg4[%c0_36, %c0_37, %c0_38] : memref<4x32x32xbf16, #tpu.memory_space<vmem>>, vector<1x32x32xbf16>
    %137 = vector.shape_cast %136 : vector<1x32x32xbf16> to vector<32x32xbf16>
    %cst_39 = arith.constant dense<0.000000e+00> : vector<8x32xf32>
    %138 = tpu.matmul %135, %137, %cst_39 {dimension_numbers = #tpu.dot_dimension_numbers<[1], [0], [0], [1], [0, 0, 1, 1], [], []>} : vector<8x32xbf16>, vector<32x32xbf16>, vector<8x32xf32> -> vector<8x32xf32>
    %139 = arith.addf %1, %138 : vector<8x32xf32>
    %140 = vector.extract_strided_slice %3 {offsets = [2, 0], sizes = [1, 32], strides = [1, 1]} : vector<6x32xf32> to vector<1x32xf32>
    %141 = vector.broadcast %140 : vector<1x32xf32> to vector<8x32xf32>
    %142 = arith.addf %139, %141 : vector<8x32xf32>
    %143 = vector.extract_strided_slice %3 {offsets = [3, 0], sizes = [1, 32], strides = [1, 1]} : vector<6x32xf32> to vector<1x32xf32>
    %144 = vector.extract_strided_slice %3 {offsets = [4, 0], sizes = [1, 32], strides = [1, 1]} : vector<6x32xf32> to vector<1x32xf32>
    %cst_40 = arith.constant dense<0.000000e+00> : vector<8xf32>
    %145 = vector.multi_reduction <add>, %142, %cst_40 [1] : vector<8x32xf32> to vector<8xf32>
    %146 = vector.shape_cast %145 : vector<8xf32> to vector<8x1xf32>
    %cst_41 = arith.constant 3.200000e+01 : f32
    %147 = vector.broadcast %cst_41 : f32 to vector<8x1xf32>
    %148 = arith.divf %146, %147 : vector<8x1xf32>
    %149 = arith.mulf %142, %142 : vector<8x32xf32>
    %cst_42 = arith.constant dense<0.000000e+00> : vector<8xf32>
    %150 = vector.multi_reduction <add>, %149, %cst_42 [1] : vector<8x32xf32> to vector<8xf32>
    %151 = vector.shape_cast %150 : vector<8xf32> to vector<8x1xf32>
    %cst_43 = arith.constant 3.200000e+01 : f32
    %152 = vector.broadcast %cst_43 : f32 to vector<8x1xf32>
    %153 = arith.divf %151, %152 : vector<8x1xf32>
    %154 = arith.mulf %148, %148 : vector<8x1xf32>
    %155 = arith.subf %153, %154 : vector<8x1xf32>
    %156 = vector.broadcast %148 : vector<8x1xf32> to vector<8x32xf32>
    %157 = arith.subf %142, %156 : vector<8x32xf32>
    %cst_44 = arith.constant 9.99999974E-6 : f32
    %158 = vector.broadcast %cst_44 : f32 to vector<8x1xf32>
    %159 = arith.addf %155, %158 : vector<8x1xf32>
    %160 = math.rsqrt %159 : vector<8x1xf32>
    %161 = vector.broadcast %160 : vector<8x1xf32> to vector<8x32xf32>
    %162 = arith.mulf %157, %161 : vector<8x32xf32>
    %163 = vector.broadcast %143 : vector<1x32xf32> to vector<8x32xf32>
    %164 = arith.mulf %162, %163 : vector<8x32xf32>
    %165 = vector.broadcast %144 : vector<1x32xf32> to vector<8x32xf32>
    %166 = arith.addf %164, %165 : vector<8x32xf32>
    %167 = arith.truncf %166 : vector<8x32xf32> to vector<8x32xbf16>
    %c0_45 = arith.constant 0 : index
    %c0_46 = arith.constant 0 : index
    %c0_47 = arith.constant 0 : index
    %168 = vector.load %arg5[%c0_45, %c0_46, %c0_47] : memref<4x32x128xbf16, #tpu.memory_space<vmem>>, vector<1x32x128xbf16>
    %169 = vector.shape_cast %168 : vector<1x32x128xbf16> to vector<32x128xbf16>
    %cst_48 = arith.constant dense<0.000000e+00> : vector<8x128xf32>
    %170 = tpu.matmul %167, %169, %cst_48 {dimension_numbers = #tpu.dot_dimension_numbers<[1], [0], [0], [1], [0, 0, 1, 1], [], []>} : vector<8x32xbf16>, vector<32x128xbf16>, vector<8x128xf32> -> vector<8x128xf32>
    %c0_49 = arith.constant 0 : index
    %c0_50 = arith.constant 0 : index
    %c0_51 = arith.constant 0 : index
    %171 = vector.load %arg6[%c0_49, %c0_50, %c0_51] : memref<4x1x128xf32, #tpu.memory_space<vmem>>, vector<1x1x128xf32>
    %172 = vector.shape_cast %171 : vector<1x1x128xf32> to vector<1x128xf32>
    %173 = vector.broadcast %172 : vector<1x128xf32> to vector<8x128xf32>
    %174 = arith.addf %170, %173 : vector<8x128xf32>
    %cst_52 = arith.constant 0.000000e+00 : f32
    %175 = vector.broadcast %cst_52 : f32 to vector<8x128xf32>
    %176 = arith.maximumf %174, %175 : vector<8x128xf32>
    %177 = arith.truncf %176 : vector<8x128xf32> to vector<8x128xbf16>
    %c0_53 = arith.constant 0 : index
    %c0_54 = arith.constant 0 : index
    %c0_55 = arith.constant 0 : index
    %178 = vector.load %arg7[%c0_53, %c0_54, %c0_55] : memref<4x128x32xbf16, #tpu.memory_space<vmem>>, vector<1x128x32xbf16>
    %179 = vector.shape_cast %178 : vector<1x128x32xbf16> to vector<128x32xbf16>
    %cst_56 = arith.constant dense<0.000000e+00> : vector<8x32xf32>
    %180 = tpu.matmul %177, %179, %cst_56 {dimension_numbers = #tpu.dot_dimension_numbers<[1], [0], [0], [1], [0, 0, 1, 1], [], []>} : vector<8x128xbf16>, vector<128x32xbf16>, vector<8x32xf32> -> vector<8x32xf32>
    %181 = vector.extract_strided_slice %3 {offsets = [5, 0], sizes = [1, 32], strides = [1, 1]} : vector<6x32xf32> to vector<1x32xf32>
    %182 = vector.broadcast %181 : vector<1x32xf32> to vector<8x32xf32>
    %183 = arith.addf %180, %182 : vector<8x32xf32>
    %184 = arith.addf %142, %183 : vector<8x32xf32>
    %c1 = arith.constant 1 : index
    %c0_57 = arith.constant 0 : index
    %c0_58 = arith.constant 0 : index
    %185 = vector.load %arg2[%c1, %c0_57, %c0_58] : memref<4x6x32xf32, #tpu.memory_space<vmem>>, vector<1x6x32xf32>
    %186 = vector.shape_cast %185 : vector<1x6x32xf32> to vector<6x32xf32>
    %187 = vector.extract_strided_slice %186 {offsets = [0, 0], sizes = [1, 32], strides = [1, 1]} : vector<6x32xf32> to vector<1x32xf32>
    %188 = vector.extract_strided_slice %186 {offsets = [1, 0], sizes = [1, 32], strides = [1, 1]} : vector<6x32xf32> to vector<1x32xf32>
    %cst_59 = arith.constant dense<0.000000e+00> : vector<8xf32>
    %189 = vector.multi_reduction <add>, %184, %cst_59 [1] : vector<8x32xf32> to vector<8xf32>
    %190 = vector.shape_cast %189 : vector<8xf32> to vector<8x1xf32>
    %cst_60 = arith.constant 3.200000e+01 : f32
    %191 = vector.broadcast %cst_60 : f32 to vector<8x1xf32>
    %192 = arith.divf %190, %191 : vector<8x1xf32>
    %193 = arith.mulf %184, %184 : vector<8x32xf32>
    %cst_61 = arith.constant dense<0.000000e+00> : vector<8xf32>
    %194 = vector.multi_reduction <add>, %193, %cst_61 [1] : vector<8x32xf32> to vector<8xf32>
    %195 = vector.shape_cast %194 : vector<8xf32> to vector<8x1xf32>
    %cst_62 = arith.constant 3.200000e+01 : f32
    %196 = vector.broadcast %cst_62 : f32 to vector<8x1xf32>
    %197 = arith.divf %195, %196 : vector<8x1xf32>
    %198 = arith.mulf %192, %192 : vector<8x1xf32>
    %199 = arith.subf %197, %198 : vector<8x1xf32>
    %200 = vector.broadcast %192 : vector<8x1xf32> to vector<8x32xf32>
    %201 = arith.subf %184, %200 : vector<8x32xf32>
    %cst_63 = arith.constant 9.99999974E-6 : f32
    %202 = vector.broadcast %cst_63 : f32 to vector<8x1xf32>
    %203 = arith.addf %199, %202 : vector<8x1xf32>
    %204 = math.rsqrt %203 : vector<8x1xf32>
    %205 = vector.broadcast %204 : vector<8x1xf32> to vector<8x32xf32>
    %206 = arith.mulf %201, %205 : vector<8x32xf32>
    %207 = vector.broadcast %187 : vector<1x32xf32> to vector<8x32xf32>
    %208 = arith.mulf %206, %207 : vector<8x32xf32>
    %209 = vector.broadcast %188 : vector<1x32xf32> to vector<8x32xf32>
    %210 = arith.addf %208, %209 : vector<8x32xf32>
    %211 = arith.truncf %210 : vector<8x32xf32> to vector<8x32xbf16>
    %c1_64 = arith.constant 1 : index
    %c0_65 = arith.constant 0 : index
    %c0_66 = arith.constant 0 : index
    %212 = vector.load %arg3[%c1_64, %c0_65, %c0_66] : memref<4x32x96xbf16, #tpu.memory_space<vmem>>, vector<1x32x96xbf16>
    %213 = vector.shape_cast %212 : vector<1x32x96xbf16> to vector<32x96xbf16>
    %cst_67 = arith.constant dense<0.000000e+00> : vector<8x96xf32>
    %214 = tpu.matmul %211, %213, %cst_67 {dimension_numbers = #tpu.dot_dimension_numbers<[1], [0], [0], [1], [0, 0, 1, 1], [], []>} : vector<8x32xbf16>, vector<32x96xbf16>, vector<8x96xf32> -> vector<8x96xf32>
    %215 = vector.extract_strided_slice %214 {offsets = [0, 0], sizes = [8, 32], strides = [1, 1]} : vector<8x96xf32> to vector<8x32xf32>
    %216 = arith.truncf %215 : vector<8x32xf32> to vector<8x32xbf16>
    %217 = vector.extract_strided_slice %214 {offsets = [0, 32], sizes = [8, 32], strides = [1, 1]} : vector<8x96xf32> to vector<8x32xf32>
    %218 = tpu.transpose %217, [1, 0] : vector<8x32xf32> -> vector<32x8xf32>
    %219 = arith.truncf %218 : vector<32x8xf32> to vector<32x8xbf16>
    %220 = vector.extract_strided_slice %214 {offsets = [0, 64], sizes = [8, 32], strides = [1, 1]} : vector<8x96xf32> to vector<8x32xf32>
    %221 = arith.truncf %220 : vector<8x32xf32> to vector<8x32xbf16>
    %222 = vector.extract_strided_slice %216 {offsets = [0, 0], sizes = [8, 8], strides = [1, 1]} : vector<8x32xbf16> to vector<8x8xbf16>
    %223 = vector.extract_strided_slice %219 {offsets = [0, 0], sizes = [8, 8], strides = [1, 1]} : vector<32x8xbf16> to vector<8x8xbf16>
    %224 = vector.extract_strided_slice %221 {offsets = [0, 0], sizes = [8, 8], strides = [1, 1]} : vector<8x32xbf16> to vector<8x8xbf16>
    %cst_68 = arith.constant dense<0.000000e+00> : vector<8x8xf32>
    %225 = tpu.matmul %222, %223, %cst_68 {dimension_numbers = #tpu.dot_dimension_numbers<[1], [0], [0], [1], [0, 0, 1, 1], [], []>} : vector<8x8xbf16>, vector<8x8xbf16>, vector<8x8xf32> -> vector<8x8xf32>
    %226 = tpu.iota {dimensions = array<i32: 0>} : vector<8x8xi32>
    %c0_i32_69 = arith.constant 0 : i32
    %227 = vector.broadcast %c0_i32_69 : i32 to vector<8x8xi32>
    %228 = arith.addi %226, %227 : vector<8x8xi32>
    %229 = tpu.iota {dimensions = array<i32: 1>} : vector<8x8xi32>
    %230 = arith.cmpi sge, %228, %229 : vector<8x8xi32>
    %cst_70 = arith.constant -1.000000e+30 : f32
    %231 = vector.broadcast %cst_70 : f32 to vector<8x8xf32>
    %232 = arith.select %230, %225, %231 : vector<8x8xi1>, vector<8x8xf32>
    %cst_71 = arith.constant dense<0xFF800000> : vector<8xf32>
    %233 = vector.multi_reduction <maximumf>, %232, %cst_71 [1] : vector<8x8xf32> to vector<8xf32>
    %234 = vector.shape_cast %233 : vector<8xf32> to vector<8x1xf32>
    %235 = vector.broadcast %234 : vector<8x1xf32> to vector<8x8xf32>
    %236 = arith.subf %232, %235 : vector<8x8xf32>
    %237 = math.exp %236 : vector<8x8xf32>
    %cst_72 = arith.constant dense<0.000000e+00> : vector<8xf32>
    %238 = vector.multi_reduction <add>, %237, %cst_72 [1] : vector<8x8xf32> to vector<8xf32>
    %239 = vector.shape_cast %238 : vector<8xf32> to vector<8x1xf32>
    %240 = tpu.reciprocal %239 {approx = true} : vector<8x1xf32> -> vector<8x1xf32>
    %241 = vector.broadcast %240 : vector<8x1xf32> to vector<8x8xf32>
    %242 = arith.mulf %237, %241 : vector<8x8xf32>
    %243 = arith.truncf %242 : vector<8x8xf32> to vector<8x8xbf16>
    %cst_73 = arith.constant dense<0.000000e+00> : vector<8x8xf32>
    %244 = tpu.matmul %243, %224, %cst_73 {dimension_numbers = #tpu.dot_dimension_numbers<[1], [0], [0], [1], [0, 0, 1, 1], [], []>} : vector<8x8xbf16>, vector<8x8xbf16>, vector<8x8xf32> -> vector<8x8xf32>
    %245 = arith.truncf %244 : vector<8x8xf32> to vector<8x8xbf16>
    %246 = vector.extract_strided_slice %216 {offsets = [0, 8], sizes = [8, 8], strides = [1, 1]} : vector<8x32xbf16> to vector<8x8xbf16>
    %247 = vector.extract_strided_slice %219 {offsets = [8, 0], sizes = [8, 8], strides = [1, 1]} : vector<32x8xbf16> to vector<8x8xbf16>
    %248 = vector.extract_strided_slice %221 {offsets = [0, 8], sizes = [8, 8], strides = [1, 1]} : vector<8x32xbf16> to vector<8x8xbf16>
    %cst_74 = arith.constant dense<0.000000e+00> : vector<8x8xf32>
    %249 = tpu.matmul %246, %247, %cst_74 {dimension_numbers = #tpu.dot_dimension_numbers<[1], [0], [0], [1], [0, 0, 1, 1], [], []>} : vector<8x8xbf16>, vector<8x8xbf16>, vector<8x8xf32> -> vector<8x8xf32>
    %250 = tpu.iota {dimensions = array<i32: 0>} : vector<8x8xi32>
    %c0_i32_75 = arith.constant 0 : i32
    %251 = vector.broadcast %c0_i32_75 : i32 to vector<8x8xi32>
    %252 = arith.addi %250, %251 : vector<8x8xi32>
    %253 = tpu.iota {dimensions = array<i32: 1>} : vector<8x8xi32>
    %254 = arith.cmpi sge, %252, %253 : vector<8x8xi32>
    %cst_76 = arith.constant -1.000000e+30 : f32
    %255 = vector.broadcast %cst_76 : f32 to vector<8x8xf32>
    %256 = arith.select %254, %249, %255 : vector<8x8xi1>, vector<8x8xf32>
    %cst_77 = arith.constant dense<0xFF800000> : vector<8xf32>
    %257 = vector.multi_reduction <maximumf>, %256, %cst_77 [1] : vector<8x8xf32> to vector<8xf32>
    %258 = vector.shape_cast %257 : vector<8xf32> to vector<8x1xf32>
    %259 = vector.broadcast %258 : vector<8x1xf32> to vector<8x8xf32>
    %260 = arith.subf %256, %259 : vector<8x8xf32>
    %261 = math.exp %260 : vector<8x8xf32>
    %cst_78 = arith.constant dense<0.000000e+00> : vector<8xf32>
    %262 = vector.multi_reduction <add>, %261, %cst_78 [1] : vector<8x8xf32> to vector<8xf32>
    %263 = vector.shape_cast %262 : vector<8xf32> to vector<8x1xf32>
    %264 = tpu.reciprocal %263 {approx = true} : vector<8x1xf32> -> vector<8x1xf32>
    %265 = vector.broadcast %264 : vector<8x1xf32> to vector<8x8xf32>
    %266 = arith.mulf %261, %265 : vector<8x8xf32>
    %267 = arith.truncf %266 : vector<8x8xf32> to vector<8x8xbf16>
    %cst_79 = arith.constant dense<0.000000e+00> : vector<8x8xf32>
    %268 = tpu.matmul %267, %248, %cst_79 {dimension_numbers = #tpu.dot_dimension_numbers<[1], [0], [0], [1], [0, 0, 1, 1], [], []>} : vector<8x8xbf16>, vector<8x8xbf16>, vector<8x8xf32> -> vector<8x8xf32>
    %269 = arith.truncf %268 : vector<8x8xf32> to vector<8x8xbf16>
    %270 = vector.extract_strided_slice %216 {offsets = [0, 16], sizes = [8, 8], strides = [1, 1]} : vector<8x32xbf16> to vector<8x8xbf16>
    %271 = vector.extract_strided_slice %219 {offsets = [16, 0], sizes = [8, 8], strides = [1, 1]} : vector<32x8xbf16> to vector<8x8xbf16>
    %272 = vector.extract_strided_slice %221 {offsets = [0, 16], sizes = [8, 8], strides = [1, 1]} : vector<8x32xbf16> to vector<8x8xbf16>
    %cst_80 = arith.constant dense<0.000000e+00> : vector<8x8xf32>
    %273 = tpu.matmul %270, %271, %cst_80 {dimension_numbers = #tpu.dot_dimension_numbers<[1], [0], [0], [1], [0, 0, 1, 1], [], []>} : vector<8x8xbf16>, vector<8x8xbf16>, vector<8x8xf32> -> vector<8x8xf32>
    %274 = tpu.iota {dimensions = array<i32: 0>} : vector<8x8xi32>
    %c0_i32_81 = arith.constant 0 : i32
    %275 = vector.broadcast %c0_i32_81 : i32 to vector<8x8xi32>
    %276 = arith.addi %274, %275 : vector<8x8xi32>
    %277 = tpu.iota {dimensions = array<i32: 1>} : vector<8x8xi32>
    %278 = arith.cmpi sge, %276, %277 : vector<8x8xi32>
    %cst_82 = arith.constant -1.000000e+30 : f32
    %279 = vector.broadcast %cst_82 : f32 to vector<8x8xf32>
    %280 = arith.select %278, %273, %279 : vector<8x8xi1>, vector<8x8xf32>
    %cst_83 = arith.constant dense<0xFF800000> : vector<8xf32>
    %281 = vector.multi_reduction <maximumf>, %280, %cst_83 [1] : vector<8x8xf32> to vector<8xf32>
    %282 = vector.shape_cast %281 : vector<8xf32> to vector<8x1xf32>
    %283 = vector.broadcast %282 : vector<8x1xf32> to vector<8x8xf32>
    %284 = arith.subf %280, %283 : vector<8x8xf32>
    %285 = math.exp %284 : vector<8x8xf32>
    %cst_84 = arith.constant dense<0.000000e+00> : vector<8xf32>
    %286 = vector.multi_reduction <add>, %285, %cst_84 [1] : vector<8x8xf32> to vector<8xf32>
    %287 = vector.shape_cast %286 : vector<8xf32> to vector<8x1xf32>
    %288 = tpu.reciprocal %287 {approx = true} : vector<8x1xf32> -> vector<8x1xf32>
    %289 = vector.broadcast %288 : vector<8x1xf32> to vector<8x8xf32>
    %290 = arith.mulf %285, %289 : vector<8x8xf32>
    %291 = arith.truncf %290 : vector<8x8xf32> to vector<8x8xbf16>
    %cst_85 = arith.constant dense<0.000000e+00> : vector<8x8xf32>
    %292 = tpu.matmul %291, %272, %cst_85 {dimension_numbers = #tpu.dot_dimension_numbers<[1], [0], [0], [1], [0, 0, 1, 1], [], []>} : vector<8x8xbf16>, vector<8x8xbf16>, vector<8x8xf32> -> vector<8x8xf32>
    %293 = arith.truncf %292 : vector<8x8xf32> to vector<8x8xbf16>
    %294 = vector.extract_strided_slice %216 {offsets = [0, 24], sizes = [8, 8], strides = [1, 1]} : vector<8x32xbf16> to vector<8x8xbf16>
    %295 = vector.extract_strided_slice %219 {offsets = [24, 0], sizes = [8, 8], strides = [1, 1]} : vector<32x8xbf16> to vector<8x8xbf16>
    %296 = vector.extract_strided_slice %221 {offsets = [0, 24], sizes = [8, 8], strides = [1, 1]} : vector<8x32xbf16> to vector<8x8xbf16>
    %cst_86 = arith.constant dense<0.000000e+00> : vector<8x8xf32>
    %297 = tpu.matmul %294, %295, %cst_86 {dimension_numbers = #tpu.dot_dimension_numbers<[1], [0], [0], [1], [0, 0, 1, 1], [], []>} : vector<8x8xbf16>, vector<8x8xbf16>, vector<8x8xf32> -> vector<8x8xf32>
    %298 = tpu.iota {dimensions = array<i32: 0>} : vector<8x8xi32>
    %c0_i32_87 = arith.constant 0 : i32
    %299 = vector.broadcast %c0_i32_87 : i32 to vector<8x8xi32>
    %300 = arith.addi %298, %299 : vector<8x8xi32>
    %301 = tpu.iota {dimensions = array<i32: 1>} : vector<8x8xi32>
    %302 = arith.cmpi sge, %300, %301 : vector<8x8xi32>
    %cst_88 = arith.constant -1.000000e+30 : f32
    %303 = vector.broadcast %cst_88 : f32 to vector<8x8xf32>
    %304 = arith.select %302, %297, %303 : vector<8x8xi1>, vector<8x8xf32>
    %cst_89 = arith.constant dense<0xFF800000> : vector<8xf32>
    %305 = vector.multi_reduction <maximumf>, %304, %cst_89 [1] : vector<8x8xf32> to vector<8xf32>
    %306 = vector.shape_cast %305 : vector<8xf32> to vector<8x1xf32>
    %307 = vector.broadcast %306 : vector<8x1xf32> to vector<8x8xf32>
    %308 = arith.subf %304, %307 : vector<8x8xf32>
    %309 = math.exp %308 : vector<8x8xf32>
    %cst_90 = arith.constant dense<0.000000e+00> : vector<8xf32>
    %310 = vector.multi_reduction <add>, %309, %cst_90 [1] : vector<8x8xf32> to vector<8xf32>
    %311 = vector.shape_cast %310 : vector<8xf32> to vector<8x1xf32>
    %312 = tpu.reciprocal %311 {approx = true} : vector<8x1xf32> -> vector<8x1xf32>
    %313 = vector.broadcast %312 : vector<8x1xf32> to vector<8x8xf32>
    %314 = arith.mulf %309, %313 : vector<8x8xf32>
    %315 = arith.truncf %314 : vector<8x8xf32> to vector<8x8xbf16>
    %cst_91 = arith.constant dense<0.000000e+00> : vector<8x8xf32>
    %316 = tpu.matmul %315, %296, %cst_91 {dimension_numbers = #tpu.dot_dimension_numbers<[1], [0], [0], [1], [0, 0, 1, 1], [], []>} : vector<8x8xbf16>, vector<8x8xbf16>, vector<8x8xf32> -> vector<8x8xf32>
    %317 = arith.truncf %316 : vector<8x8xf32> to vector<8x8xbf16>
    %318 = tpu.concatenate %245, %269, %293, %317 in 1 : vector<8x8xbf16>, vector<8x8xbf16>, vector<8x8xbf16>, vector<8x8xbf16> -> vector<8x32xbf16>
    %c1_92 = arith.constant 1 : index
    %c0_93 = arith.constant 0 : index
    %c0_94 = arith.constant 0 : index
    %319 = vector.load %arg4[%c1_92, %c0_93, %c0_94] : memref<4x32x32xbf16, #tpu.memory_space<vmem>>, vector<1x32x32xbf16>
    %320 = vector.shape_cast %319 : vector<1x32x32xbf16> to vector<32x32xbf16>
    %cst_95 = arith.constant dense<0.000000e+00> : vector<8x32xf32>
    %321 = tpu.matmul %318, %320, %cst_95 {dimension_numbers = #tpu.dot_dimension_numbers<[1], [0], [0], [1], [0, 0, 1, 1], [], []>} : vector<8x32xbf16>, vector<32x32xbf16>, vector<8x32xf32> -> vector<8x32xf32>
    %322 = arith.addf %184, %321 : vector<8x32xf32>
    %323 = vector.extract_strided_slice %186 {offsets = [2, 0], sizes = [1, 32], strides = [1, 1]} : vector<6x32xf32> to vector<1x32xf32>
    %324 = vector.broadcast %323 : vector<1x32xf32> to vector<8x32xf32>
    %325 = arith.addf %322, %324 : vector<8x32xf32>
    %326 = vector.extract_strided_slice %186 {offsets = [3, 0], sizes = [1, 32], strides = [1, 1]} : vector<6x32xf32> to vector<1x32xf32>
    %327 = vector.extract_strided_slice %186 {offsets = [4, 0], sizes = [1, 32], strides = [1, 1]} : vector<6x32xf32> to vector<1x32xf32>
    %cst_96 = arith.constant dense<0.000000e+00> : vector<8xf32>
    %328 = vector.multi_reduction <add>, %325, %cst_96 [1] : vector<8x32xf32> to vector<8xf32>
    %329 = vector.shape_cast %328 : vector<8xf32> to vector<8x1xf32>
    %cst_97 = arith.constant 3.200000e+01 : f32
    %330 = vector.broadcast %cst_97 : f32 to vector<8x1xf32>
    %331 = arith.divf %329, %330 : vector<8x1xf32>
    %332 = arith.mulf %325, %325 : vector<8x32xf32>
    %cst_98 = arith.constant dense<0.000000e+00> : vector<8xf32>
    %333 = vector.multi_reduction <add>, %332, %cst_98 [1] : vector<8x32xf32> to vector<8xf32>
    %334 = vector.shape_cast %333 : vector<8xf32> to vector<8x1xf32>
    %cst_99 = arith.constant 3.200000e+01 : f32
    %335 = vector.broadcast %cst_99 : f32 to vector<8x1xf32>
    %336 = arith.divf %334, %335 : vector<8x1xf32>
    %337 = arith.mulf %331, %331 : vector<8x1xf32>
    %338 = arith.subf %336, %337 : vector<8x1xf32>
    %339 = vector.broadcast %331 : vector<8x1xf32> to vector<8x32xf32>
    %340 = arith.subf %325, %339 : vector<8x32xf32>
    %cst_100 = arith.constant 9.99999974E-6 : f32
    %341 = vector.broadcast %cst_100 : f32 to vector<8x1xf32>
    %342 = arith.addf %338, %341 : vector<8x1xf32>
    %343 = math.rsqrt %342 : vector<8x1xf32>
    %344 = vector.broadcast %343 : vector<8x1xf32> to vector<8x32xf32>
    %345 = arith.mulf %340, %344 : vector<8x32xf32>
    %346 = vector.broadcast %326 : vector<1x32xf32> to vector<8x32xf32>
    %347 = arith.mulf %345, %346 : vector<8x32xf32>
    %348 = vector.broadcast %327 : vector<1x32xf32> to vector<8x32xf32>
    %349 = arith.addf %347, %348 : vector<8x32xf32>
    %350 = arith.truncf %349 : vector<8x32xf32> to vector<8x32xbf16>
    %c1_101 = arith.constant 1 : index
    %c0_102 = arith.constant 0 : index
    %c0_103 = arith.constant 0 : index
    %351 = vector.load %arg5[%c1_101, %c0_102, %c0_103] : memref<4x32x128xbf16, #tpu.memory_space<vmem>>, vector<1x32x128xbf16>
    %352 = vector.shape_cast %351 : vector<1x32x128xbf16> to vector<32x128xbf16>
    %cst_104 = arith.constant dense<0.000000e+00> : vector<8x128xf32>
    %353 = tpu.matmul %350, %352, %cst_104 {dimension_numbers = #tpu.dot_dimension_numbers<[1], [0], [0], [1], [0, 0, 1, 1], [], []>} : vector<8x32xbf16>, vector<32x128xbf16>, vector<8x128xf32> -> vector<8x128xf32>
    %c1_105 = arith.constant 1 : index
    %c0_106 = arith.constant 0 : index
    %c0_107 = arith.constant 0 : index
    %354 = vector.load %arg6[%c1_105, %c0_106, %c0_107] : memref<4x1x128xf32, #tpu.memory_space<vmem>>, vector<1x1x128xf32>
    %355 = vector.shape_cast %354 : vector<1x1x128xf32> to vector<1x128xf32>
    %356 = vector.broadcast %355 : vector<1x128xf32> to vector<8x128xf32>
    %357 = arith.addf %353, %356 : vector<8x128xf32>
    %cst_108 = arith.constant 0.000000e+00 : f32
    %358 = vector.broadcast %cst_108 : f32 to vector<8x128xf32>
    %359 = arith.maximumf %357, %358 : vector<8x128xf32>
    %360 = arith.truncf %359 : vector<8x128xf32> to vector<8x128xbf16>
    %c1_109 = arith.constant 1 : index
    %c0_110 = arith.constant 0 : index
    %c0_111 = arith.constant 0 : index
    %361 = vector.load %arg7[%c1_109, %c0_110, %c0_111] : memref<4x128x32xbf16, #tpu.memory_space<vmem>>, vector<1x128x32xbf16>
    %362 = vector.shape_cast %361 : vector<1x128x32xbf16> to vector<128x32xbf16>
    %cst_112 = arith.constant dense<0.000000e+00> : vector<8x32xf32>
    %363 = tpu.matmul %360, %362, %cst_112 {dimension_numbers = #tpu.dot_dimension_numbers<[1], [0], [0], [1], [0, 0, 1, 1], [], []>} : vector<8x128xbf16>, vector<128x32xbf16>, vector<8x32xf32> -> vector<8x32xf32>
    %364 = vector.extract_strided_slice %186 {offsets = [5, 0], sizes = [1, 32], strides = [1, 1]} : vector<6x32xf32> to vector<1x32xf32>
    %365 = vector.broadcast %364 : vector<1x32xf32> to vector<8x32xf32>
    %366 = arith.addf %363, %365 : vector<8x32xf32>
    %367 = arith.addf %325, %366 : vector<8x32xf32>
    %c2 = arith.constant 2 : index
    %c0_113 = arith.constant 0 : index
    %c0_114 = arith.constant 0 : index
    %368 = vector.load %arg2[%c2, %c0_113, %c0_114] : memref<4x6x32xf32, #tpu.memory_space<vmem>>, vector<1x6x32xf32>
    %369 = vector.shape_cast %368 : vector<1x6x32xf32> to vector<6x32xf32>
    %370 = vector.extract_strided_slice %369 {offsets = [0, 0], sizes = [1, 32], strides = [1, 1]} : vector<6x32xf32> to vector<1x32xf32>
    %371 = vector.extract_strided_slice %369 {offsets = [1, 0], sizes = [1, 32], strides = [1, 1]} : vector<6x32xf32> to vector<1x32xf32>
    %cst_115 = arith.constant dense<0.000000e+00> : vector<8xf32>
    %372 = vector.multi_reduction <add>, %367, %cst_115 [1] : vector<8x32xf32> to vector<8xf32>
    %373 = vector.shape_cast %372 : vector<8xf32> to vector<8x1xf32>
    %cst_116 = arith.constant 3.200000e+01 : f32
    %374 = vector.broadcast %cst_116 : f32 to vector<8x1xf32>
    %375 = arith.divf %373, %374 : vector<8x1xf32>
    %376 = arith.mulf %367, %367 : vector<8x32xf32>
    %cst_117 = arith.constant dense<0.000000e+00> : vector<8xf32>
    %377 = vector.multi_reduction <add>, %376, %cst_117 [1] : vector<8x32xf32> to vector<8xf32>
    %378 = vector.shape_cast %377 : vector<8xf32> to vector<8x1xf32>
    %cst_118 = arith.constant 3.200000e+01 : f32
    %379 = vector.broadcast %cst_118 : f32 to vector<8x1xf32>
    %380 = arith.divf %378, %379 : vector<8x1xf32>
    %381 = arith.mulf %375, %375 : vector<8x1xf32>
    %382 = arith.subf %380, %381 : vector<8x1xf32>
    %383 = vector.broadcast %375 : vector<8x1xf32> to vector<8x32xf32>
    %384 = arith.subf %367, %383 : vector<8x32xf32>
    %cst_119 = arith.constant 9.99999974E-6 : f32
    %385 = vector.broadcast %cst_119 : f32 to vector<8x1xf32>
    %386 = arith.addf %382, %385 : vector<8x1xf32>
    %387 = math.rsqrt %386 : vector<8x1xf32>
    %388 = vector.broadcast %387 : vector<8x1xf32> to vector<8x32xf32>
    %389 = arith.mulf %384, %388 : vector<8x32xf32>
    %390 = vector.broadcast %370 : vector<1x32xf32> to vector<8x32xf32>
    %391 = arith.mulf %389, %390 : vector<8x32xf32>
    %392 = vector.broadcast %371 : vector<1x32xf32> to vector<8x32xf32>
    %393 = arith.addf %391, %392 : vector<8x32xf32>
    %394 = arith.truncf %393 : vector<8x32xf32> to vector<8x32xbf16>
    %c2_120 = arith.constant 2 : index
    %c0_121 = arith.constant 0 : index
    %c0_122 = arith.constant 0 : index
    %395 = vector.load %arg3[%c2_120, %c0_121, %c0_122] : memref<4x32x96xbf16, #tpu.memory_space<vmem>>, vector<1x32x96xbf16>
    %396 = vector.shape_cast %395 : vector<1x32x96xbf16> to vector<32x96xbf16>
    %cst_123 = arith.constant dense<0.000000e+00> : vector<8x96xf32>
    %397 = tpu.matmul %394, %396, %cst_123 {dimension_numbers = #tpu.dot_dimension_numbers<[1], [0], [0], [1], [0, 0, 1, 1], [], []>} : vector<8x32xbf16>, vector<32x96xbf16>, vector<8x96xf32> -> vector<8x96xf32>
    %398 = vector.extract_strided_slice %397 {offsets = [0, 0], sizes = [8, 32], strides = [1, 1]} : vector<8x96xf32> to vector<8x32xf32>
    %399 = arith.truncf %398 : vector<8x32xf32> to vector<8x32xbf16>
    %400 = vector.extract_strided_slice %397 {offsets = [0, 32], sizes = [8, 32], strides = [1, 1]} : vector<8x96xf32> to vector<8x32xf32>
    %401 = tpu.transpose %400, [1, 0] : vector<8x32xf32> -> vector<32x8xf32>
    %402 = arith.truncf %401 : vector<32x8xf32> to vector<32x8xbf16>
    %403 = vector.extract_strided_slice %397 {offsets = [0, 64], sizes = [8, 32], strides = [1, 1]} : vector<8x96xf32> to vector<8x32xf32>
    %404 = arith.truncf %403 : vector<8x32xf32> to vector<8x32xbf16>
    %405 = vector.extract_strided_slice %399 {offsets = [0, 0], sizes = [8, 8], strides = [1, 1]} : vector<8x32xbf16> to vector<8x8xbf16>
    %406 = vector.extract_strided_slice %402 {offsets = [0, 0], sizes = [8, 8], strides = [1, 1]} : vector<32x8xbf16> to vector<8x8xbf16>
    %407 = vector.extract_strided_slice %404 {offsets = [0, 0], sizes = [8, 8], strides = [1, 1]} : vector<8x32xbf16> to vector<8x8xbf16>
    %cst_124 = arith.constant dense<0.000000e+00> : vector<8x8xf32>
    %408 = tpu.matmul %405, %406, %cst_124 {dimension_numbers = #tpu.dot_dimension_numbers<[1], [0], [0], [1], [0, 0, 1, 1], [], []>} : vector<8x8xbf16>, vector<8x8xbf16>, vector<8x8xf32> -> vector<8x8xf32>
    %409 = tpu.iota {dimensions = array<i32: 0>} : vector<8x8xi32>
    %c0_i32_125 = arith.constant 0 : i32
    %410 = vector.broadcast %c0_i32_125 : i32 to vector<8x8xi32>
    %411 = arith.addi %409, %410 : vector<8x8xi32>
    %412 = tpu.iota {dimensions = array<i32: 1>} : vector<8x8xi32>
    %413 = arith.cmpi sge, %411, %412 : vector<8x8xi32>
    %cst_126 = arith.constant -1.000000e+30 : f32
    %414 = vector.broadcast %cst_126 : f32 to vector<8x8xf32>
    %415 = arith.select %413, %408, %414 : vector<8x8xi1>, vector<8x8xf32>
    %cst_127 = arith.constant dense<0xFF800000> : vector<8xf32>
    %416 = vector.multi_reduction <maximumf>, %415, %cst_127 [1] : vector<8x8xf32> to vector<8xf32>
    %417 = vector.shape_cast %416 : vector<8xf32> to vector<8x1xf32>
    %418 = vector.broadcast %417 : vector<8x1xf32> to vector<8x8xf32>
    %419 = arith.subf %415, %418 : vector<8x8xf32>
    %420 = math.exp %419 : vector<8x8xf32>
    %cst_128 = arith.constant dense<0.000000e+00> : vector<8xf32>
    %421 = vector.multi_reduction <add>, %420, %cst_128 [1] : vector<8x8xf32> to vector<8xf32>
    %422 = vector.shape_cast %421 : vector<8xf32> to vector<8x1xf32>
    %423 = tpu.reciprocal %422 {approx = true} : vector<8x1xf32> -> vector<8x1xf32>
    %424 = vector.broadcast %423 : vector<8x1xf32> to vector<8x8xf32>
    %425 = arith.mulf %420, %424 : vector<8x8xf32>
    %426 = arith.truncf %425 : vector<8x8xf32> to vector<8x8xbf16>
    %cst_129 = arith.constant dense<0.000000e+00> : vector<8x8xf32>
    %427 = tpu.matmul %426, %407, %cst_129 {dimension_numbers = #tpu.dot_dimension_numbers<[1], [0], [0], [1], [0, 0, 1, 1], [], []>} : vector<8x8xbf16>, vector<8x8xbf16>, vector<8x8xf32> -> vector<8x8xf32>
    %428 = arith.truncf %427 : vector<8x8xf32> to vector<8x8xbf16>
    %429 = vector.extract_strided_slice %399 {offsets = [0, 8], sizes = [8, 8], strides = [1, 1]} : vector<8x32xbf16> to vector<8x8xbf16>
    %430 = vector.extract_strided_slice %402 {offsets = [8, 0], sizes = [8, 8], strides = [1, 1]} : vector<32x8xbf16> to vector<8x8xbf16>
    %431 = vector.extract_strided_slice %404 {offsets = [0, 8], sizes = [8, 8], strides = [1, 1]} : vector<8x32xbf16> to vector<8x8xbf16>
    %cst_130 = arith.constant dense<0.000000e+00> : vector<8x8xf32>
    %432 = tpu.matmul %429, %430, %cst_130 {dimension_numbers = #tpu.dot_dimension_numbers<[1], [0], [0], [1], [0, 0, 1, 1], [], []>} : vector<8x8xbf16>, vector<8x8xbf16>, vector<8x8xf32> -> vector<8x8xf32>
    %433 = tpu.iota {dimensions = array<i32: 0>} : vector<8x8xi32>
    %c0_i32_131 = arith.constant 0 : i32
    %434 = vector.broadcast %c0_i32_131 : i32 to vector<8x8xi32>
    %435 = arith.addi %433, %434 : vector<8x8xi32>
    %436 = tpu.iota {dimensions = array<i32: 1>} : vector<8x8xi32>
    %437 = arith.cmpi sge, %435, %436 : vector<8x8xi32>
    %cst_132 = arith.constant -1.000000e+30 : f32
    %438 = vector.broadcast %cst_132 : f32 to vector<8x8xf32>
    %439 = arith.select %437, %432, %438 : vector<8x8xi1>, vector<8x8xf32>
    %cst_133 = arith.constant dense<0xFF800000> : vector<8xf32>
    %440 = vector.multi_reduction <maximumf>, %439, %cst_133 [1] : vector<8x8xf32> to vector<8xf32>
    %441 = vector.shape_cast %440 : vector<8xf32> to vector<8x1xf32>
    %442 = vector.broadcast %441 : vector<8x1xf32> to vector<8x8xf32>
    %443 = arith.subf %439, %442 : vector<8x8xf32>
    %444 = math.exp %443 : vector<8x8xf32>
    %cst_134 = arith.constant dense<0.000000e+00> : vector<8xf32>
    %445 = vector.multi_reduction <add>, %444, %cst_134 [1] : vector<8x8xf32> to vector<8xf32>
    %446 = vector.shape_cast %445 : vector<8xf32> to vector<8x1xf32>
    %447 = tpu.reciprocal %446 {approx = true} : vector<8x1xf32> -> vector<8x1xf32>
    %448 = vector.broadcast %447 : vector<8x1xf32> to vector<8x8xf32>
    %449 = arith.mulf %444, %448 : vector<8x8xf32>
    %450 = arith.truncf %449 : vector<8x8xf32> to vector<8x8xbf16>
    %cst_135 = arith.constant dense<0.000000e+00> : vector<8x8xf32>
    %451 = tpu.matmul %450, %431, %cst_135 {dimension_numbers = #tpu.dot_dimension_numbers<[1], [0], [0], [1], [0, 0, 1, 1], [], []>} : vector<8x8xbf16>, vector<8x8xbf16>, vector<8x8xf32> -> vector<8x8xf32>
    %452 = arith.truncf %451 : vector<8x8xf32> to vector<8x8xbf16>
    %453 = vector.extract_strided_slice %399 {offsets = [0, 16], sizes = [8, 8], strides = [1, 1]} : vector<8x32xbf16> to vector<8x8xbf16>
    %454 = vector.extract_strided_slice %402 {offsets = [16, 0], sizes = [8, 8], strides = [1, 1]} : vector<32x8xbf16> to vector<8x8xbf16>
    %455 = vector.extract_strided_slice %404 {offsets = [0, 16], sizes = [8, 8], strides = [1, 1]} : vector<8x32xbf16> to vector<8x8xbf16>
    %cst_136 = arith.constant dense<0.000000e+00> : vector<8x8xf32>
    %456 = tpu.matmul %453, %454, %cst_136 {dimension_numbers = #tpu.dot_dimension_numbers<[1], [0], [0], [1], [0, 0, 1, 1], [], []>} : vector<8x8xbf16>, vector<8x8xbf16>, vector<8x8xf32> -> vector<8x8xf32>
    %457 = tpu.iota {dimensions = array<i32: 0>} : vector<8x8xi32>
    %c0_i32_137 = arith.constant 0 : i32
    %458 = vector.broadcast %c0_i32_137 : i32 to vector<8x8xi32>
    %459 = arith.addi %457, %458 : vector<8x8xi32>
    %460 = tpu.iota {dimensions = array<i32: 1>} : vector<8x8xi32>
    %461 = arith.cmpi sge, %459, %460 : vector<8x8xi32>
    %cst_138 = arith.constant -1.000000e+30 : f32
    %462 = vector.broadcast %cst_138 : f32 to vector<8x8xf32>
    %463 = arith.select %461, %456, %462 : vector<8x8xi1>, vector<8x8xf32>
    %cst_139 = arith.constant dense<0xFF800000> : vector<8xf32>
    %464 = vector.multi_reduction <maximumf>, %463, %cst_139 [1] : vector<8x8xf32> to vector<8xf32>
    %465 = vector.shape_cast %464 : vector<8xf32> to vector<8x1xf32>
    %466 = vector.broadcast %465 : vector<8x1xf32> to vector<8x8xf32>
    %467 = arith.subf %463, %466 : vector<8x8xf32>
    %468 = math.exp %467 : vector<8x8xf32>
    %cst_140 = arith.constant dense<0.000000e+00> : vector<8xf32>
    %469 = vector.multi_reduction <add>, %468, %cst_140 [1] : vector<8x8xf32> to vector<8xf32>
    %470 = vector.shape_cast %469 : vector<8xf32> to vector<8x1xf32>
    %471 = tpu.reciprocal %470 {approx = true} : vector<8x1xf32> -> vector<8x1xf32>
    %472 = vector.broadcast %471 : vector<8x1xf32> to vector<8x8xf32>
    %473 = arith.mulf %468, %472 : vector<8x8xf32>
    %474 = arith.truncf %473 : vector<8x8xf32> to vector<8x8xbf16>
    %cst_141 = arith.constant dense<0.000000e+00> : vector<8x8xf32>
    %475 = tpu.matmul %474, %455, %cst_141 {dimension_numbers = #tpu.dot_dimension_numbers<[1], [0], [0], [1], [0, 0, 1, 1], [], []>} : vector<8x8xbf16>, vector<8x8xbf16>, vector<8x8xf32> -> vector<8x8xf32>
    %476 = arith.truncf %475 : vector<8x8xf32> to vector<8x8xbf16>
    %477 = vector.extract_strided_slice %399 {offsets = [0, 24], sizes = [8, 8], strides = [1, 1]} : vector<8x32xbf16> to vector<8x8xbf16>
    %478 = vector.extract_strided_slice %402 {offsets = [24, 0], sizes = [8, 8], strides = [1, 1]} : vector<32x8xbf16> to vector<8x8xbf16>
    %479 = vector.extract_strided_slice %404 {offsets = [0, 24], sizes = [8, 8], strides = [1, 1]} : vector<8x32xbf16> to vector<8x8xbf16>
    %cst_142 = arith.constant dense<0.000000e+00> : vector<8x8xf32>
    %480 = tpu.matmul %477, %478, %cst_142 {dimension_numbers = #tpu.dot_dimension_numbers<[1], [0], [0], [1], [0, 0, 1, 1], [], []>} : vector<8x8xbf16>, vector<8x8xbf16>, vector<8x8xf32> -> vector<8x8xf32>
    %481 = tpu.iota {dimensions = array<i32: 0>} : vector<8x8xi32>
    %c0_i32_143 = arith.constant 0 : i32
    %482 = vector.broadcast %c0_i32_143 : i32 to vector<8x8xi32>
    %483 = arith.addi %481, %482 : vector<8x8xi32>
    %484 = tpu.iota {dimensions = array<i32: 1>} : vector<8x8xi32>
    %485 = arith.cmpi sge, %483, %484 : vector<8x8xi32>
    %cst_144 = arith.constant -1.000000e+30 : f32
    %486 = vector.broadcast %cst_144 : f32 to vector<8x8xf32>
    %487 = arith.select %485, %480, %486 : vector<8x8xi1>, vector<8x8xf32>
    %cst_145 = arith.constant dense<0xFF800000> : vector<8xf32>
    %488 = vector.multi_reduction <maximumf>, %487, %cst_145 [1] : vector<8x8xf32> to vector<8xf32>
    %489 = vector.shape_cast %488 : vector<8xf32> to vector<8x1xf32>
    %490 = vector.broadcast %489 : vector<8x1xf32> to vector<8x8xf32>
    %491 = arith.subf %487, %490 : vector<8x8xf32>
    %492 = math.exp %491 : vector<8x8xf32>
    %cst_146 = arith.constant dense<0.000000e+00> : vector<8xf32>
    %493 = vector.multi_reduction <add>, %492, %cst_146 [1] : vector<8x8xf32> to vector<8xf32>
    %494 = vector.shape_cast %493 : vector<8xf32> to vector<8x1xf32>
    %495 = tpu.reciprocal %494 {approx = true} : vector<8x1xf32> -> vector<8x1xf32>
    %496 = vector.broadcast %495 : vector<8x1xf32> to vector<8x8xf32>
    %497 = arith.mulf %492, %496 : vector<8x8xf32>
    %498 = arith.truncf %497 : vector<8x8xf32> to vector<8x8xbf16>
    %cst_147 = arith.constant dense<0.000000e+00> : vector<8x8xf32>
    %499 = tpu.matmul %498, %479, %cst_147 {dimension_numbers = #tpu.dot_dimension_numbers<[1], [0], [0], [1], [0, 0, 1, 1], [], []>} : vector<8x8xbf16>, vector<8x8xbf16>, vector<8x8xf32> -> vector<8x8xf32>
    %500 = arith.truncf %499 : vector<8x8xf32> to vector<8x8xbf16>
    %501 = tpu.concatenate %428, %452, %476, %500 in 1 : vector<8x8xbf16>, vector<8x8xbf16>, vector<8x8xbf16>, vector<8x8xbf16> -> vector<8x32xbf16>
    %c2_148 = arith.constant 2 : index
    %c0_149 = arith.constant 0 : index
    %c0_150 = arith.constant 0 : index
    %502 = vector.load %arg4[%c2_148, %c0_149, %c0_150] : memref<4x32x32xbf16, #tpu.memory_space<vmem>>, vector<1x32x32xbf16>
    %503 = vector.shape_cast %502 : vector<1x32x32xbf16> to vector<32x32xbf16>
    %cst_151 = arith.constant dense<0.000000e+00> : vector<8x32xf32>
    %504 = tpu.matmul %501, %503, %cst_151 {dimension_numbers = #tpu.dot_dimension_numbers<[1], [0], [0], [1], [0, 0, 1, 1], [], []>} : vector<8x32xbf16>, vector<32x32xbf16>, vector<8x32xf32> -> vector<8x32xf32>
    %505 = arith.addf %367, %504 : vector<8x32xf32>
    %506 = vector.extract_strided_slice %369 {offsets = [2, 0], sizes = [1, 32], strides = [1, 1]} : vector<6x32xf32> to vector<1x32xf32>
    %507 = vector.broadcast %506 : vector<1x32xf32> to vector<8x32xf32>
    %508 = arith.addf %505, %507 : vector<8x32xf32>
    %509 = vector.extract_strided_slice %369 {offsets = [3, 0], sizes = [1, 32], strides = [1, 1]} : vector<6x32xf32> to vector<1x32xf32>
    %510 = vector.extract_strided_slice %369 {offsets = [4, 0], sizes = [1, 32], strides = [1, 1]} : vector<6x32xf32> to vector<1x32xf32>
    %cst_152 = arith.constant dense<0.000000e+00> : vector<8xf32>
    %511 = vector.multi_reduction <add>, %508, %cst_152 [1] : vector<8x32xf32> to vector<8xf32>
    %512 = vector.shape_cast %511 : vector<8xf32> to vector<8x1xf32>
    %cst_153 = arith.constant 3.200000e+01 : f32
    %513 = vector.broadcast %cst_153 : f32 to vector<8x1xf32>
    %514 = arith.divf %512, %513 : vector<8x1xf32>
    %515 = arith.mulf %508, %508 : vector<8x32xf32>
    %cst_154 = arith.constant dense<0.000000e+00> : vector<8xf32>
    %516 = vector.multi_reduction <add>, %515, %cst_154 [1] : vector<8x32xf32> to vector<8xf32>
    %517 = vector.shape_cast %516 : vector<8xf32> to vector<8x1xf32>
    %cst_155 = arith.constant 3.200000e+01 : f32
    %518 = vector.broadcast %cst_155 : f32 to vector<8x1xf32>
    %519 = arith.divf %517, %518 : vector<8x1xf32>
    %520 = arith.mulf %514, %514 : vector<8x1xf32>
    %521 = arith.subf %519, %520 : vector<8x1xf32>
    %522 = vector.broadcast %514 : vector<8x1xf32> to vector<8x32xf32>
    %523 = arith.subf %508, %522 : vector<8x32xf32>
    %cst_156 = arith.constant 9.99999974E-6 : f32
    %524 = vector.broadcast %cst_156 : f32 to vector<8x1xf32>
    %525 = arith.addf %521, %524 : vector<8x1xf32>
    %526 = math.rsqrt %525 : vector<8x1xf32>
    %527 = vector.broadcast %526 : vector<8x1xf32> to vector<8x32xf32>
    %528 = arith.mulf %523, %527 : vector<8x32xf32>
    %529 = vector.broadcast %509 : vector<1x32xf32> to vector<8x32xf32>
    %530 = arith.mulf %528, %529 : vector<8x32xf32>
    %531 = vector.broadcast %510 : vector<1x32xf32> to vector<8x32xf32>
    %532 = arith.addf %530, %531 : vector<8x32xf32>
    %533 = arith.truncf %532 : vector<8x32xf32> to vector<8x32xbf16>
    %c2_157 = arith.constant 2 : index
    %c0_158 = arith.constant 0 : index
    %c0_159 = arith.constant 0 : index
    %534 = vector.load %arg5[%c2_157, %c0_158, %c0_159] : memref<4x32x128xbf16, #tpu.memory_space<vmem>>, vector<1x32x128xbf16>
    %535 = vector.shape_cast %534 : vector<1x32x128xbf16> to vector<32x128xbf16>
    %cst_160 = arith.constant dense<0.000000e+00> : vector<8x128xf32>
    %536 = tpu.matmul %533, %535, %cst_160 {dimension_numbers = #tpu.dot_dimension_numbers<[1], [0], [0], [1], [0, 0, 1, 1], [], []>} : vector<8x32xbf16>, vector<32x128xbf16>, vector<8x128xf32> -> vector<8x128xf32>
    %c2_161 = arith.constant 2 : index
    %c0_162 = arith.constant 0 : index
    %c0_163 = arith.constant 0 : index
    %537 = vector.load %arg6[%c2_161, %c0_162, %c0_163] : memref<4x1x128xf32, #tpu.memory_space<vmem>>, vector<1x1x128xf32>
    %538 = vector.shape_cast %537 : vector<1x1x128xf32> to vector<1x128xf32>
    %539 = vector.broadcast %538 : vector<1x128xf32> to vector<8x128xf32>
    %540 = arith.addf %536, %539 : vector<8x128xf32>
    %cst_164 = arith.constant 0.000000e+00 : f32
    %541 = vector.broadcast %cst_164 : f32 to vector<8x128xf32>
    %542 = arith.maximumf %540, %541 : vector<8x128xf32>
    %543 = arith.truncf %542 : vector<8x128xf32> to vector<8x128xbf16>
    %c2_165 = arith.constant 2 : index
    %c0_166 = arith.constant 0 : index
    %c0_167 = arith.constant 0 : index
    %544 = vector.load %arg7[%c2_165, %c0_166, %c0_167] : memref<4x128x32xbf16, #tpu.memory_space<vmem>>, vector<1x128x32xbf16>
    %545 = vector.shape_cast %544 : vector<1x128x32xbf16> to vector<128x32xbf16>
    %cst_168 = arith.constant dense<0.000000e+00> : vector<8x32xf32>
    %546 = tpu.matmul %543, %545, %cst_168 {dimension_numbers = #tpu.dot_dimension_numbers<[1], [0], [0], [1], [0, 0, 1, 1], [], []>} : vector<8x128xbf16>, vector<128x32xbf16>, vector<8x32xf32> -> vector<8x32xf32>
    %547 = vector.extract_strided_slice %369 {offsets = [5, 0], sizes = [1, 32], strides = [1, 1]} : vector<6x32xf32> to vector<1x32xf32>
    %548 = vector.broadcast %547 : vector<1x32xf32> to vector<8x32xf32>
    %549 = arith.addf %546, %548 : vector<8x32xf32>
    %550 = arith.addf %508, %549 : vector<8x32xf32>
    %c3 = arith.constant 3 : index
    %c0_169 = arith.constant 0 : index
    %c0_170 = arith.constant 0 : index
    %551 = vector.load %arg2[%c3, %c0_169, %c0_170] : memref<4x6x32xf32, #tpu.memory_space<vmem>>, vector<1x6x32xf32>
    %552 = vector.shape_cast %551 : vector<1x6x32xf32> to vector<6x32xf32>
    %553 = vector.extract_strided_slice %552 {offsets = [0, 0], sizes = [1, 32], strides = [1, 1]} : vector<6x32xf32> to vector<1x32xf32>
    %554 = vector.extract_strided_slice %552 {offsets = [1, 0], sizes = [1, 32], strides = [1, 1]} : vector<6x32xf32> to vector<1x32xf32>
    %cst_171 = arith.constant dense<0.000000e+00> : vector<8xf32>
    %555 = vector.multi_reduction <add>, %550, %cst_171 [1] : vector<8x32xf32> to vector<8xf32>
    %556 = vector.shape_cast %555 : vector<8xf32> to vector<8x1xf32>
    %cst_172 = arith.constant 3.200000e+01 : f32
    %557 = vector.broadcast %cst_172 : f32 to vector<8x1xf32>
    %558 = arith.divf %556, %557 : vector<8x1xf32>
    %559 = arith.mulf %550, %550 : vector<8x32xf32>
    %cst_173 = arith.constant dense<0.000000e+00> : vector<8xf32>
    %560 = vector.multi_reduction <add>, %559, %cst_173 [1] : vector<8x32xf32> to vector<8xf32>
    %561 = vector.shape_cast %560 : vector<8xf32> to vector<8x1xf32>
    %cst_174 = arith.constant 3.200000e+01 : f32
    %562 = vector.broadcast %cst_174 : f32 to vector<8x1xf32>
    %563 = arith.divf %561, %562 : vector<8x1xf32>
    %564 = arith.mulf %558, %558 : vector<8x1xf32>
    %565 = arith.subf %563, %564 : vector<8x1xf32>
    %566 = vector.broadcast %558 : vector<8x1xf32> to vector<8x32xf32>
    %567 = arith.subf %550, %566 : vector<8x32xf32>
    %cst_175 = arith.constant 9.99999974E-6 : f32
    %568 = vector.broadcast %cst_175 : f32 to vector<8x1xf32>
    %569 = arith.addf %565, %568 : vector<8x1xf32>
    %570 = math.rsqrt %569 : vector<8x1xf32>
    %571 = vector.broadcast %570 : vector<8x1xf32> to vector<8x32xf32>
    %572 = arith.mulf %567, %571 : vector<8x32xf32>
    %573 = vector.broadcast %553 : vector<1x32xf32> to vector<8x32xf32>
    %574 = arith.mulf %572, %573 : vector<8x32xf32>
    %575 = vector.broadcast %554 : vector<1x32xf32> to vector<8x32xf32>
    %576 = arith.addf %574, %575 : vector<8x32xf32>
    %577 = arith.truncf %576 : vector<8x32xf32> to vector<8x32xbf16>
    %c3_176 = arith.constant 3 : index
    %c0_177 = arith.constant 0 : index
    %c0_178 = arith.constant 0 : index
    %578 = vector.load %arg3[%c3_176, %c0_177, %c0_178] : memref<4x32x96xbf16, #tpu.memory_space<vmem>>, vector<1x32x96xbf16>
    %579 = vector.shape_cast %578 : vector<1x32x96xbf16> to vector<32x96xbf16>
    %cst_179 = arith.constant dense<0.000000e+00> : vector<8x96xf32>
    %580 = tpu.matmul %577, %579, %cst_179 {dimension_numbers = #tpu.dot_dimension_numbers<[1], [0], [0], [1], [0, 0, 1, 1], [], []>} : vector<8x32xbf16>, vector<32x96xbf16>, vector<8x96xf32> -> vector<8x96xf32>
    %581 = vector.extract_strided_slice %580 {offsets = [0, 0], sizes = [8, 32], strides = [1, 1]} : vector<8x96xf32> to vector<8x32xf32>
    %582 = arith.truncf %581 : vector<8x32xf32> to vector<8x32xbf16>
    %583 = vector.extract_strided_slice %580 {offsets = [0, 32], sizes = [8, 32], strides = [1, 1]} : vector<8x96xf32> to vector<8x32xf32>
    %584 = tpu.transpose %583, [1, 0] : vector<8x32xf32> -> vector<32x8xf32>
    %585 = arith.truncf %584 : vector<32x8xf32> to vector<32x8xbf16>
    %586 = vector.extract_strided_slice %580 {offsets = [0, 64], sizes = [8, 32], strides = [1, 1]} : vector<8x96xf32> to vector<8x32xf32>
    %587 = arith.truncf %586 : vector<8x32xf32> to vector<8x32xbf16>
    %588 = vector.extract_strided_slice %582 {offsets = [0, 0], sizes = [8, 8], strides = [1, 1]} : vector<8x32xbf16> to vector<8x8xbf16>
    %589 = vector.extract_strided_slice %585 {offsets = [0, 0], sizes = [8, 8], strides = [1, 1]} : vector<32x8xbf16> to vector<8x8xbf16>
    %590 = vector.extract_strided_slice %587 {offsets = [0, 0], sizes = [8, 8], strides = [1, 1]} : vector<8x32xbf16> to vector<8x8xbf16>
    %cst_180 = arith.constant dense<0.000000e+00> : vector<8x8xf32>
    %591 = tpu.matmul %588, %589, %cst_180 {dimension_numbers = #tpu.dot_dimension_numbers<[1], [0], [0], [1], [0, 0, 1, 1], [], []>} : vector<8x8xbf16>, vector<8x8xbf16>, vector<8x8xf32> -> vector<8x8xf32>
    %592 = tpu.iota {dimensions = array<i32: 0>} : vector<8x8xi32>
    %c0_i32_181 = arith.constant 0 : i32
    %593 = vector.broadcast %c0_i32_181 : i32 to vector<8x8xi32>
    %594 = arith.addi %592, %593 : vector<8x8xi32>
    %595 = tpu.iota {dimensions = array<i32: 1>} : vector<8x8xi32>
    %596 = arith.cmpi sge, %594, %595 : vector<8x8xi32>
    %cst_182 = arith.constant -1.000000e+30 : f32
    %597 = vector.broadcast %cst_182 : f32 to vector<8x8xf32>
    %598 = arith.select %596, %591, %597 : vector<8x8xi1>, vector<8x8xf32>
    %cst_183 = arith.constant dense<0xFF800000> : vector<8xf32>
    %599 = vector.multi_reduction <maximumf>, %598, %cst_183 [1] : vector<8x8xf32> to vector<8xf32>
    %600 = vector.shape_cast %599 : vector<8xf32> to vector<8x1xf32>
    %601 = vector.broadcast %600 : vector<8x1xf32> to vector<8x8xf32>
    %602 = arith.subf %598, %601 : vector<8x8xf32>
    %603 = math.exp %602 : vector<8x8xf32>
    %cst_184 = arith.constant dense<0.000000e+00> : vector<8xf32>
    %604 = vector.multi_reduction <add>, %603, %cst_184 [1] : vector<8x8xf32> to vector<8xf32>
    %605 = vector.shape_cast %604 : vector<8xf32> to vector<8x1xf32>
    %606 = tpu.reciprocal %605 {approx = true} : vector<8x1xf32> -> vector<8x1xf32>
    %607 = vector.broadcast %606 : vector<8x1xf32> to vector<8x8xf32>
    %608 = arith.mulf %603, %607 : vector<8x8xf32>
    %609 = arith.truncf %608 : vector<8x8xf32> to vector<8x8xbf16>
    %cst_185 = arith.constant dense<0.000000e+00> : vector<8x8xf32>
    %610 = tpu.matmul %609, %590, %cst_185 {dimension_numbers = #tpu.dot_dimension_numbers<[1], [0], [0], [1], [0, 0, 1, 1], [], []>} : vector<8x8xbf16>, vector<8x8xbf16>, vector<8x8xf32> -> vector<8x8xf32>
    %611 = arith.truncf %610 : vector<8x8xf32> to vector<8x8xbf16>
    %612 = vector.extract_strided_slice %582 {offsets = [0, 8], sizes = [8, 8], strides = [1, 1]} : vector<8x32xbf16> to vector<8x8xbf16>
    %613 = vector.extract_strided_slice %585 {offsets = [8, 0], sizes = [8, 8], strides = [1, 1]} : vector<32x8xbf16> to vector<8x8xbf16>
    %614 = vector.extract_strided_slice %587 {offsets = [0, 8], sizes = [8, 8], strides = [1, 1]} : vector<8x32xbf16> to vector<8x8xbf16>
    %cst_186 = arith.constant dense<0.000000e+00> : vector<8x8xf32>
    %615 = tpu.matmul %612, %613, %cst_186 {dimension_numbers = #tpu.dot_dimension_numbers<[1], [0], [0], [1], [0, 0, 1, 1], [], []>} : vector<8x8xbf16>, vector<8x8xbf16>, vector<8x8xf32> -> vector<8x8xf32>
    %616 = tpu.iota {dimensions = array<i32: 0>} : vector<8x8xi32>
    %c0_i32_187 = arith.constant 0 : i32
    %617 = vector.broadcast %c0_i32_187 : i32 to vector<8x8xi32>
    %618 = arith.addi %616, %617 : vector<8x8xi32>
    %619 = tpu.iota {dimensions = array<i32: 1>} : vector<8x8xi32>
    %620 = arith.cmpi sge, %618, %619 : vector<8x8xi32>
    %cst_188 = arith.constant -1.000000e+30 : f32
    %621 = vector.broadcast %cst_188 : f32 to vector<8x8xf32>
    %622 = arith.select %620, %615, %621 : vector<8x8xi1>, vector<8x8xf32>
    %cst_189 = arith.constant dense<0xFF800000> : vector<8xf32>
    %623 = vector.multi_reduction <maximumf>, %622, %cst_189 [1] : vector<8x8xf32> to vector<8xf32>
    %624 = vector.shape_cast %623 : vector<8xf32> to vector<8x1xf32>
    %625 = vector.broadcast %624 : vector<8x1xf32> to vector<8x8xf32>
    %626 = arith.subf %622, %625 : vector<8x8xf32>
    %627 = math.exp %626 : vector<8x8xf32>
    %cst_190 = arith.constant dense<0.000000e+00> : vector<8xf32>
    %628 = vector.multi_reduction <add>, %627, %cst_190 [1] : vector<8x8xf32> to vector<8xf32>
    %629 = vector.shape_cast %628 : vector<8xf32> to vector<8x1xf32>
    %630 = tpu.reciprocal %629 {approx = true} : vector<8x1xf32> -> vector<8x1xf32>
    %631 = vector.broadcast %630 : vector<8x1xf32> to vector<8x8xf32>
    %632 = arith.mulf %627, %631 : vector<8x8xf32>
    %633 = arith.truncf %632 : vector<8x8xf32> to vector<8x8xbf16>
    %cst_191 = arith.constant dense<0.000000e+00> : vector<8x8xf32>
    %634 = tpu.matmul %633, %614, %cst_191 {dimension_numbers = #tpu.dot_dimension_numbers<[1], [0], [0], [1], [0, 0, 1, 1], [], []>} : vector<8x8xbf16>, vector<8x8xbf16>, vector<8x8xf32> -> vector<8x8xf32>
    %635 = arith.truncf %634 : vector<8x8xf32> to vector<8x8xbf16>
    %636 = vector.extract_strided_slice %582 {offsets = [0, 16], sizes = [8, 8], strides = [1, 1]} : vector<8x32xbf16> to vector<8x8xbf16>
    %637 = vector.extract_strided_slice %585 {offsets = [16, 0], sizes = [8, 8], strides = [1, 1]} : vector<32x8xbf16> to vector<8x8xbf16>
    %638 = vector.extract_strided_slice %587 {offsets = [0, 16], sizes = [8, 8], strides = [1, 1]} : vector<8x32xbf16> to vector<8x8xbf16>
    %cst_192 = arith.constant dense<0.000000e+00> : vector<8x8xf32>
    %639 = tpu.matmul %636, %637, %cst_192 {dimension_numbers = #tpu.dot_dimension_numbers<[1], [0], [0], [1], [0, 0, 1, 1], [], []>} : vector<8x8xbf16>, vector<8x8xbf16>, vector<8x8xf32> -> vector<8x8xf32>
    %640 = tpu.iota {dimensions = array<i32: 0>} : vector<8x8xi32>
    %c0_i32_193 = arith.constant 0 : i32
    %641 = vector.broadcast %c0_i32_193 : i32 to vector<8x8xi32>
    %642 = arith.addi %640, %641 : vector<8x8xi32>
    %643 = tpu.iota {dimensions = array<i32: 1>} : vector<8x8xi32>
    %644 = arith.cmpi sge, %642, %643 : vector<8x8xi32>
    %cst_194 = arith.constant -1.000000e+30 : f32
    %645 = vector.broadcast %cst_194 : f32 to vector<8x8xf32>
    %646 = arith.select %644, %639, %645 : vector<8x8xi1>, vector<8x8xf32>
    %cst_195 = arith.constant dense<0xFF800000> : vector<8xf32>
    %647 = vector.multi_reduction <maximumf>, %646, %cst_195 [1] : vector<8x8xf32> to vector<8xf32>
    %648 = vector.shape_cast %647 : vector<8xf32> to vector<8x1xf32>
    %649 = vector.broadcast %648 : vector<8x1xf32> to vector<8x8xf32>
    %650 = arith.subf %646, %649 : vector<8x8xf32>
    %651 = math.exp %650 : vector<8x8xf32>
    %cst_196 = arith.constant dense<0.000000e+00> : vector<8xf32>
    %652 = vector.multi_reduction <add>, %651, %cst_196 [1] : vector<8x8xf32> to vector<8xf32>
    %653 = vector.shape_cast %652 : vector<8xf32> to vector<8x1xf32>
    %654 = tpu.reciprocal %653 {approx = true} : vector<8x1xf32> -> vector<8x1xf32>
    %655 = vector.broadcast %654 : vector<8x1xf32> to vector<8x8xf32>
    %656 = arith.mulf %651, %655 : vector<8x8xf32>
    %657 = arith.truncf %656 : vector<8x8xf32> to vector<8x8xbf16>
    %cst_197 = arith.constant dense<0.000000e+00> : vector<8x8xf32>
    %658 = tpu.matmul %657, %638, %cst_197 {dimension_numbers = #tpu.dot_dimension_numbers<[1], [0], [0], [1], [0, 0, 1, 1], [], []>} : vector<8x8xbf16>, vector<8x8xbf16>, vector<8x8xf32> -> vector<8x8xf32>
    %659 = arith.truncf %658 : vector<8x8xf32> to vector<8x8xbf16>
    %660 = vector.extract_strided_slice %582 {offsets = [0, 24], sizes = [8, 8], strides = [1, 1]} : vector<8x32xbf16> to vector<8x8xbf16>
    %661 = vector.extract_strided_slice %585 {offsets = [24, 0], sizes = [8, 8], strides = [1, 1]} : vector<32x8xbf16> to vector<8x8xbf16>
    %662 = vector.extract_strided_slice %587 {offsets = [0, 24], sizes = [8, 8], strides = [1, 1]} : vector<8x32xbf16> to vector<8x8xbf16>
    %cst_198 = arith.constant dense<0.000000e+00> : vector<8x8xf32>
    %663 = tpu.matmul %660, %661, %cst_198 {dimension_numbers = #tpu.dot_dimension_numbers<[1], [0], [0], [1], [0, 0, 1, 1], [], []>} : vector<8x8xbf16>, vector<8x8xbf16>, vector<8x8xf32> -> vector<8x8xf32>
    %664 = tpu.iota {dimensions = array<i32: 0>} : vector<8x8xi32>
    %c0_i32_199 = arith.constant 0 : i32
    %665 = vector.broadcast %c0_i32_199 : i32 to vector<8x8xi32>
    %666 = arith.addi %664, %665 : vector<8x8xi32>
    %667 = tpu.iota {dimensions = array<i32: 1>} : vector<8x8xi32>
    %668 = arith.cmpi sge, %666, %667 : vector<8x8xi32>
    %cst_200 = arith.constant -1.000000e+30 : f32
    %669 = vector.broadcast %cst_200 : f32 to vector<8x8xf32>
    %670 = arith.select %668, %663, %669 : vector<8x8xi1>, vector<8x8xf32>
    %cst_201 = arith.constant dense<0xFF800000> : vector<8xf32>
    %671 = vector.multi_reduction <maximumf>, %670, %cst_201 [1] : vector<8x8xf32> to vector<8xf32>
    %672 = vector.shape_cast %671 : vector<8xf32> to vector<8x1xf32>
    %673 = vector.broadcast %672 : vector<8x1xf32> to vector<8x8xf32>
    %674 = arith.subf %670, %673 : vector<8x8xf32>
    %675 = math.exp %674 : vector<8x8xf32>
    %cst_202 = arith.constant dense<0.000000e+00> : vector<8xf32>
    %676 = vector.multi_reduction <add>, %675, %cst_202 [1] : vector<8x8xf32> to vector<8xf32>
    %677 = vector.shape_cast %676 : vector<8xf32> to vector<8x1xf32>
    %678 = tpu.reciprocal %677 {approx = true} : vector<8x1xf32> -> vector<8x1xf32>
    %679 = vector.broadcast %678 : vector<8x1xf32> to vector<8x8xf32>
    %680 = arith.mulf %675, %679 : vector<8x8xf32>
    %681 = arith.truncf %680 : vector<8x8xf32> to vector<8x8xbf16>
    %cst_203 = arith.constant dense<0.000000e+00> : vector<8x8xf32>
    %682 = tpu.matmul %681, %662, %cst_203 {dimension_numbers = #tpu.dot_dimension_numbers<[1], [0], [0], [1], [0, 0, 1, 1], [], []>} : vector<8x8xbf16>, vector<8x8xbf16>, vector<8x8xf32> -> vector<8x8xf32>
    %683 = arith.truncf %682 : vector<8x8xf32> to vector<8x8xbf16>
    %684 = tpu.concatenate %611, %635, %659, %683 in 1 : vector<8x8xbf16>, vector<8x8xbf16>, vector<8x8xbf16>, vector<8x8xbf16> -> vector<8x32xbf16>
    %c3_204 = arith.constant 3 : index
    %c0_205 = arith.constant 0 : index
    %c0_206 = arith.constant 0 : index
    %685 = vector.load %arg4[%c3_204, %c0_205, %c0_206] : memref<4x32x32xbf16, #tpu.memory_space<vmem>>, vector<1x32x32xbf16>
    %686 = vector.shape_cast %685 : vector<1x32x32xbf16> to vector<32x32xbf16>
    %cst_207 = arith.constant dense<0.000000e+00> : vector<8x32xf32>
    %687 = tpu.matmul %684, %686, %cst_207 {dimension_numbers = #tpu.dot_dimension_numbers<[1], [0], [0], [1], [0, 0, 1, 1], [], []>} : vector<8x32xbf16>, vector<32x32xbf16>, vector<8x32xf32> -> vector<8x32xf32>
    %688 = arith.addf %550, %687 : vector<8x32xf32>
    %689 = vector.extract_strided_slice %552 {offsets = [2, 0], sizes = [1, 32], strides = [1, 1]} : vector<6x32xf32> to vector<1x32xf32>
    %690 = vector.broadcast %689 : vector<1x32xf32> to vector<8x32xf32>
    %691 = arith.addf %688, %690 : vector<8x32xf32>
    %692 = vector.extract_strided_slice %552 {offsets = [3, 0], sizes = [1, 32], strides = [1, 1]} : vector<6x32xf32> to vector<1x32xf32>
    %693 = vector.extract_strided_slice %552 {offsets = [4, 0], sizes = [1, 32], strides = [1, 1]} : vector<6x32xf32> to vector<1x32xf32>
    %cst_208 = arith.constant dense<0.000000e+00> : vector<8xf32>
    %694 = vector.multi_reduction <add>, %691, %cst_208 [1] : vector<8x32xf32> to vector<8xf32>
    %695 = vector.shape_cast %694 : vector<8xf32> to vector<8x1xf32>
    %cst_209 = arith.constant 3.200000e+01 : f32
    %696 = vector.broadcast %cst_209 : f32 to vector<8x1xf32>
    %697 = arith.divf %695, %696 : vector<8x1xf32>
    %698 = arith.mulf %691, %691 : vector<8x32xf32>
    %cst_210 = arith.constant dense<0.000000e+00> : vector<8xf32>
    %699 = vector.multi_reduction <add>, %698, %cst_210 [1] : vector<8x32xf32> to vector<8xf32>
    %700 = vector.shape_cast %699 : vector<8xf32> to vector<8x1xf32>
    %cst_211 = arith.constant 3.200000e+01 : f32
    %701 = vector.broadcast %cst_211 : f32 to vector<8x1xf32>
    %702 = arith.divf %700, %701 : vector<8x1xf32>
    %703 = arith.mulf %697, %697 : vector<8x1xf32>
    %704 = arith.subf %702, %703 : vector<8x1xf32>
    %705 = vector.broadcast %697 : vector<8x1xf32> to vector<8x32xf32>
    %706 = arith.subf %691, %705 : vector<8x32xf32>
    %cst_212 = arith.constant 9.99999974E-6 : f32
    %707 = vector.broadcast %cst_212 : f32 to vector<8x1xf32>
    %708 = arith.addf %704, %707 : vector<8x1xf32>
    %709 = math.rsqrt %708 : vector<8x1xf32>
    %710 = vector.broadcast %709 : vector<8x1xf32> to vector<8x32xf32>
    %711 = arith.mulf %706, %710 : vector<8x32xf32>
    %712 = vector.broadcast %692 : vector<1x32xf32> to vector<8x32xf32>
    %713 = arith.mulf %711, %712 : vector<8x32xf32>
    %714 = vector.broadcast %693 : vector<1x32xf32> to vector<8x32xf32>
    %715 = arith.addf %713, %714 : vector<8x32xf32>
    %716 = arith.truncf %715 : vector<8x32xf32> to vector<8x32xbf16>
    %c3_213 = arith.constant 3 : index
    %c0_214 = arith.constant 0 : index
    %c0_215 = arith.constant 0 : index
    %717 = vector.load %arg5[%c3_213, %c0_214, %c0_215] : memref<4x32x128xbf16, #tpu.memory_space<vmem>>, vector<1x32x128xbf16>
    %718 = vector.shape_cast %717 : vector<1x32x128xbf16> to vector<32x128xbf16>
    %cst_216 = arith.constant dense<0.000000e+00> : vector<8x128xf32>
    %719 = tpu.matmul %716, %718, %cst_216 {dimension_numbers = #tpu.dot_dimension_numbers<[1], [0], [0], [1], [0, 0, 1, 1], [], []>} : vector<8x32xbf16>, vector<32x128xbf16>, vector<8x128xf32> -> vector<8x128xf32>
    %c3_217 = arith.constant 3 : index
    %c0_218 = arith.constant 0 : index
    %c0_219 = arith.constant 0 : index
    %720 = vector.load %arg6[%c3_217, %c0_218, %c0_219] : memref<4x1x128xf32, #tpu.memory_space<vmem>>, vector<1x1x128xf32>
    %721 = vector.shape_cast %720 : vector<1x1x128xf32> to vector<1x128xf32>
    %722 = vector.broadcast %721 : vector<1x128xf32> to vector<8x128xf32>
    %723 = arith.addf %719, %722 : vector<8x128xf32>
    %cst_220 = arith.constant 0.000000e+00 : f32
    %724 = vector.broadcast %cst_220 : f32 to vector<8x128xf32>
    %725 = arith.maximumf %723, %724 : vector<8x128xf32>
    %726 = arith.truncf %725 : vector<8x128xf32> to vector<8x128xbf16>
    %c3_221 = arith.constant 3 : index
    %c0_222 = arith.constant 0 : index
    %c0_223 = arith.constant 0 : index
    %727 = vector.load %arg7[%c3_221, %c0_222, %c0_223] : memref<4x128x32xbf16, #tpu.memory_space<vmem>>, vector<1x128x32xbf16>
    %728 = vector.shape_cast %727 : vector<1x128x32xbf16> to vector<128x32xbf16>
    %cst_224 = arith.constant dense<0.000000e+00> : vector<8x32xf32>
    %729 = tpu.matmul %726, %728, %cst_224 {dimension_numbers = #tpu.dot_dimension_numbers<[1], [0], [0], [1], [0, 0, 1, 1], [], []>} : vector<8x128xbf16>, vector<128x32xbf16>, vector<8x32xf32> -> vector<8x32xf32>
    %730 = vector.extract_strided_slice %552 {offsets = [5, 0], sizes = [1, 32], strides = [1, 1]} : vector<6x32xf32> to vector<1x32xf32>
    %731 = vector.broadcast %730 : vector<1x32xf32> to vector<8x32xf32>
    %732 = arith.addf %729, %731 : vector<8x32xf32>
    %733 = arith.addf %691, %732 : vector<8x32xf32>
    %c0_225 = arith.constant 0 : index
    %c0_226 = arith.constant 0 : index
    %734 = vector.load %arg8[%c0_225, %c0_226] : memref<2x32xf32, #tpu.memory_space<vmem>>, vector<2x32xf32>
    %735 = vector.extract_strided_slice %734 {offsets = [0, 0], sizes = [1, 32], strides = [1, 1]} : vector<2x32xf32> to vector<1x32xf32>
    %736 = vector.extract_strided_slice %734 {offsets = [1, 0], sizes = [1, 32], strides = [1, 1]} : vector<2x32xf32> to vector<1x32xf32>
    %cst_227 = arith.constant dense<0.000000e+00> : vector<8xf32>
    %737 = vector.multi_reduction <add>, %733, %cst_227 [1] : vector<8x32xf32> to vector<8xf32>
    %738 = vector.shape_cast %737 : vector<8xf32> to vector<8x1xf32>
    %cst_228 = arith.constant 3.200000e+01 : f32
    %739 = vector.broadcast %cst_228 : f32 to vector<8x1xf32>
    %740 = arith.divf %738, %739 : vector<8x1xf32>
    %741 = arith.mulf %733, %733 : vector<8x32xf32>
    %cst_229 = arith.constant dense<0.000000e+00> : vector<8xf32>
    %742 = vector.multi_reduction <add>, %741, %cst_229 [1] : vector<8x32xf32> to vector<8xf32>
    %743 = vector.shape_cast %742 : vector<8xf32> to vector<8x1xf32>
    %cst_230 = arith.constant 3.200000e+01 : f32
    %744 = vector.broadcast %cst_230 : f32 to vector<8x1xf32>
    %745 = arith.divf %743, %744 : vector<8x1xf32>
    %746 = arith.mulf %740, %740 : vector<8x1xf32>
    %747 = arith.subf %745, %746 : vector<8x1xf32>
    %748 = vector.broadcast %740 : vector<8x1xf32> to vector<8x32xf32>
    %749 = arith.subf %733, %748 : vector<8x32xf32>
    %cst_231 = arith.constant 9.99999974E-6 : f32
    %750 = vector.broadcast %cst_231 : f32 to vector<8x1xf32>
    %751 = arith.addf %747, %750 : vector<8x1xf32>
    %752 = math.rsqrt %751 : vector<8x1xf32>
    %753 = vector.broadcast %752 : vector<8x1xf32> to vector<8x32xf32>
    %754 = arith.mulf %749, %753 : vector<8x32xf32>
    %755 = vector.broadcast %735 : vector<1x32xf32> to vector<8x32xf32>
    %756 = arith.mulf %754, %755 : vector<8x32xf32>
    %757 = vector.broadcast %736 : vector<1x32xf32> to vector<8x32xf32>
    %758 = arith.addf %756, %757 : vector<8x32xf32>
    %759 = arith.truncf %758 : vector<8x32xf32> to vector<8x32xbf16>
    %c0_232 = arith.constant 0 : index
    %c0_233 = arith.constant 0 : index
    %760 = vector.load %arg9[%c0_232, %c0_233] : memref<32x128xbf16, #tpu.memory_space<vmem>>, vector<32x128xbf16>
    %cst_234 = arith.constant dense<0.000000e+00> : vector<8x128xf32>
    %761 = tpu.matmul %759, %760, %cst_234 {dimension_numbers = #tpu.dot_dimension_numbers<[1], [0], [0], [1], [0, 0, 1, 1], [], []>} : vector<8x32xbf16>, vector<32x128xbf16>, vector<8x128xf32> -> vector<8x128xf32>
    %c0_235 = arith.constant 0 : index
    %c0_236 = arith.constant 0 : index
    %762 = vector.load %arg10[%c0_235, %c0_236] : memref<1x128xf32, #tpu.memory_space<vmem>>, vector<1x128xf32>
    %763 = vector.broadcast %762 : vector<1x128xf32> to vector<8x128xf32>
    %764 = arith.addf %761, %763 : vector<8x128xf32>
    %765 = vector.shape_cast %764 : vector<8x128xf32> to vector<1x8x128xf32>
    %c0_237 = arith.constant 0 : index
    %c0_238 = arith.constant 0 : index
    %c0_239 = arith.constant 0 : index
    %766 = vector.load %arg11[%c0_237, %c0_238, %c0_239] : memref<1x8x128xf32, #tpu.memory_space<vmem>>, vector<1x8x128xf32>
    tpu.vector_store %arg11[%c0_237, %c0_238, %c0_239], %765 {strides = array<i32>} : memref<1x8x128xf32, #tpu.memory_space<vmem>>, vector<1x8x128xf32>,
    return
  }
  func.func @transform_0(%arg0: i32) -> (i32, i32, i32) {
    %c0_i32 = arith.constant 0 : i32
    %c0_i32_0 = arith.constant 0 : i32
    %c0_i32_1 = arith.constant 0 : i32
    return %arg0, %c0_i32, %c0_i32_0 : i32, i32, i32
  }
  func.func @transform_1(%arg0: i32) -> (i32, i32, i32) {
    %c0_i32 = arith.constant 0 : i32
    %c0_i32_0 = arith.constant 0 : i32
    %c0_i32_1 = arith.constant 0 : i32
    %c0_i32_2 = arith.constant 0 : i32
    return %c0_i32, %c0_i32_0, %c0_i32_1 : i32, i32, i32
  }
  func.func @transform_2(%arg0: i32) -> (i32, i32, i32) {
    %c0_i32 = arith.constant 0 : i32
    %c0_i32_0 = arith.constant 0 : i32
    %c0_i32_1 = arith.constant 0 : i32
    %c0_i32_2 = arith.constant 0 : i32
    return %c0_i32, %c0_i32_0, %c0_i32_1 : i32, i32, i32
  }
  func.func @transform_3(%arg0: i32) -> (i32, i32, i32) {
    %c0_i32 = arith.constant 0 : i32
    %c0_i32_0 = arith.constant 0 : i32
    %c0_i32_1 = arith.constant 0 : i32
    %c0_i32_2 = arith.constant 0 : i32
    return %c0_i32, %c0_i32_0, %c0_i32_1 : i32, i32, i32
  }
  func.func @transform_4(%arg0: i32) -> (i32, i32, i32) {
    %c0_i32 = arith.constant 0 : i32
    %c0_i32_0 = arith.constant 0 : i32
    %c0_i32_1 = arith.constant 0 : i32
    %c0_i32_2 = arith.constant 0 : i32
    return %c0_i32, %c0_i32_0, %c0_i32_1 : i32, i32, i32
  }
  func.func @transform_5(%arg0: i32) -> (i32, i32, i32) {
    %c0_i32 = arith.constant 0 : i32
    %c0_i32_0 = arith.constant 0 : i32
    %c0_i32_1 = arith.constant 0 : i32
    %c0_i32_2 = arith.constant 0 : i32
    return %c0_i32, %c0_i32_0, %c0_i32_1 : i32, i32, i32
  }
  func.func @transform_6(%arg0: i32) -> (i32, i32, i32) {
    %c0_i32 = arith.constant 0 : i32
    %c0_i32_0 = arith.constant 0 : i32
    %c0_i32_1 = arith.constant 0 : i32
    %c0_i32_2 = arith.constant 0 : i32
    return %c0_i32, %c0_i32_0, %c0_i32_1 : i32, i32, i32
  }
  func.func @transform_7(%arg0: i32) -> (i32, i32) {
    %c0_i32 = arith.constant 0 : i32
    %c0_i32_0 = arith.constant 0 : i32
    %c0_i32_1 = arith.constant 0 : i32
    return %c0_i32, %c0_i32_0 : i32, i32
  }
  func.func @transform_8(%arg0: i32) -> (i32, i32) {
    %c0_i32 = arith.constant 0 : i32
    %c0_i32_0 = arith.constant 0 : i32
    %c0_i32_1 = arith.constant 0 : i32
    return %c0_i32, %c0_i32_0 : i32, i32
  }
  func.func @transform_9(%arg0: i32) -> (i32, i32) {
    %c0_i32 = arith.constant 0 : i32
    %c0_i32_0 = arith.constant 0 : i32
    %c0_i32_1 = arith.constant 0 : i32
    return %c0_i32, %c0_i32_0 : i32, i32
  }
  func.func @transform_10(%arg0: i32) -> (i32, i32, i32) {
    %c0_i32 = arith.constant 0 : i32
    %c0_i32_0 = arith.constant 0 : i32
    %c0_i32_1 = arith.constant 0 : i32
    return %arg0, %c0_i32, %c0_i32_0 : i32, i32, i32
  }
}

</mosaic_0001>

<bundles_post_ra>
// kernel: tpu_custom_call.1
= control target key start
LH: loop header
LB: loop body
LE: loop exit
PB: predicated region body
PF: predicated region fallthrough
CT: control target
= control target key end

     0   :  { %s4029_s0 = inlined_call_operand.vmem [shape: f32[2,8,32], index: 0, kind: input, shape index: {}]   ;;  %s4030_s1 = inlined_call_operand.vmem [shape: f32[4,6,32], index: 1, kind: input, shape index: {}]   ;;  %s4031_s2 = inlined_call_operand.vmem [shape: bf16[4,32,96], index: 2, kind: input, shape index: {}]   ;;  %s4032_s3 = inlined_call_operand.vmem [shape: bf16[4,32,32], index: 3, kind: input, shape index: {}]   ;;  %s4033_s4 = inlined_call_operand.vmem [shape: bf16[4,32,128], index: 4, kind: input, shape index: {}]   ;;  %s4034_s5 = inlined_call_operand.vmem [shape: f32[4,1,128], index: 5, kind: input, shape index: {}]   ;;  %s4035_s6 = inlined_call_operand.vmem [shape: bf16[4,128,32], index: 6, kind: input, shape index: {}]   ;;  %s4036_s7 = inlined_call_operand.vmem [shape: f32[2,32], index: 7, kind: input, shape index: {}]   ;;  %s4037_s8 = inlined_call_operand.vmem [shape: bf16[32,128], index: 8, kind: input, shape index: {}]   ;;  %s4038_s9 = inlined_call_operand.vmem [shape: f32[1,128], index: 9, kind: input, shape index: {}]   ;;  %s4039_s10 = inlined_call_operand.hbm [shape: f32[2,8,128], index: 10, kind: output, shape index: {}]  }
   0x1   :  { %4068 = sst [smem:[#allocation11_spill]] %s4029_s0 }
   0x2   :  { %4069 = sst [smem:[#allocation12_spill]] %s4038_s9 }
   0x3   :  { %15 = vsyncpa [#allocation3], 0 }
   0x4   :  { %17 = vsyncpa [#allocation3 + $0x1], 0  ;;  %s3361_s13 = smov 0   ;;  %s3363_s14 = smov 0  }
   0x5   :  { %s3365_s15 = smov 0   ;;  %s3367_s16 = smov 0  }
   0x6 LB: > { %4070 = sst [smem:[#allocation5_spill]] %s3280_s13  ;;  %s3382_s17 = sadd.s32 4294967295, %s3292_s16   ;;  %s3292_s16 = sphi %s3367_s16, %s4096_s16   ;;  %s3288_s15 = sphi %s3365_s15, %s4098_s15   ;;  %s3284_s14 = sphi %s3363_s14, %s4100_s14   ;;  %s3280_s13 = sphi %s3361_s13, %s4099_s13  }
   0x7   : > { %4071 = sst [smem:[#allocation6_spill]] %s3288_s15  ;;  %s2654_s18 = sadd.s32 4294967294, %s3292_s16  }
   0x8   : > { %4072 = sst [smem:[#allocation7_spill]] %s3292_s16  ;;  %s3386_s19 = sadd.s32 1, %s3292_s16  }
   0x9   : > { %4073 = sst [smem:[#allocation8_spill]] %s3386_s19  ;;  %s245_s20 = sadd.s32 1, %s3288_s15 }
   0xa   : > { %s242_s21 = ssub.s32 %s3292_s16, %s3386_s19  ;;  %p255_p0 = scmp.ne.s32.totalorder %s3288_s15, %s3284_s14 }
   0xb   : > { %p243_p1 = scmp.eq.s32.totalorder %s242_s21, 0  ;;  %p256_p2 = scmp.eq.s32.totalorder %s3382_s17, 1 }
   0xc   : > { %p261_p3 = scmp.ne.s32.totalorder %s3284_s14, %s3280_s13  ;;  %p262_p4 = scmp.eq.s32.totalorder %s2654_s18, 1 }
   0xd   : > { %s3397_s22 = scalar_select %p243_p1, %s3288_s15, %s245_s20  }
   0xe   : > { %p3399_p5 = por %p256_p2, %p255_p0  ;;  %p3403_p6 = por %p262_p4, %p261_p3 }
   0xf   : > { %4074 = sst [smem:[#allocation9_spill]] %s3397_s22  ;;  %p2657_p7 = scmp.ge.s32.totalorder %s3292_s16, 1 }
  0x10   : > { %s4076_s24 = scalar_select %p3403_p6, 1, 0 }
  0x11   : > { %p314_p8 = scmp.lt.s32.totalorder %s3292_s16, 3 }
  0x12   : > { %4077 = sst [smem:[#allocation10_spill]] %s4076_s24 }
  0x13   : > { %p315_p9 = pnand %p2657_p7, %p314_p8 }
  0x14   : > { %p351_p10 = scmp.lt.s32.totalorder (!%p315_p9), %s3382_s17, 1  ;;  %s4078_s0 = sld [smem:[#allocation11_spill]] (!%p315_p9) }
  0x15   : > { %318 = sbr.rel (%p315_p9) target bundleno = 9069 (0x236d), region = 60  ;;  %s4058_s27 = smov (!%p315_p9), 112  }
  0x16   : > { %s4056_s28 = smov (!%p315_p9), 120   ;;  %s4046_s30 = smov (!%p315_p9), 56  }
  0x17   : > { %s4042_s11 = smov (!%p315_p9), 40   ;;  %s4044_s12 = smov (!%p315_p9), 48  }
  0x18   : > { %s4040_s18 = smov (!%p315_p9), 8   ;;  %s4048_s20 = smov (!%p315_p9), 24  }
  0x19   : > { %s4050_s21 = smov (!%p315_p9), 16   ;;  %s4089_s15 = smov (!%p315_p9), 96  }
  0x1a   : > { %s352_s25 = scalar_select %p351_p10, %s3382_s17, 1  ;;  %vm358_vm0 = vcmask 261120   ;;  %v3294_v4 = vmov 32.0   ;;  %v3032_v10 = vld [vmem:[%s4031_s2 + $0x8] sm:$0xff]  ;;  %v3031_v12 = vld [vmem:[%s4031_s2] sm:$0xff]  ;;  %vm472_vm5 = vcmask 1043456   ;;  %v489_v46 = vlaneseq }
  0x1b   : > { %3146 = vrcp.f32 %v3294_v4  ;;  %420 = vmatpush.bf16.msra.mxu0 %v3032_v10  ;;  %v3434_v25 = vld [vmem:[%s4030_s1] sm:$0x3f]  ;;  %vm468_vm6 = vcmask 64512   ;;  %vm718_vm8 = vcmask 130048   ;;  %vm721_vm9 = vcmask 195584   ;;  %s4090_s22 = smov 112  }
  0x1c   : > { %s2659_s26 = sshll.u32 %s352_s25, 3  ;;  %v390_v28 = vperm.slane %v3434_v25, 0  ;;  %v392_v31 = vperm.slane %v3434_v25, 1  ;;  %s4060_s25 = smov 96   ;;  %v490_v47 = vshrl.u32 %v489_v46, 7  ;;  %v492_v48 = vand.u32 127, %v489_v46 }
  0x1d   : > { %s354_s29 = scalar_lea.vmem %s4078_s0, %s2659_s26  ;;  %s4052_s26 = smov 64  }
  0x1e   : > { %v3414_v0 = vld [vmem:[%s354_s29] sm:$0xff]  ;;  %vm3450_vm7 = vcmp.ge.s32.totalorder %v490_v47, %v492_v48  ;;  %s4054_s29 = smov 104   ;;  %s4091_s0 = smov 120  }
  0x1f   : > { %v359_v1 = vsel %vm358_vm0, %v3414_v0, 0.0  ;;  %v370_v2 = vmul.f32 %v3414_v0, %v3414_v0  ;;  %421 = vmatpush.bf16.msra.mxu0 %v3031_v12 }
  0x20   : > { %360 = vadd.xlane.f32.xlu0 %v359_v1 }
  0x21   : > { %v371_v3 = vsel %vm358_vm0, %v370_v2, 0.0  ;;  %v3147_v5 = vpop.eup %3146 }
  0x22   : > { %v363_v6 = vmul.f32 32.0, %v3147_v5  ;;  %vm367_vm1 = vweird.f32 %v3147_v5 }
  0x24   : > { %v364_v7 = vsub.f32 1.0, %v363_v6 }
  0x26   : > { %v365_v8 = vmul.f32 %v3147_v5, %v364_v7 }
  0x28   : > { %372 = vadd.xlane.f32.xlu0 %v371_v3  ;;  %v366_v9 = vadd.f32 %v3147_v5, %v365_v8 }
  0x2a   : > { %v3427_v13 = vsel %vm367_vm1, %v3147_v5, %v366_v9 }
  0x93   : > { %v361_v11 = vpop.xlane.xlu0 %360 }
  0x94   : > { %v369_v14 = vmul.f32 %v3427_v13, %v361_v11 }
  0x96   : > { %v375_v16 = vmul.f32 %v369_v14, %v369_v14  ;;  %v377_v27 = vsub.f32 %v3414_v0, %v369_v14 }
  0x9b   : > { %v373_v15 = vpop.xlane.xlu0 %372 }
  0x9c   : > { %v374_v17 = vmul.f32 %v373_v15, %v3427_v13 }
  0x9e   : > { %v376_v18 = vsub.f32 %v374_v17, %v375_v16 }
  0xa0   : > { %v378_v19 = vadd.f32 1e-05, %v376_v18 }
  0xa2   : > { %3148 = vrsqrt.f32 %v378_v19  ;;  %vm385_vm3 = vweird.f32 %v378_v19 }
  0xa8   : > { %v3149_v20 = vpop.eup %3148 }
  0xa9   : > { %v380_v21 = vmul.f32 %v3149_v20, %v378_v19  ;;  %vm386_vm2 = vweird.f32 %v3149_v20 }
  0xaa   : > { %vm387_vm4 = vmor %vm385_vm3, %vm386_vm2 }
  0xab   : > { %v381_v22 = vmul.f32 %v3149_v20, %v380_v21 }
  0xad   : > { %v382_v23 = vmul.f32 0.5, %v381_v22 }
  0xaf   : > { %v383_v24 = vsub.f32 1.5, %v382_v23 }
  0xb1   : > { %v384_v26 = vmul.f32 %v3149_v20, %v383_v24 }
  0xb3   : > { %v388_v29 = vsel %vm387_vm4, %v3149_v20, %v384_v26 }
  0xb4   : > { %v389_v30 = vmul.f32 %v388_v29, %v377_v27 }
  0xb6   : > { %v391_v32 = vmul.f32 %v390_v28, %v389_v30 }
  0xb8   : > { %v393_v33 = vadd.f32 %v392_v31, %v391_v32 }
  0xba   : > { %v394_v34 = vpack.c.bf16 %v393_v33, %v393_v33 }
  0xbc   : > { %2668 = vmatmul.msk.bf16.vlgmr.msra.gmra.mxu0 %vm358_vm0, %v394_v34 }
 0x139   : > { %v423_v35 = vpop.f32.mrf.mxu0 }
 0x13a   : > { %v427_v36 = vpack.c.bf16 %v423_v35, %v423_v35  ;;  %429 = vrot.lane.b32.xlu1 %v423_v35, %s4060_s25 }
 0x13c   : > { %v508_v37 = vunpack.c.l.b16 %v427_v36 }
 0x13e   : > { %v3441_v38 = vpack.c.b16 %v508_v37, %v508_v37 }
 0x140   : > { %510 = vrot.lane.b32.xlu0 %v3441_v38, %s4052_s26  ;;  %s4085_s26 = smov 40  }
 0x141   : > { %v425_v39 = vpop.f32.mrf.mxu0 }
 0x148   : > { %588 = vrot.lane.b32.xlu0 %v3441_v38, %s4058_s27 }
 0x1ac   : > { %v430_v40 = vpop.permute.xlu1 %429 }
 0x1ad   : > { %432 = vxpose.xlu1.b32.start.end [1/1] (short) (narrow) %v430_v40, 32 }
 0x1b2   : > { %v511_v41 = vpop.permute.xlu0 %510 }
 0x1b3   : > { %v516_v42 = vsel %vm472_vm5, %v511_v41, 0 }
 0x1b4   : > { %525 = vmatpush.bf16.msra.mxu2 %v516_v42 }
 0x1ba   : > { %v589_v16 = vpop.permute.xlu0 %588 }
 0x251   : > { %v448_v43 = vpop.trf.xlu1 }
 0x252   : > { %v464_v44 = vpack.c.bf16 %v448_v43, %v448_v43 }
 0x254   : > { %v474_v45 = vsel %vm472_vm5, %v464_v44, 0 }
 0x255   : > { %483 = vmatpush.bf16.msra.mxu1 %v474_v45 }
 0x258   : > { %2669 = vmatmul.msk.bf16.vlgmr.msra.gmra.mxu1 %vm468_vm6, %v427_v36 }
 0x259   : > { %v449_v54 = vpop.trf.xlu1 }
 0x25a   : > { %v465_v55 = vpack.c.bf16 %v449_v54, %v449_v54 }
 0x25c   : > { %v538_v56 = vsel %vm472_vm5, %v465_v55, 0 }
 0x25d   : > { %547 = vmatpush.bf16.msra.mxu3 %v538_v56 }
 0x261   : > { %v450_v63 = vpop.trf.xlu1 }
 0x262   : > { %v466_v4 = vpack.c.bf16 %v450_v63, %v450_v63 }
 0x264   : > { %v594_v5 = vsel %vm472_vm5, %v466_v4, 0 }
 0x265   : > { %603 = vmatpush.bf16.msrb.mxu2 %v594_v5 }
 0x269   : > { %v451_v1 = vpop.trf.xlu1 }
 0x26a   : > { %v467_v2 = vpack.c.bf16 %v451_v1, %v451_v1 }
 0x26c   : > { %v650_v3 = vsel %vm472_vm5, %v467_v2, 0 }
 0x26d   : > { %659 = vmatpush.bf16.msrb.mxu0 %v650_v3 }
 0x2d5   : > { %v485_v50 = vpop.f32.mrf.mxu1 }
 0x2d6   : > { %v494_v51 = vsel %vm3450_vm7, %v485_v50, -1e+30 }
 0x2d7   : > { %v495_v52 = vsel %vm468_vm6, %v494_v51, -inf }
 0x2d8   : > { %496 = vmax.xlane.f32.xlu2 %v495_v52 }
 0x2dd   : > { %v487_v53 = vpop.f32.mrf.mxu1 }
 0x2f0   : > { %532 = vrot.lane.b32.xlu2 %v3441_v38, %s4056_s28 }
 0x34b   : > { %v497_v57 = vpop.xlane.xlu2 %496 }
 0x34c   : > { %v498_v58 = vsub.f32 %v494_v51, %v497_v57 }
 0x34e   : > { %v499_v59 = vmul.f32 1.442695, %v498_v58 }
 0x350   : > { %3150 = vpow2.f32 %v499_v59 }
 0x353   : > { %v533_v60 = vpop.permute.xlu2 %532 }
 0x354   : > { %2671 = vmatmul.msk.bf16.vlgmr.msra.gmra.mxu3 %vm468_vm6, %v533_v60 }
 0x356   : > { %v3151_v61 = vpop.eup %3150 }
 0x357   : > { %v501_v62 = vsel %vm468_vm6, %v3151_v61, 0.0 }
 0x358   : > { %502 = vadd.xlane.f32.xlu2 %v501_v62 }
 0x370   : > { %644 = vrot.lane.b32.xlu2 %v3441_v38, %s4054_s29  ;;  %s4086_s29 = smov 8  }
 0x3cb   : > { %v503_v6 = vpop.xlane.xlu2 %502 }
 0x3cc   : > { %3152 = vrcp.f32 %v503_v6 }
 0x3d2   : > { %v3153_v7 = vpop.eup %3152 }
 0x3d3   : > { %v645_v8 = vpop.permute.xlu2 %644  ;;  %v505_v9 = vmul.f32 %v3153_v7, %v3151_v61 }
 0x3d4   : > { %2675 = vmatmul.msk.bf16.vlgmr.msrb.gmra.mxu0 %vm468_vm6, %v645_v8 }
 0x3d5   : > { %v506_v10 = vpack.c.bf16 %v505_v9, %v505_v9 }
 0x3d7   : > { %2670 = vmatmul.msk.bf16.vlgmr.msra.gmra.mxu2 %vm468_vm6, %v506_v10  ;;  %v549_v11 = vpop.f32.mrf.mxu3 }
 0x3d8   : > { %v553_v12 = vsel %vm3450_vm7, %v549_v11, -1e+30 }
 0x3d9   : > { %v554_v14 = vsel %vm468_vm6, %v553_v12, -inf }
 0x3da   : > { %555 = vmax.xlane.f32.xlu0 %v554_v14 }
 0x3df   : > { %v551_v15 = vpop.f32.mrf.mxu3 }
 0x3e0   : > { %v3034_v15 = vld [vmem:[%s4032_s3 + $0x8] sm:$0xff] }
 0x3e1   : > { %748 = vmatpush.bf16.msra.mxu2 %v3034_v15 }
 0x3e7   : > { %2673 = vmatmul.msk.bf16.vlgmr.msrb.gmra.mxu2 %vm468_vm6, %v589_v16  ;;  %v3033_v16 = vld [vmem:[%s4032_s3] sm:$0xff] }
 0x3e8   : > { %749 = vmatpush.bf16.msra.mxu2 %v3033_v16  ;;  %v3045_v16 = vld [vmem:[%s4031_s2 + $0x10] sm:$0xff] }
 0x44d   : > { %v556_v17 = vpop.xlane.xlu0 %555 }
 0x44e   : > { %v557_v18 = vsub.f32 %v553_v12, %v556_v17 }
 0x450   : > { %v558_v19 = vmul.f32 1.442695, %v557_v18 }
 0x451   : > { %v661_v20 = vpop.f32.mrf.mxu0 }
 0x452   : > { %3154 = vpow2.f32 %v558_v19  ;;  %v665_v21 = vsel %vm3450_vm7, %v661_v20, -1e+30 }
 0x453   : > { %v666_v22 = vsel %vm468_vm6, %v665_v21, -inf }
 0x454   : > { %667 = vmax.xlane.f32.xlu1 %v666_v22 }
 0x458   : > { %v3155_v23 = vpop.eup %3154 }
 0x459   : > { %v663_v24 = vpop.f32.mrf.mxu0  ;;  %v560_v26 = vsel %vm468_vm6, %v3155_v23, 0.0 }
 0x45a   : > { %561 = vadd.xlane.f32.xlu0 %v560_v26  ;;  %v3476_v27 = vpop.f32.mrf.mxu2  ;;  %v756_v24 = vperm.slane %v3434_v25, 2 }
 0x45b   : > { %v531_v18 = vpack.c.bf16 %v3476_v27, %v3476_v27 }
 0x462   : > { %v529_v28 = vpop.f32.mrf.mxu2 }
 0x46a   : > { %v605_v29 = vpop.f32.mrf.mxu2 }
 0x46b   : > { %v609_v30 = vsel %vm3450_vm7, %v605_v29, -1e+30 }
 0x46c   : > { %v610_v31 = vsel %vm468_vm6, %v609_v30, -inf }
 0x46d   : > { %611 = vmax.xlane.f32.xlu2 %v610_v31 }
 0x472   : > { %v607_v32 = vpop.f32.mrf.mxu2 }
 0x485   : > { %566 = vrot.lane.b32.xlu2 %v3441_v38, %s4046_s30  ;;  %s4083_s30 = smov 56  }
 0x48d   : > { %678 = vrot.lane.b32.xlu2 %v3441_v38, %s4042_s11  ;;  %s4084_s11 = smov 48  }
 0x4c7   : > { %v668_v33 = vpop.xlane.xlu1 %667 }
 0x4c8   : > { %v669_v34 = vsub.f32 %v665_v21, %v668_v33  ;;  %v3036_v33 = vld [vmem:[%s4033_s4 + $0x8] sm:$0xff] }
 0x4ca   : > { %v670_v35 = vmul.f32 1.442695, %v669_v34 }
 0x4cc   : > { %3156 = vpow2.f32 %v670_v35 }
 0x4cd   : > { %v562_v39 = vpop.xlane.xlu0 %561 }
 0x4ce   : > { %3158 = vrcp.f32 %v562_v39 }
 0x4d2   : > { %v3157_v36 = vpop.eup %3156 }
 0x4d3   : > { %v672_v37 = vsel %vm468_vm6, %v3157_v36, 0.0 }
 0x4d4   : > { %673 = vadd.xlane.f32.xlu0 %v672_v37  ;;  %v3159_v43 = vpop.eup %3158 }
 0x4d5   : > { %v564_v44 = vmul.f32 %v3159_v43, %v3155_v23 }
 0x4d7   : > { %v565_v48 = vpack.c.bf16 %v564_v44, %v564_v44  ;;  %v3042_v44 = vld [vmem:[%s4035_s6 + $0x28] sm:$0xff] }
 0x4e0   : > { %v612_v40 = vpop.xlane.xlu2 %611 }
 0x4e1   : > { %v613_v41 = vsub.f32 %v609_v30, %v612_v40  ;;  %v3044_v40 = vld [vmem:[%s4035_s6 + $0x38] sm:$0xff] }
 0x4e2   : > { %890 = vmatpush.bf16.msra.mxu0 %v3044_v40 }
 0x4e3   : > { %v614_v42 = vmul.f32 1.442695, %v613_v41 }
 0x4e5   : > { %3160 = vpow2.f32 %v614_v42  ;;  %v3043_v42 = vld [vmem:[%s4035_s6 + $0x30] sm:$0xff] }
 0x4e6   : > { %891 = vmatpush.bf16.msra.mxu0 %v3043_v42 }
 0x4e8   : > { %v567_v45 = vpop.permute.xlu2 %566 }
 0x4e9   : > { %v572_v46 = vsel %vm472_vm5, %v567_v45, 0  ;;  %v3041_v45 = vld [vmem:[%s4035_s6 + $0x20] sm:$0xff] }
 0x4ea   : > { %581 = vmatpush.bf16.msrb.mxu1 %v572_v46  ;;  %892 = vmatpush.bf16.msra.mxu0 %v3042_v44 }
 0x4eb   : > { %v3161_v47 = vpop.eup %3160 }
 0x4ec   : > { %v616_v50 = vsel %vm468_vm6, %v3161_v47, 0.0 }
 0x4ed   : > { %2672 = vmatmul.msk.bf16.vlgmr.msrb.gmra.mxu1 %vm468_vm6, %v565_v48  ;;  %617 = vadd.xlane.f32.xlu0 %v616_v50  ;;  %v3040_v48 = vld [vmem:[%s4035_s6 + $0x18] sm:$0xff] }
 0x4ee   : > { %893 = vmatpush.bf16.msra.mxu0 %v3041_v45 }
 0x4f0   : > { %v679_v51 = vpop.permute.xlu2 %678 }
 0x4f1   : > { %v684_v52 = vsel %vm472_vm5, %v679_v51, 0 }
 0x4f2   : > { %693 = vmatpush.bf16.msra.mxu1 %v684_v52  ;;  %894 = vmatpush.bf16.msra.mxu0 %v3040_v48  ;;  %v3039_v52 = vld [vmem:[%s4035_s6 + $0x10] sm:$0xff] }
 0x4f6   : > { %895 = vmatpush.bf16.msra.mxu0 %v3039_v52 }
 0x501   : > { %622 = vrot.lane.b32.xlu0 %v3441_v38, %s4044_s12  ;;  %s4087_s12 = smov 16  }
 0x547   : > { %v674_v53 = vpop.xlane.xlu0 %673 }
 0x548   : > { %3162 = vrcp.f32 %v674_v53 }
 0x54e   : > { %v3163_v54 = vpop.eup %3162 }
 0x54f   : > { %v676_v55 = vmul.f32 %v3163_v54, %v3157_v36 }
 0x551   : > { %v677_v56 = vpack.c.bf16 %v676_v55, %v676_v55 }
 0x553   : > { %2676 = vmatmul.msk.bf16.vlgmr.msra.gmra.mxu1 %vm468_vm6, %v677_v56  ;;  %v782_v56 = vperm.slane %v3434_v25, 3 }
 0x560   : > { %v618_v57 = vpop.xlane.xlu0 %617 }
 0x561   : > { %3164 = vrcp.f32 %v618_v57 }
 0x567   : > { %v3165_v61 = vpop.eup %3164 }
 0x568   : > { %v620_v63 = vmul.f32 %v3165_v61, %v3161_v47 }
 0x56a   : > { %v583_v58 = vpop.f32.mrf.mxu1  ;;  %v621_v3 = vpack.c.bf16 %v620_v63, %v620_v63  ;;  %v3038_v63 = vld [vmem:[%s4035_s6 + $0x8] sm:$0xff] }
 0x56b   : > { %v587_v59 = vpack.c.bf16 %v583_v58, %v583_v58  ;;  %896 = vmatpush.bf16.msra.mxu0 %v3038_v63 }
 0x56d   : > { %v701_v60 = vunpack.c.l.b16 %v587_v59  ;;  %v784_v59 = vperm.slane %v3434_v25, 4 }
 0x56f   : > { %v702_v62 = vpack.c.b16 %v701_v60, %v701_v60 }
 0x571   : > { %703 = vrot.lane.b32.xlu2 %v702_v62, %s4040_s18  ;;  %s4088_s18 = smov 24  }
 0x572   : > { %v585_v1 = vpop.f32.mrf.mxu1 }
 0x573   : > { %v623_v38 = vpop.permute.xlu0 %622  ;;  %v3037_v1 = vld [vmem:[%s4035_s6] sm:$0xff] }
 0x574   : > { %v628_v2 = vsel %vm472_vm5, %v623_v38, 0  ;;  %897 = vmatpush.bf16.msra.mxu0 %v3037_v1  ;;  %v3141_v38 = vld [vmem:[%s4034_s5] ss:$0 sm:$0xff] }
 0x575   : > { %637 = vmatpush.bf16.msrb.mxu3 %v628_v2 }
 0x578   : > { %2674 = vmatmul.msk.bf16.vlgmr.msrb.gmra.mxu3 %vm468_vm6, %v621_v3 }
 0x579   : > { %816 = vmatpush.bf16.msra.mxu3 %v3036_v33 }
 0x5cb   : > { %v704_v17 = vpop.permute.xlu2 %703 }
 0x5cc   : > { %v717_v19 = vsel %vm468_vm6, %v531_v18, %v704_v17 }
 0x5d0   : > { %v695_v4 = vpop.f32.mrf.mxu1 }
 0x5d1   : > { %v699_v5 = vpack.c.bf16 %v695_v4, %v695_v4 }
 0x5d3   : > { %v711_v6 = vunpack.c.l.b16 %v699_v5 }
 0x5d5   : > { %v712_v7 = vpack.c.b16 %v711_v6, %v711_v6 }
 0x5d7   : > { %713 = vrot.lane.b32.xlu0 %v712_v7, %s4048_s20  ;;  %v841_v7 = vperm.slane %v3434_v25, 5  ;;  %v3046_v25 = vld [vmem:[%s4031_s2 + $0x18] sm:$0xff]  ;;  %s4081_s20 = smov 104  }
 0x5d8   : > { %v697_v8 = vpop.f32.mrf.mxu1  ;;  %961 = vmatpush.bf16.msrb.mxu1 %v3046_v25 }
 0x5dc   : > { %962 = vmatpush.bf16.msrb.mxu1 %v3045_v16 }
 0x5fb   : > { %v639_v9 = vpop.f32.mrf.mxu3 }
 0x5fc   : > { %v643_v10 = vpack.c.bf16 %v639_v9, %v639_v9 }
 0x5fe   : > { %v706_v11 = vunpack.c.l.b16 %v643_v10 }
 0x600   : > { %v707_v12 = vpack.c.b16 %v706_v11, %v706_v11 }
 0x602   : > { %708 = vrot.lane.b32.xlu2 %v707_v12, %s4050_s21  ;;  %s4082_s21 = smov 64  }
 0x603   : > { %v641_v14 = vpop.f32.mrf.mxu3 }
 0x649   : > { %v714_v21 = vpop.permute.xlu0 %713 }
 0x65c   : > { %v709_v20 = vpop.permute.xlu2 %708 }
 0x65d   : > { %v720_v22 = vsel %vm718_vm8, %v717_v19, %v709_v20 }
 0x65e   : > { %v723_v23 = vsel %vm721_vm9, %v720_v22, %v714_v21 }
 0x65f   : > { %2685 = vmatmul.msk.bf16.vlgmr.msra.gmra.mxu2 %vm358_vm0, %v723_v23 }
 0x6e2   : > { %v751_v26 = vpop.f32.mrf.mxu2 }
 0x6e3   : > { %v755_v28 = vadd.f32 %v751_v26, %v3414_v0  ;;  %v3035_v0 = vld [vmem:[%s4033_s4] sm:$0xff] }
 0x6e4   : > { %817 = vmatpush.bf16.msra.mxu3 %v3035_v0 }
 0x6e5   : > { %v3512_v29 = vadd.f32 %v756_v24, %v755_v28 }
 0x6e7   : > { %v758_v27 = vsel %vm358_vm0, %v3512_v29, 0.0  ;;  %v762_v30 = vmul.f32 %v3512_v29, %v3512_v29 }
 0x6e8   : > { %759 = vadd.xlane.f32.xlu2 %v758_v27  ;;  %v3578_v27 = vld [vmem:[%s4030_s1 + $0x8] sm:$0x3f] }
 0x6e9   : > { %v763_v31 = vsel %vm358_vm0, %v762_v30, 0.0  ;;  %v930_v33 = vperm.slane %v3578_v27, 0 }
 0x6ea   : > { %764 = vadd.xlane.f32.xlu0 %v763_v31  ;;  %v753_v32 = vpop.f32.mrf.mxu2 }
 0x75b   : > { %v760_v34 = vpop.xlane.xlu2 %759 }
 0x75c   : > { %v761_v35 = vmul.f32 %v760_v34, %v3427_v13 }
 0x75d   : > { %v765_v36 = vpop.xlane.xlu0 %764 }
 0x75e   : > { %v767_v37 = vmul.f32 %v761_v35, %v761_v35  ;;  %v766_v39 = vmul.f32 %v765_v36, %v3427_v13  ;;  %v769_v55 = vsub.f32 %v3512_v29, %v761_v35  ;;  %v932_v35 = vperm.slane %v3578_v27, 1 }
 0x760   : > { %v768_v41 = vsub.f32 %v766_v39, %v767_v37 }
 0x762   : > { %v770_v43 = vadd.f32 1e-05, %v768_v41 }
 0x764   : > { %3166 = vrsqrt.f32 %v770_v43  ;;  %vm777_vm11 = vweird.f32 %v770_v43 }
 0x76a   : > { %v3167_v46 = vpop.eup %3166 }
 0x76b   : > { %v772_v47 = vmul.f32 %v3167_v46, %v770_v43  ;;  %vm778_vm10 = vweird.f32 %v3167_v46 }
 0x76c   : > { %vm779_vm12 = vmor %vm777_vm11, %vm778_vm10 }
 0x76d   : > { %v773_v50 = vmul.f32 %v3167_v46, %v772_v47 }
 0x76f   : > { %v774_v51 = vmul.f32 0.5, %v773_v50 }
 0x771   : > { %v775_v53 = vsub.f32 1.5, %v774_v51 }
 0x773   : > { %v776_v54 = vmul.f32 %v3167_v46, %v775_v53 }
 0x775   : > { %v780_v57 = vsel %vm779_vm12, %v3167_v46, %v776_v54 }
 0x776   : > { %v781_v58 = vmul.f32 %v780_v57, %v769_v55 }
 0x778   : > { %v783_v60 = vmul.f32 %v782_v56, %v781_v58 }
 0x77a   : > { %v785_v61 = vadd.f32 %v784_v59, %v783_v60 }
 0x77c   : > { %v786_v62 = vpack.c.bf16 %v785_v61, %v785_v61 }
 0x77e   : > { %2694 = vmatmul.msk.bf16.vlgmr.msra.gmra.mxu3 %vm358_vm0, %v786_v62 }
 0x801   : > { %v819_v2 = vpop.f32.mrf.mxu3 }
 0x802   : > { %v820_v3 = vadd.f32 %v3141_v38, %v819_v2 }
 0x804   : > { %v823_v4 = vmax.f32 %v820_v3, 0.0 }
 0x806   : > { %v824_v5 = vpack.c.bf16 %v823_v4, %v823_v4 }
 0x808   : > { %898 = vmatmul.bf16.vlgmr.msra.gmra.mxu0 %v824_v5 }
 0x809   : > { %v821_v6 = vpop.f32.mrf.mxu3 }
 0x885   : > { %v899_v8 = vpop.f32.mrf.mxu0 }
 0x886   : > { %v900_v9 = vadd.f32 %v899_v8, %v841_v7 }
 0x888   : > { %v3560_v10 = vadd.f32 %v900_v9, %v3512_v29 }
 0x88a   : > { %v906_v11 = vsel %vm358_vm0, %v3560_v10, 0.0  ;;  %v910_v12 = vmul.f32 %v3560_v10, %v3560_v10 }
 0x88b   : > { %907 = vadd.xlane.f32.xlu2 %v906_v11 }
 0x88c   : > { %v911_v14 = vsel %vm358_vm0, %v910_v12, 0.0 }
 0x88d   : > { %v901_v15 = vpop.f32.mrf.mxu0  ;;  %912 = vadd.xlane.f32.xlu0 %v911_v14 }
 0x8fe   : > { %v908_v17 = vpop.xlane.xlu2 %907 }
 0x8ff   : > { %v909_v18 = vmul.f32 %v908_v17, %v3427_v13 }
 0x900   : > { %v913_v19 = vpop.xlane.xlu0 %912 }
 0x901   : > { %v915_v20 = vmul.f32 %v909_v18, %v909_v18  ;;  %v914_v21 = vmul.f32 %v913_v19, %v3427_v13  ;;  %v917_v32 = vsub.f32 %v3560_v10, %v909_v18 }
 0x903   : > { %v916_v22 = vsub.f32 %v914_v21, %v915_v20 }
 0x905   : > { %v918_v23 = vadd.f32 1e-05, %v916_v22 }
 0x907   : > { %3168 = vrsqrt.f32 %v918_v23  ;;  %vm925_vm14 = vweird.f32 %v918_v23 }
 0x90d   : > { %v3169_v24 = vpop.eup %3168 }
 0x90e   : > { %v920_v26 = vmul.f32 %v3169_v24, %v918_v23  ;;  %vm926_vm13 = vweird.f32 %v3169_v24 }
 0x90f   : > { %vm927_vm15 = vmor %vm925_vm14, %vm926_vm13 }
 0x910   : > { %v921_v28 = vmul.f32 %v3169_v24, %v920_v26 }
 0x912   : > { %v922_v29 = vmul.f32 0.5, %v921_v28 }
 0x914   : > { %v923_v30 = vsub.f32 1.5, %v922_v29 }
 0x916   : > { %v924_v31 = vmul.f32 %v3169_v24, %v923_v30 }
 0x918   : > { %v928_v0 = vsel %vm927_vm15, %v3169_v24, %v924_v31 }
 0x919   : > { %v929_v34 = vmul.f32 %v928_v0, %v917_v32 }
 0x91b   : > { %v931_v36 = vmul.f32 %v930_v33, %v929_v34 }
 0x91d   : > { %v933_v37 = vadd.f32 %v932_v35, %v931_v36 }
 0x91f   : > { %v934_v39 = vpack.c.bf16 %v933_v37, %v933_v37 }
 0x921   : > { %2740 = vmatmul.msk.bf16.vlgmr.msrb.gmra.mxu1 %vm358_vm0, %v934_v39 }
 0x99e   : > { %v964_v40 = vpop.f32.mrf.mxu1 }
 0x99f   : > { %v968_v41 = vpack.c.bf16 %v964_v40, %v964_v40  ;;  %970 = vrot.lane.b32.xlu1 %v964_v40, %s4060_s25  ;;  %s3028_s25 = sshll.u32 %s3382_s17, 3 }
 0x9a0   : > { %s2590_s24 = scalar_lea.hbm %s4039_s10, %s3028_s25 }
 0x9a1   : > { %v1042_v42 = vunpack.c.l.b16 %v968_v41 }
 0x9a3   : > { %v3585_v43 = vpack.c.b16 %v1042_v42, %v1042_v42 }
 0x9a6   : > { %v966_v44 = vpop.f32.mrf.mxu1 }
 0x9a7   : > { %1066 = vrot.lane.b32.xlu1 %v3585_v43, %s4056_s28  ;;  %s348_s28 = sand.u32 1, %s3284_s14  }
 0x9a8   : > { %s2658_s9 = sshll.u32 %s348_s28, 3 }
 0x9af   : > { %1122 = vrot.lane.b32.xlu1 %v3585_v43, %s4058_s27 }
 0x9b7   : > { %1178 = vrot.lane.b32.xlu1 %v3585_v43, %s4081_s20 }
 0xa11   : > { %v971_v45 = vpop.permute.xlu1 %970 }
 0xa12   : > { %973 = vxpose.xlu2.b32.start.end [1/1] (short) (narrow) %v971_v45, 32 }
 0xa19   : > { %v1067_v52 = vpop.permute.xlu1 %1066 }
 0xa21   : > { %v1123_v55 = vpop.permute.xlu1 %1122 }
 0xa29   : > { %v1179_v59 = vpop.permute.xlu1 %1178 }
 0xaab   : > { %v989_v46 = vpop.trf.xlu2 }
 0xaac   : > { %v1005_v47 = vpack.c.bf16 %v989_v46, %v989_v46 }
 0xaae   : > { %v1013_v48 = vsel %vm472_vm5, %v1005_v47, 0 }
 0xaaf   : > { %1022 = vmatpush.bf16.msrb.mxu2 %v1013_v48 }
 0xab2   : > { %2741 = vmatmul.msk.bf16.vlgmr.msrb.gmra.mxu2 %vm468_vm6, %v968_v41 }
 0xab3   : > { %v990_v50 = vpop.trf.xlu2 }
 0xab4   : > { %v1006_v51 = vpack.c.bf16 %v990_v50, %v990_v50 }
 0xab6   : > { %v1072_v53 = vsel %vm472_vm5, %v1006_v51, 0 }
 0xab7   : > { %1081 = vmatpush.bf16.msra.mxu1 %v1072_v53 }
 0xaba   : > { %2743 = vmatmul.msk.bf16.vlgmr.msra.gmra.mxu1 %vm468_vm6, %v1067_v52 }
 0xabb   : > { %v991_v54 = vpop.trf.xlu2 }
 0xabc   : > { %v1007_v16 = vpack.c.bf16 %v991_v54, %v991_v54 }
 0xabe   : > { %v1128_v18 = vsel %vm472_vm5, %v1007_v16, 0  ;;  %v3048_v16 = vld [vmem:[%s4032_s3 + $0x18] sm:$0xff] }
 0xac3   : > { %v992_v56 = vpop.trf.xlu2 }
 0xac4   : > { %v1008_v57 = vpack.c.bf16 %v992_v56, %v992_v56 }
 0xac6   : > { %v1184_v58 = vsel %vm472_vm5, %v1008_v57, 0 }
 0xac7   : > { %1193 = vmatpush.bf16.msrb.mxu1 %v1184_v58 }
 0xaca   : > { %2747 = vmatmul.msk.bf16.vlgmr.msrb.gmra.mxu1 %vm468_vm6, %v1179_v59 }
 0xb35   : > { %v1024_v60 = vpop.f32.mrf.mxu2 }
 0xb36   : > { %v1028_v61 = vsel %vm3450_vm7, %v1024_v60, -1e+30 }
 0xb37   : > { %v1083_v62 = vpop.f32.mrf.mxu1  ;;  %v1029_v63 = vsel %vm468_vm6, %v1028_v61, -inf }
 0xb38   : > { %1030 = vmax.xlane.f32.xlu0 %v1029_v63  ;;  %v1087_v12 = vsel %vm3450_vm7, %v1083_v62, -1e+30 }
 0xb39   : > { %v1088_v14 = vsel %vm468_vm6, %v1087_v12, -inf }
 0xb3d   : > { %v1026_v1 = vpop.f32.mrf.mxu2 }
 0xb3f   : > { %v1085_v38 = vpop.f32.mrf.mxu1 }
 0xb47   : > { %v1195_v2 = vpop.f32.mrf.mxu1 }
 0xb48   : > { %v1199_v3 = vsel %vm3450_vm7, %v1195_v2, -1e+30 }
 0xb49   : > { %v1200_v4 = vsel %vm468_vm6, %v1199_v3, -inf }
 0xb4a   : > { %1201 = vmax.xlane.f32.xlu2 %v1200_v4 }
 0xb4f   : > { %v1197_v5 = vpop.f32.mrf.mxu1 }
 0xbab   : > { %v1031_v6 = vpop.xlane.xlu0 %1030 }
 0xbac   : > { %v1032_v7 = vsub.f32 %v1028_v61, %v1031_v6 }
 0xbae   : > { %v1033_v8 = vmul.f32 1.442695, %v1032_v7 }
 0xbb0   : > { %3170 = vpow2.f32 %v1033_v8 }
 0xbb6   : > { %v3171_v9 = vpop.eup %3170 }
 0xbb7   : > { %v1035_v11 = vsel %vm468_vm6, %v3171_v9, 0.0 }
 0xbb8   : > { %1036 = vadd.xlane.f32.xlu0 %v1035_v11 }
 0xbbd   : > { %v1202_v22 = vpop.xlane.xlu2 %1201 }
 0xbbe   : > { %v1203_v26 = vsub.f32 %v1199_v3, %v1202_v22 }
 0xbc0   : > { %v1204_v29 = vmul.f32 1.442695, %v1203_v26  ;;  %v1289_v26 = vperm.slane %v3578_v27, 2 }
 0xbcc   : > { %1044 = vrot.lane.b32.xlu0 %v3585_v43, %s4082_s21 }
 0xbf6   : > { %1089 = vmax.xlane.f32.xlu0 %v1088_v14 }
 0xc2b   : > { %v1037_v15 = vpop.xlane.xlu0 %1036 }
 0xc2c   : > { %3172 = vrcp.f32 %v1037_v15 }
 0xc32   : > { %v3173_v25 = vpop.eup %3172 }
 0xc33   : > { %v1039_v17 = vmul.f32 %v3173_v25, %v3171_v9 }
 0xc35   : > { %v1040_v21 = vpack.c.bf16 %v1039_v17, %v1039_v17  ;;  %v3047_v17 = vld [vmem:[%s4032_s3 + $0x10] sm:$0xff] }
 0xc3e   : > { %v1045_v19 = vpop.permute.xlu0 %1044 }
 0xc3f   : > { %v1050_v20 = vsel %vm472_vm5, %v1045_v19, 0 }
 0xc40   : > { %1059 = vmatpush.bf16.msrb.mxu3 %v1050_v20 }
 0xc43   : > { %2742 = vmatmul.msk.bf16.vlgmr.msrb.gmra.mxu3 %vm468_vm6, %v1040_v21 }
 0xc44   : > { %1137 = vmatpush.bf16.msra.mxu3 %v1128_v18 }
 0xc48   : > { %1281 = vmatpush.bf16.msrb.mxu3 %v3048_v16 }
 0xc4c   : > { %1282 = vmatpush.bf16.msrb.mxu3 %v3047_v17  ;;  %v3059_v17 = vld [vmem:[%s4031_s2 + $0x20] sm:$0xff] }
 0xc53   : > { %2745 = vmatmul.msk.bf16.vlgmr.msra.gmra.mxu3 %vm468_vm6, %v1123_v55 }
 0xc69   : > { %v1090_v23 = vpop.xlane.xlu0 %1089 }
 0xc6a   : > { %v1091_v24 = vsub.f32 %v1087_v12, %v1090_v23 }
 0xc6c   : > { %v1092_v28 = vmul.f32 1.442695, %v1091_v24 }
 0xc6e   : > { %3174 = vpow2.f32 %v1092_v28 }
 0xc6f   : > { %3176 = vpow2.f32 %v1204_v29 }
 0xc74   : > { %v3175_v30 = vpop.eup %3174 }
 0xc75   : > { %v1094_v31 = vsel %vm468_vm6, %v3175_v30, 0.0  ;;  %v3177_v32 = vpop.eup %3176 }
 0xc76   : > { %1095 = vadd.xlane.f32.xlu0 %v1094_v31  ;;  %v1206_v33 = vsel %vm468_vm6, %v3177_v32, 0.0 }
 0xc7e   : > { %1207 = vadd.xlane.f32.xlu0 %v1206_v33 }
 0xcc6   : > { %v3617_v0 = vpop.f32.mrf.mxu3 }
 0xcc7   : > { %v1065_v19 = vpack.c.bf16 %v3617_v0, %v3617_v0 }
 0xcce   : > { %v1063_v34 = vpop.f32.mrf.mxu3 }
 0xccf   : > { %v3050_v34 = vld [vmem:[%s4033_s4 + $0x18] sm:$0xff] }
 0xcd6   : > { %v1139_v35 = vpop.f32.mrf.mxu3 }
 0xcd7   : > { %v1143_v36 = vsel %vm3450_vm7, %v1139_v35, -1e+30 }
 0xcd8   : > { %v1144_v37 = vsel %vm468_vm6, %v1143_v36, -inf }
 0xcd9   : > { %1145 = vmax.xlane.f32.xlu1 %v1144_v37 }
 0xcde   : > { %v1141_v39 = vpop.f32.mrf.mxu3 }
 0xce9   : > { %v1096_v45 = vpop.xlane.xlu0 %1095 }
 0xcf1   : > { %v1208_v55 = vpop.xlane.xlu0 %1207 }
 0xcf2   : > { %1100 = vrot.lane.b32.xlu1 %v3585_v43, %s4083_s30 }
 0xcfa   : > { %1156 = vrot.lane.b32.xlu1 %v3585_v43, %s4084_s11 }
 0xd4c   : > { %v1146_v40 = vpop.xlane.xlu1 %1145 }
 0xd4d   : > { %v1147_v41 = vsub.f32 %v1143_v36, %v1146_v40 }
 0xd4f   : > { %v1148_v42 = vmul.f32 1.442695, %v1147_v41  ;;  %v3058_v41 = vld [vmem:[%s4035_s6 + $0x78] sm:$0xff] }
 0xd50   : > { %1426 = vmatpush.bf16.msra.mxu1 %v3058_v41 }
 0xd51   : > { %3178 = vpow2.f32 %v1148_v42 }
 0xd52   : > { %3180 = vrcp.f32 %v1096_v45 }
 0xd57   : > { %v3179_v44 = vpop.eup %3178 }
 0xd58   : > { %v1150_v46 = vsel %vm468_vm6, %v3179_v44, 0.0  ;;  %v3181_v47 = vpop.eup %3180 }
 0xd59   : > { %1151 = vadd.xlane.f32.xlu0 %v1150_v46  ;;  %v1098_v48 = vmul.f32 %v3181_v47, %v3175_v30  ;;  %v3056_v46 = vld [vmem:[%s4035_s6 + $0x68] sm:$0xff]  ;;  %v3055_v47 = vld [vmem:[%s4035_s6 + $0x60] sm:$0xff] }
 0xd5b   : > { %v1099_v52 = vpack.c.bf16 %v1098_v48, %v1098_v48 }
 0xd64   : > { %v1101_v50 = vpop.permute.xlu1 %1100 }
 0xd65   : > { %v1106_v51 = vsel %vm472_vm5, %v1101_v50, 0 }
 0xd66   : > { %1115 = vmatpush.bf16.msra.mxu2 %v1106_v51  ;;  %v3054_v51 = vld [vmem:[%s4035_s6 + $0x58] sm:$0xff] }
 0xd69   : > { %2744 = vmatmul.msk.bf16.vlgmr.msra.gmra.mxu2 %vm468_vm6, %v1099_v52 }
 0xd6c   : > { %v1157_v53 = vpop.permute.xlu1 %1156 }
 0xd6d   : > { %v1162_v54 = vsel %vm472_vm5, %v1157_v53, 0  ;;  %1212 = vrot.lane.b32.xlu0 %v3585_v43, %s4085_s26 }
 0xd6e   : > { %1171 = vmatpush.bf16.msrb.mxu0 %v1162_v54  ;;  %v3053_v54 = vld [vmem:[%s4035_s6 + $0x50] sm:$0xff] }
 0xd72   : > { %1351 = vmatpush.bf16.msra.mxu0 %v3050_v34 }
 0xdcc   : > { %v1152_v56 = vpop.xlane.xlu0 %1151 }
 0xdcd   : > { %3182 = vrcp.f32 %v1152_v56 }
 0xdce   : > { %3184 = vrcp.f32 %v1208_v55 }
 0xdd3   : > { %v3183_v57 = vpop.eup %3182 }
 0xdd4   : > { %v1154_v58 = vmul.f32 %v3183_v57, %v3179_v44  ;;  %v3185_v60 = vpop.eup %3184  ;;  %v3057_v44 = vld [vmem:[%s4035_s6 + $0x70] sm:$0xff] }
 0xdd5   : > { %v1210_v61 = vmul.f32 %v3185_v60, %v3177_v32  ;;  %1427 = vmatpush.bf16.msra.mxu1 %v3057_v44 }
 0xdd6   : > { %v1155_v59 = vpack.c.bf16 %v1154_v58, %v1154_v58  ;;  %v1315_v58 = vperm.slane %v3578_v27, 3 }
 0xdd7   : > { %v1211_v1 = vpack.c.bf16 %v1210_v61, %v1210_v61  ;;  %v1317_v61 = vperm.slane %v3578_v27, 4 }
 0xdd8   : > { %2746 = vmatmul.msk.bf16.vlgmr.msrb.gmra.mxu0 %vm468_vm6, %v1155_v59 }
 0xdd9   : > { %1428 = vmatpush.bf16.msra.mxu1 %v3056_v46 }
 0xddd   : > { %1429 = vmatpush.bf16.msra.mxu1 %v3055_v47 }
 0xddf   : > { %v1213_v62 = vpop.permute.xlu0 %1212 }
 0xde0   : > { %v1218_v63 = vsel %vm472_vm5, %v1213_v62, 0 }
 0xde1   : > { %1227 = vmatpush.bf16.msrb.mxu2 %v1218_v63  ;;  %1430 = vmatpush.bf16.msra.mxu1 %v3054_v51 }
 0xde4   : > { %2748 = vmatmul.msk.bf16.vlgmr.msrb.gmra.mxu2 %vm468_vm6, %v1211_v1 }
 0xde5   : > { %1431 = vmatpush.bf16.msra.mxu1 %v3053_v54 }
 0xdec   : > { %v1117_v43 = vpop.f32.mrf.mxu2 }
 0xded   : > { %v1121_v38 = vpack.c.bf16 %v1117_v43, %v1117_v43  ;;  %v3052_v43 = vld [vmem:[%s4035_s6 + $0x48] sm:$0xff] }
 0xdee   : > { %1432 = vmatpush.bf16.msra.mxu1 %v3052_v43 }
 0xdef   : > { %v1235_v2 = vunpack.c.l.b16 %v1121_v38  ;;  %v3051_v38 = vld [vmem:[%s4035_s6 + $0x40] sm:$0xff] }
 0xdf1   : > { %v1236_v3 = vpack.c.b16 %v1235_v2, %v1235_v2  ;;  %v3142_v2 = vld [vmem:[%s4034_s5 + $0x1] ss:$0 sm:$0xff] }
 0xdf2   : > { %1433 = vmatpush.bf16.msra.mxu1 %v3051_v38 }
 0xdf3   : > { %1237 = vrot.lane.b32.xlu1 %v1236_v3, %s4086_s29 }
 0xdf4   : > { %v1119_v4 = vpop.f32.mrf.mxu2 }
 0xe55   : > { %v1173_v5 = vpop.f32.mrf.mxu0 }
 0xe56   : > { %v1177_v6 = vpack.c.bf16 %v1173_v5, %v1173_v5 }
 0xe58   : > { %v1240_v7 = vunpack.c.l.b16 %v1177_v6 }
 0xe5a   : > { %v1241_v8 = vpack.c.b16 %v1240_v7, %v1240_v7 }
 0xe5c   : > { %1242 = vrot.lane.b32.xlu0 %v1241_v8, %s4087_s12  ;;  %v1377_v8 = vperm.slane %v3578_v27, 5  ;;  %v3060_v27 = vld [vmem:[%s4031_s2 + $0x28] sm:$0xff] }
 0xe5d   : > { %v1175_v9 = vpop.f32.mrf.mxu0  ;;  %1497 = vmatpush.bf16.msra.mxu2 %v3060_v27 }
 0xe61   : > { %1498 = vmatpush.bf16.msra.mxu2 %v3059_v17 }
 0xe65   : > { %v1238_v18 = vpop.permute.xlu1 %1237 }
 0xe66   : > { %v1251_v21 = vsel %vm468_vm6, %v1065_v19, %v1238_v18 }
 0xe67   : > { %v1229_v11 = vpop.f32.mrf.mxu2 }
 0xe68   : > { %v1233_v12 = vpack.c.bf16 %v1229_v11, %v1229_v11 }
 0xe6a   : > { %v1245_v14 = vunpack.c.l.b16 %v1233_v12 }
 0xe6c   : > { %v1246_v15 = vpack.c.b16 %v1245_v14, %v1245_v14 }
 0xe6e   : > { %1247 = vrot.lane.b32.xlu1 %v1246_v15, %s4088_s18 }
 0xe6f   : > { %v1231_v25 = vpop.f32.mrf.mxu2 }
 0xece   : > { %v1243_v20 = vpop.permute.xlu0 %1242 }
 0xecf   : > { %v1253_v22 = vsel %vm718_vm8, %v1251_v21, %v1243_v20 }
 0xee0   : > { %v1248_v23 = vpop.permute.xlu1 %1247 }
 0xee1   : > { %v1255_v24 = vsel %vm721_vm9, %v1253_v22, %v1248_v23 }
 0xee2   : > { %2761 = vmatmul.msk.bf16.vlgmr.msrb.gmra.mxu3 %vm358_vm0, %v1255_v24 }
 0xf65   : > { %v1284_v28 = vpop.f32.mrf.mxu3 }
 0xf66   : > { %v1288_v29 = vadd.f32 %v1284_v28, %v3560_v10  ;;  %v3049_v10 = vld [vmem:[%s4033_s4 + $0x10] sm:$0xff] }
 0xf67   : > { %1352 = vmatpush.bf16.msra.mxu0 %v3049_v10 }
 0xf68   : > { %v3652_v30 = vadd.f32 %v1289_v26, %v1288_v29 }
 0xf6a   : > { %v1291_v31 = vsel %vm358_vm0, %v3652_v30, 0.0  ;;  %v1295_v32 = vmul.f32 %v3652_v30, %v3652_v30 }
 0xf6b   : > { %1292 = vadd.xlane.f32.xlu0 %v1291_v31  ;;  %v3718_v31 = vld [vmem:[%s4030_s1 + $0x10] sm:$0x3f] }
 0xf6c   : > { %v1296_v33 = vsel %vm358_vm0, %v1295_v32, 0.0  ;;  %v1466_v34 = vperm.slane %v3718_v31, 0 }
 0xf6d   : > { %1297 = vadd.xlane.f32.xlu1 %v1296_v33  ;;  %v1286_v0 = vpop.f32.mrf.mxu3 }
 0xfde   : > { %v1293_v35 = vpop.xlane.xlu0 %1292 }
 0xfdf   : > { %v1294_v36 = vmul.f32 %v1293_v35, %v3427_v13 }
 0xfe0   : > { %v1298_v37 = vpop.xlane.xlu1 %1297 }
 0xfe1   : > { %v1300_v39 = vmul.f32 %v1294_v36, %v1294_v36  ;;  %v1299_v40 = vmul.f32 %v1298_v37, %v3427_v13  ;;  %v1302_v57 = vsub.f32 %v3652_v30, %v1294_v36  ;;  %v1468_v36 = vperm.slane %v3718_v31, 1 }
 0xfe3   : > { %v1301_v42 = vsub.f32 %v1299_v40, %v1300_v39 }
 0xfe5   : > { %v1303_v45 = vadd.f32 1e-05, %v1301_v42 }
 0xfe7   : > { %3186 = vrsqrt.f32 %v1303_v45  ;;  %vm1310_vm2 = vweird.f32 %v1303_v45 }
 0xfed   : > { %v3187_v48 = vpop.eup %3186 }
 0xfee   : > { %v1305_v50 = vmul.f32 %v3187_v48, %v1303_v45  ;;  %vm1311_vm1 = vweird.f32 %v3187_v48 }
 0xfef   : > { %vm1312_vm3 = vmor %vm1310_vm2, %vm1311_vm1 }
 0xff0   : > { %v1306_v52 = vmul.f32 %v3187_v48, %v1305_v50 }
 0xff2   : > { %v1307_v53 = vmul.f32 0.5, %v1306_v52 }
 0xff4   : > { %v1308_v55 = vsub.f32 1.5, %v1307_v53 }
 0xff6   : > { %v1309_v56 = vmul.f32 %v3187_v48, %v1308_v55 }
 0xff8   : > { %v1313_v59 = vsel %vm1312_vm3, %v3187_v48, %v1309_v56 }
 0xff9   : > { %v1314_v60 = vmul.f32 %v1313_v59, %v1302_v57 }
 0xffb   : > { %v1316_v62 = vmul.f32 %v1315_v58, %v1314_v60 }
 0xffd   : > { %v1318_v63 = vadd.f32 %v1317_v61, %v1316_v62 }
 0xfff   : > { %v1319_v1 = vpack.c.bf16 %v1318_v63, %v1318_v63 }
0x1001   : > { %2775 = vmatmul.msk.bf16.vlgmr.msra.gmra.mxu0 %vm358_vm0, %v1319_v1 }
0x107e   : > { %v1354_v3 = vpop.f32.mrf.mxu0 }
0x107f   : > { %v1355_v4 = vadd.f32 %v3142_v2, %v1354_v3 }
0x1081   : > { %v1358_v5 = vmax.f32 %v1355_v4, 0.0 }
0x1083   : > { %v1359_v6 = vpack.c.bf16 %v1358_v5, %v1358_v5 }
0x1085   : > { %1434 = vmatmul.bf16.vlgmr.msra.gmra.mxu1 %v1359_v6 }
0x1086   : > { %v1356_v7 = vpop.f32.mrf.mxu0 }
0x1102   : > { %v1435_v9 = vpop.f32.mrf.mxu1 }
0x1103   : > { %v1436_v11 = vadd.f32 %v1435_v9, %v1377_v8 }
0x1105   : > { %v3700_v12 = vadd.f32 %v1436_v11, %v3652_v30 }
0x1107   : > { %v1442_v14 = vsel %vm358_vm0, %v3700_v12, 0.0  ;;  %v1446_v15 = vmul.f32 %v3700_v12, %v3700_v12 }
0x1108   : > { %1443 = vadd.xlane.f32.xlu0 %v1442_v14 }
0x1109   : > { %v1447_v25 = vsel %vm358_vm0, %v1446_v15, 0.0 }
0x110a   : > { %v1437_v16 = vpop.f32.mrf.mxu1  ;;  %1448 = vadd.xlane.f32.xlu1 %v1447_v25 }
0x117b   : > { %v1444_v18 = vpop.xlane.xlu0 %1443 }
0x117c   : > { %v1445_v19 = vmul.f32 %v1444_v18, %v3427_v13 }
0x117d   : > { %v1449_v20 = vpop.xlane.xlu1 %1448 }
0x117e   : > { %v1451_v21 = vmul.f32 %v1445_v19, %v1445_v19  ;;  %v1450_v22 = vmul.f32 %v1449_v20, %v3427_v13  ;;  %v1453_v0 = vsub.f32 %v3700_v12, %v1445_v19 }
0x1180   : > { %v1452_v23 = vsub.f32 %v1450_v22, %v1451_v21 }
0x1182   : > { %v1454_v24 = vadd.f32 1e-05, %v1452_v23 }
0x1184   : > { %3188 = vrsqrt.f32 %v1454_v24  ;;  %vm1461_vm10 = vweird.f32 %v1454_v24 }
0x118a   : > { %v3189_v26 = vpop.eup %3188 }
0x118b   : > { %v1456_v28 = vmul.f32 %v3189_v26, %v1454_v24  ;;  %vm1462_vm4 = vweird.f32 %v3189_v26 }
0x118c   : > { %vm1463_vm11 = vmor %vm1461_vm10, %vm1462_vm4 }
0x118d   : > { %v1457_v29 = vmul.f32 %v3189_v26, %v1456_v28 }
0x118f   : > { %v1458_v30 = vmul.f32 0.5, %v1457_v29 }
0x1191   : > { %v1459_v32 = vsub.f32 1.5, %v1458_v30 }
0x1193   : > { %v1460_v33 = vmul.f32 %v3189_v26, %v1459_v32 }
0x1195   : > { %v1464_v10 = vsel %vm1463_vm11, %v3189_v26, %v1460_v33 }
0x1196   : > { %v1465_v35 = vmul.f32 %v1464_v10, %v1453_v0 }
0x1198   : > { %v1467_v37 = vmul.f32 %v1466_v34, %v1465_v35 }
0x119a   : > { %v1469_v39 = vadd.f32 %v1468_v36, %v1467_v37 }
0x119c   : > { %v1470_v40 = vpack.c.bf16 %v1469_v39, %v1469_v39 }
0x119e   : > { %2837 = vmatmul.msk.bf16.vlgmr.msra.gmra.mxu2 %vm358_vm0, %v1470_v40 }
0x1221   : > { %v1500_v41 = vpop.f32.mrf.mxu2 }
0x1222   : > { %v1504_v42 = vpack.c.bf16 %v1500_v41, %v1500_v41  ;;  %1506 = vrot.lane.b32.xlu2 %v1500_v41, %s4089_s15 }
0x1224   : > { %v1578_v44 = vunpack.c.l.b16 %v1504_v42 }
0x1226   : > { %v3725_v45 = vpack.c.b16 %v1578_v44, %v1578_v44 }
0x1229   : > { %v1502_v46 = vpop.f32.mrf.mxu2 }
0x122a   : > { %1580 = vrot.lane.b32.xlu2 %v3725_v45, %s4082_s21 }
0x1232   : > { %1714 = vrot.lane.b32.xlu2 %v3725_v45, %s4081_s20 }
0x123a   : > { %1658 = vrot.lane.b32.xlu2 %v3725_v45, %s4090_s22 }
0x127c   : > { %v1507_v47 = vpop.permute.xlu2 %1506 }
0x127d   : > { %1509 = vxpose.xlu0.b32.start.end [1/1] (short) (narrow) %v1507_v47, 32 }
0x1284   : > { %v1581_v48 = vpop.permute.xlu2 %1580 }
0x1285   : > { %v1586_v50 = vsel %vm472_vm5, %v1581_v48, 0 }
0x1286   : > { %1595 = vmatpush.bf16.msrb.mxu0 %v1586_v50 }
0x128c   : > { %v1715_v14 = vpop.permute.xlu2 %1714 }
0x1294   : > { %v1659_v25 = vpop.permute.xlu2 %1658 }
0x1321   : > { %v1525_v51 = vpop.trf.xlu0 }
0x1322   : > { %v1541_v52 = vpack.c.bf16 %v1525_v51, %v1525_v51 }
0x1324   : > { %v1549_v53 = vsel %vm472_vm5, %v1541_v52, 0 }
0x1325   : > { %1558 = vmatpush.bf16.msra.mxu3 %v1549_v53 }
0x1328   : > { %2838 = vmatmul.msk.bf16.vlgmr.msra.gmra.mxu3 %vm468_vm6, %v1504_v42 }
0x1329   : > { %v1526_v63 = vpop.trf.xlu0 }
0x132a   : > { %v1542_v1 = vpack.c.bf16 %v1526_v63, %v1526_v63 }
0x132c   : > { %v1608_v43 = vsel %vm472_vm5, %v1542_v1, 0 }
0x132d   : > { %1617 = vmatpush.bf16.msrb.mxu2 %v1608_v43 }
0x1331   : > { %v1527_v38 = vpop.trf.xlu0 }
0x1332   : > { %v1543_v2 = vpack.c.bf16 %v1527_v38, %v1527_v38 }
0x1334   : > { %v1664_v3 = vsel %vm472_vm5, %v1543_v2, 0 }
0x1335   : > { %1673 = vmatpush.bf16.msra.mxu0 %v1664_v3 }
0x1339   : > { %v1528_v4 = vpop.trf.xlu0 }
0x133a   : > { %v1544_v5 = vpack.c.bf16 %v1528_v4, %v1528_v4 }
0x133c   : > { %v1720_v6 = vsel %vm472_vm5, %v1544_v5, 0 }
0x133d   : > { %1729 = vmatpush.bf16.msra.mxu2 %v1720_v6 }
0x13ab   : > { %v1560_v54 = vpop.f32.mrf.mxu3 }
0x13ac   : > { %v1564_v55 = vsel %vm3450_vm7, %v1560_v54, -1e+30 }
0x13ad   : > { %v1565_v56 = vsel %vm468_vm6, %v1564_v55, -inf }
0x13ae   : > { %1566 = vmax.xlane.f32.xlu1 %v1565_v56 }
0x13b3   : > { %v1562_v57 = vpop.f32.mrf.mxu3 }
0x1421   : > { %v1567_v58 = vpop.xlane.xlu1 %1566 }
0x1422   : > { %v1568_v59 = vsub.f32 %v1564_v55, %v1567_v58 }
0x1424   : > { %v1569_v60 = vmul.f32 1.442695, %v1568_v59 }
0x1426   : > { %3190 = vpow2.f32 %v1569_v60 }
0x142c   : > { %v3191_v61 = vpop.eup %3190 }
0x142d   : > { %v1571_v62 = vsel %vm468_vm6, %v3191_v61, 0.0 }
0x142e   : > { %1572 = vadd.xlane.f32.xlu1 %v1571_v62 }
0x1447   : > { %1602 = vrot.lane.b32.xlu1 %v3725_v45, %s4091_s0 }
0x14a1   : > { %v1573_v7 = vpop.xlane.xlu1 %1572 }
0x14a2   : > { %3192 = vrcp.f32 %v1573_v7 }
0x14a8   : > { %v3193_v8 = vpop.eup %3192 }
0x14a9   : > { %v1575_v9 = vmul.f32 %v3193_v8, %v3191_v61 }
0x14ab   : > { %v1576_v11 = vpack.c.bf16 %v1575_v9, %v1575_v9 }
0x14ad   : > { %2839 = vmatmul.msk.bf16.vlgmr.msrb.gmra.mxu0 %vm468_vm6, %v1576_v11 }
0x14b9   : > { %v1603_v15 = vpop.permute.xlu1 %1602 }
0x14ba   : > { %2840 = vmatmul.msk.bf16.vlgmr.msrb.gmra.mxu2 %vm468_vm6, %v1603_v15 }
0x14bd   : > { %2842 = vmatmul.msk.bf16.vlgmr.msra.gmra.mxu0 %vm468_vm6, %v1659_v25 }
0x14ca   : > { %2844 = vmatmul.msk.bf16.vlgmr.msra.gmra.mxu2 %vm468_vm6, %v1715_v14 }
0x152a   : > { %v3749_v16 = vpop.f32.mrf.mxu0 }
0x1532   : > { %v1599_v27 = vpop.f32.mrf.mxu0 }
0x153a   : > { %v1675_v17 = vpop.f32.mrf.mxu0 }
0x153b   : > { %v1679_v10 = vsel %vm3450_vm7, %v1675_v17, -1e+30 }
0x153c   : > { %v1680_v37 = vsel %vm468_vm6, %v1679_v10, -inf }
0x153d   : > { %v1619_v18 = vpop.f32.mrf.mxu2 }
0x153e   : > { %v1623_v19 = vsel %vm3450_vm7, %v1619_v18, -1e+30  ;;  %v3062_v18 = vld [vmem:[%s4032_s3 + $0x28] sm:$0xff] }
0x153f   : > { %v1624_v20 = vsel %vm468_vm6, %v1623_v19, -inf  ;;  %1817 = vmatpush.bf16.msrb.mxu0 %v3062_v18 }
0x1540   : > { %1625 = vmax.xlane.f32.xlu0 %v1624_v20 }
0x1542   : > { %v1677_v21 = vpop.f32.mrf.mxu0 }
0x1543   : > { %v1601_v21 = vpack.c.bf16 %v3749_v16, %v3749_v16 }
0x1545   : > { %v1621_v22 = vpop.f32.mrf.mxu2 }
0x154d   : > { %v1731_v23 = vpop.f32.mrf.mxu2 }
0x154e   : > { %v1735_v24 = vsel %vm3450_vm7, %v1731_v23, -1e+30 }
0x154f   : > { %v1736_v26 = vsel %vm468_vm6, %v1735_v24, -inf }
0x1550   : > { %1737 = vmax.xlane.f32.xlu1 %v1736_v26 }
0x1555   : > { %v1733_v28 = vpop.f32.mrf.mxu2 }
0x1569   : > { %1636 = vrot.lane.b32.xlu1 %v3725_v45, %s4083_s30 }
0x1571   : > { %1692 = vrot.lane.b32.xlu1 %v3725_v45, %s4084_s11 }
0x15b3   : > { %v1626_v29 = vpop.xlane.xlu0 %1625 }
0x15b4   : > { %v1627_v30 = vsub.f32 %v1623_v19, %v1626_v29  ;;  %v3061_v19 = vld [vmem:[%s4032_s3 + $0x20] sm:$0xff]  ;;  %v1825_v29 = vperm.slane %v3718_v31, 2 }
0x15b5   : > { %1818 = vmatpush.bf16.msrb.mxu0 %v3061_v19  ;;  %v3073_v19 = vld [vmem:[%s4031_s2 + $0x30] sm:$0xff] }
0x15b6   : > { %v1628_v32 = vmul.f32 1.442695, %v1627_v30 }
0x15b8   : > { %3194 = vpow2.f32 %v1628_v32 }
0x15be   : > { %v3195_v33 = vpop.eup %3194 }
0x15bf   : > { %v1630_v0 = vsel %vm468_vm6, %v3195_v33, 0.0 }
0x15c0   : > { %1631 = vadd.xlane.f32.xlu2 %v1630_v0 }
0x15c3   : > { %v1738_v34 = vpop.xlane.xlu1 %1737 }
0x15c4   : > { %v1739_v35 = vsub.f32 %v1735_v24, %v1738_v34 }
0x15c6   : > { %v1740_v36 = vmul.f32 1.442695, %v1739_v35  ;;  %v3064_v35 = vld [vmem:[%s4033_s4 + $0x28] sm:$0xff] }
0x15c8   : > { %3196 = vpow2.f32 %v1740_v36  ;;  %1681 = vmax.xlane.f32.xlu2 %v1680_v37 }
0x15ce   : > { %v3197_v39 = vpop.eup %3196 }
0x15cf   : > { %v1742_v40 = vsel %vm468_vm6, %v3197_v39, 0.0 }
0x15d0   : > { %1743 = vadd.xlane.f32.xlu2 %v1742_v40 }
0x15db   : > { %v1637_v41 = vpop.permute.xlu1 %1636 }
0x15dc   : > { %v1642_v42 = vsel %vm472_vm5, %v1637_v41, 0 }
0x15dd   : > { %1651 = vmatpush.bf16.msrb.mxu3 %v1642_v42  ;;  %v3072_v42 = vld [vmem:[%s4035_s6 + $0xb8] sm:$0xff] }
0x15de   : > { %1962 = vmatpush.bf16.msrb.mxu2 %v3072_v42 }
0x15e3   : > { %v1693_v44 = vpop.permute.xlu1 %1692 }
0x15e4   : > { %v1698_v46 = vsel %vm472_vm5, %v1693_v44, 0 }
0x15e5   : > { %1707 = vmatpush.bf16.msrb.mxu1 %v1698_v46  ;;  %v3071_v46 = vld [vmem:[%s4035_s6 + $0xb0] sm:$0xff] }
0x15e6   : > { %1963 = vmatpush.bf16.msrb.mxu2 %v3071_v46 }
0x15e9   : > { %1887 = vmatpush.bf16.msra.mxu1 %v3064_v35 }
0x1633   : > { %v1632_v47 = vpop.xlane.xlu2 %1631 }
0x1634   : > { %3198 = vrcp.f32 %v1632_v47 }
0x163a   : > { %v3199_v48 = vpop.eup %3198 }
0x163b   : > { %v1634_v50 = vmul.f32 %v3199_v48, %v3195_v33  ;;  %v1682_v51 = vpop.xlane.xlu2 %1681  ;;  %v3070_v48 = vld [vmem:[%s4035_s6 + $0xa8] sm:$0xff] }
0x163c   : > { %v1683_v52 = vsub.f32 %v1679_v10, %v1682_v51  ;;  %1964 = vmatpush.bf16.msrb.mxu2 %v3070_v48 }
0x163d   : > { %v1635_v53 = vpack.c.bf16 %v1634_v50, %v1634_v50  ;;  %v3069_v50 = vld [vmem:[%s4035_s6 + $0xa0] sm:$0xff] }
0x163e   : > { %v1684_v54 = vmul.f32 1.442695, %v1683_v52 }
0x163f   : > { %2841 = vmatmul.msk.bf16.vlgmr.msrb.gmra.mxu3 %vm468_vm6, %v1635_v53  ;;  %v3068_v53 = vld [vmem:[%s4035_s6 + $0x98] sm:$0xff] }
0x1640   : > { %3200 = vpow2.f32 %v1684_v54  ;;  %1965 = vmatpush.bf16.msrb.mxu2 %v3069_v50 }
0x1643   : > { %v1744_v57 = vpop.xlane.xlu2 %1743 }
0x1644   : > { %3202 = vrcp.f32 %v1744_v57  ;;  %1966 = vmatpush.bf16.msrb.mxu2 %v3068_v53 }
0x1646   : > { %v3201_v55 = vpop.eup %3200 }
0x1647   : > { %v1686_v56 = vsel %vm468_vm6, %v3201_v55, 0.0 }
0x1648   : > { %1687 = vadd.xlane.f32.xlu2 %v1686_v56  ;;  %v3067_v56 = vld [vmem:[%s4035_s6 + $0x90] sm:$0xff] }
0x1649   : > { %1967 = vmatpush.bf16.msrb.mxu2 %v3067_v56 }
0x164a   : > { %v3203_v59 = vpop.eup %3202 }
0x164b   : > { %v1746_v61 = vmul.f32 %v3203_v59, %v3197_v39 }
0x164d   : > { %v1747_v4 = vpack.c.bf16 %v1746_v61, %v1746_v61 }
0x1660   : > { %1748 = vrot.lane.b32.xlu2 %v3725_v45, %s4085_s26 }
0x16bb   : > { %v1688_v58 = vpop.xlane.xlu2 %1687 }
0x16bc   : > { %3204 = vrcp.f32 %v1688_v58 }
0x16c2   : > { %v3205_v60 = vpop.eup %3204  ;;  %v1653_v62 = vpop.f32.mrf.mxu3 }
0x16c3   : > { %v1690_v63 = vmul.f32 %v3205_v60, %v3201_v55  ;;  %v1657_v1 = vpack.c.bf16 %v1653_v62, %v1653_v62  ;;  %v1749_v43 = vpop.permute.xlu2 %1748  ;;  %v1851_v60 = vperm.slane %v3718_v31, 3 }
0x16c4   : > { %v1754_v38 = vsel %vm472_vm5, %v1749_v43, 0 }
0x16c5   : > { %v1691_v2 = vpack.c.bf16 %v1690_v63, %v1690_v63  ;;  %v1771_v3 = vunpack.c.l.b16 %v1657_v1  ;;  %1763 = vmatpush.bf16.msra.mxu3 %v1754_v38  ;;  %v1853_v63 = vperm.slane %v3718_v31, 4 }
0x16c7   : > { %v1772_v5 = vpack.c.b16 %v1771_v3, %v1771_v3  ;;  %2843 = vmatmul.msk.bf16.vlgmr.msrb.gmra.mxu1 %vm468_vm6, %v1691_v2  ;;  %v3066_v2 = vld [vmem:[%s4035_s6 + $0x88] sm:$0xff]  ;;  %v3065_v3 = vld [vmem:[%s4035_s6 + $0x80] sm:$0xff] }
0x16c8   : > { %2845 = vmatmul.msk.bf16.vlgmr.msra.gmra.mxu3 %vm468_vm6, %v1747_v4  ;;  %1968 = vmatpush.bf16.msrb.mxu2 %v3066_v2  ;;  %v3143_v4 = vld [vmem:[%s4034_s5 + $0x2] ss:$0 sm:$0xff] }
0x16c9   : > { %1773 = vrot.lane.b32.xlu1 %v1772_v5, %s4086_s29 }
0x16ca   : > { %v1655_v45 = vpop.f32.mrf.mxu3 }
0x16cc   : > { %1969 = vmatpush.bf16.msrb.mxu2 %v3065_v3 }
0x173b   : > { %v1774_v20 = vpop.permute.xlu1 %1773 }
0x173c   : > { %v1787_v22 = vsel %vm468_vm6, %v1601_v21, %v1774_v20 }
0x1744   : > { %v1709_v6 = vpop.f32.mrf.mxu1 }
0x1745   : > { %v1713_v7 = vpack.c.bf16 %v1709_v6, %v1709_v6 }
0x1747   : > { %v1776_v8 = vunpack.c.l.b16 %v1713_v7 }
0x1749   : > { %v1777_v9 = vpack.c.b16 %v1776_v8, %v1776_v8 }
0x174b   : > { %v1765_v11 = vpop.f32.mrf.mxu3  ;;  %1778 = vrot.lane.b32.xlu1 %v1777_v9, %s4087_s12  ;;  %v1913_v9 = vperm.slane %v3718_v31, 5  ;;  %v3074_v31 = vld [vmem:[%s4031_s2 + $0x38] sm:$0xff] }
0x174c   : > { %v1769_v14 = vpack.c.bf16 %v1765_v11, %v1765_v11  ;;  %v1711_v15 = vpop.f32.mrf.mxu1  ;;  %2033 = vmatpush.bf16.msrb.mxu3 %v3074_v31 }
0x174e   : > { %v1781_v25 = vunpack.c.l.b16 %v1769_v14 }
0x1750   : > { %v1782_v27 = vpack.c.b16 %v1781_v25, %v1781_v25  ;;  %2034 = vmatpush.bf16.msrb.mxu3 %v3073_v19 }
0x1752   : > { %1783 = vrot.lane.b32.xlu2 %v1782_v27, %s4088_s18 }
0x1753   : > { %v1767_v17 = vpop.f32.mrf.mxu3 }
0x17ac   : > { %v1784_v24 = vpop.permute.xlu2 %1783 }
0x17bd   : > { %v1779_v23 = vpop.permute.xlu1 %1778 }
0x17be   : > { %v1789_v26 = vsel %vm718_vm8, %v1787_v22, %v1779_v23 }
0x17bf   : > { %v1791_v28 = vsel %vm721_vm9, %v1789_v26, %v1784_v24 }
0x17c0   : > { %2858 = vmatmul.msk.bf16.vlgmr.msrb.gmra.mxu0 %vm358_vm0, %v1791_v28 }
0x183d   : > { %v1820_v30 = vpop.f32.mrf.mxu0 }
0x183e   : > { %v1824_v32 = vadd.f32 %v1820_v30, %v3700_v12  ;;  %v3063_v12 = vld [vmem:[%s4033_s4 + $0x20] sm:$0xff] }
0x183f   : > { %1888 = vmatpush.bf16.msra.mxu1 %v3063_v12 }
0x1840   : > { %v3792_v33 = vadd.f32 %v1825_v29, %v1824_v32 }
0x1842   : > { %v1827_v16 = vsel %vm358_vm0, %v3792_v33, 0.0  ;;  %v1831_v0 = vmul.f32 %v3792_v33, %v3792_v33 }
0x1843   : > { %1828 = vadd.xlane.f32.xlu1 %v1827_v16  ;;  %v3858_v16 = vld [vmem:[%s4030_s1 + $0x18] sm:$0x3f] }
0x1844   : > { %v1832_v34 = vsel %vm358_vm0, %v1831_v0, 0.0  ;;  %v2002_v35 = vperm.slane %v3858_v16, 0 }
0x1845   : > { %1833 = vadd.xlane.f32.xlu2 %v1832_v34  ;;  %v1822_v10 = vpop.f32.mrf.mxu0 }
0x18b6   : > { %v1829_v36 = vpop.xlane.xlu1 %1828 }
0x18b7   : > { %v1830_v37 = vmul.f32 %v1829_v36, %v3427_v13 }
0x18b8   : > { %v1834_v39 = vpop.xlane.xlu2 %1833 }
0x18b9   : > { %v1836_v40 = vmul.f32 %v1830_v37, %v1830_v37  ;;  %v1835_v41 = vmul.f32 %v1834_v39, %v3427_v13  ;;  %v1838_v59 = vsub.f32 %v3792_v33, %v1830_v37  ;;  %v2004_v37 = vperm.slane %v3858_v16, 1 }
0x18bb   : > { %v1837_v44 = vsub.f32 %v1835_v41, %v1836_v40 }
0x18bd   : > { %v1839_v47 = vadd.f32 1e-05, %v1837_v44 }
0x18bf   : > { %3206 = vrsqrt.f32 %v1839_v47  ;;  %vm1846_vm13 = vweird.f32 %v1839_v47 }
0x18c5   : > { %v3207_v51 = vpop.eup %3206 }
0x18c6   : > { %v1841_v52 = vmul.f32 %v3207_v51, %v1839_v47  ;;  %vm1847_vm12 = vweird.f32 %v3207_v51 }
0x18c7   : > { %vm1848_vm14 = vmor %vm1846_vm13, %vm1847_vm12 }
0x18c8   : > { %v1842_v54 = vmul.f32 %v3207_v51, %v1841_v52 }
0x18ca   : > { %v1843_v55 = vmul.f32 0.5, %v1842_v54 }
0x18cc   : > { %v1844_v57 = vsub.f32 1.5, %v1843_v55 }
0x18ce   : > { %v1845_v58 = vmul.f32 %v3207_v51, %v1844_v57 }
0x18d0   : > { %v1849_v61 = vsel %vm1848_vm14, %v3207_v51, %v1845_v58 }
0x18d1   : > { %v1850_v62 = vmul.f32 %v1849_v61, %v1838_v59 }
0x18d3   : > { %v1852_v1 = vmul.f32 %v1851_v60, %v1850_v62 }
0x18d5   : > { %v1854_v43 = vadd.f32 %v1853_v63, %v1852_v1 }
0x18d7   : > { %v1855_v38 = vpack.c.bf16 %v1854_v43, %v1854_v43 }
0x18d9   : > { %2872 = vmatmul.msk.bf16.vlgmr.msra.gmra.mxu1 %vm358_vm0, %v1855_v38 }
0x1956   : > { %v1890_v5 = vpop.f32.mrf.mxu1 }
0x1957   : > { %v1891_v45 = vadd.f32 %v3143_v4, %v1890_v5 }
0x1959   : > { %v1894_v6 = vmax.f32 %v1891_v45, 0.0 }
0x195b   : > { %v1895_v7 = vpack.c.bf16 %v1894_v6, %v1894_v6 }
0x195d   : > { %1970 = vmatmul.bf16.vlgmr.msrb.gmra.mxu2 %v1895_v7 }
0x195e   : > { %v1892_v8 = vpop.f32.mrf.mxu1 }
0x19e0   : > { %v1971_v11 = vpop.f32.mrf.mxu2 }
0x19e1   : > { %v1972_v14 = vadd.f32 %v1971_v11, %v1913_v9 }
0x19e3   : > { %v3840_v15 = vadd.f32 %v1972_v14, %v3792_v33 }
0x19e5   : > { %v1978_v25 = vsel %vm358_vm0, %v3840_v15, 0.0  ;;  %v1982_v27 = vmul.f32 %v3840_v15, %v3840_v15 }
0x19e6   : > { %1979 = vadd.xlane.f32.xlu1 %v1978_v25 }
0x19e7   : > { %v1983_v17 = vsel %vm358_vm0, %v1982_v27, 0.0 }
0x19e8   : > { %v1973_v18 = vpop.f32.mrf.mxu2  ;;  %1984 = vadd.xlane.f32.xlu0 %v1983_v17 }
0x1a59   : > { %v1980_v20 = vpop.xlane.xlu1 %1979 }
0x1a5a   : > { %v1981_v21 = vmul.f32 %v1980_v20, %v3427_v13 }
0x1a5b   : > { %v1985_v22 = vpop.xlane.xlu0 %1984 }
0x1a5c   : > { %v1987_v23 = vmul.f32 %v1981_v21, %v1981_v21  ;;  %v1986_v24 = vmul.f32 %v1985_v22, %v3427_v13  ;;  %v1989_v10 = vsub.f32 %v3840_v15, %v1981_v21 }
0x1a5e   : > { %v1988_v26 = vsub.f32 %v1986_v24, %v1987_v23 }
0x1a60   : > { %v1990_v28 = vadd.f32 1e-05, %v1988_v26 }
0x1a62   : > { %3208 = vrsqrt.f32 %v1990_v28  ;;  %vm1997_vm1 = vweird.f32 %v1990_v28 }
0x1a68   : > { %v3209_v29 = vpop.eup %3208 }
0x1a69   : > { %v1992_v30 = vmul.f32 %v3209_v29, %v1990_v28  ;;  %vm1998_vm15 = vweird.f32 %v3209_v29 }
0x1a6a   : > { %vm1999_vm2 = vmor %vm1997_vm1, %vm1998_vm15 }
0x1a6b   : > { %v1993_v32 = vmul.f32 %v3209_v29, %v1992_v30 }
0x1a6d   : > { %v1994_v33 = vmul.f32 0.5, %v1993_v32 }
0x1a6f   : > { %v1995_v0 = vsub.f32 1.5, %v1994_v33 }
0x1a71   : > { %v1996_v34 = vmul.f32 %v3209_v29, %v1995_v0 }
0x1a73   : > { %v2000_v12 = vsel %vm1999_vm2, %v3209_v29, %v1996_v34 }
0x1a74   : > { %v2001_v36 = vmul.f32 %v2000_v12, %v1989_v10 }
0x1a76   : > { %v2003_v39 = vmul.f32 %v2002_v35, %v2001_v36 }
0x1a78   : > { %v2005_v40 = vadd.f32 %v2004_v37, %v2003_v39 }
0x1a7a   : > { %v2006_v41 = vpack.c.bf16 %v2005_v40, %v2005_v40 }
0x1a7c   : > { %2934 = vmatmul.msk.bf16.vlgmr.msrb.gmra.mxu3 %vm358_vm0, %v2006_v41 }
0x1aff   : > { %v2036_v42 = vpop.f32.mrf.mxu3 }
0x1b00   : > { %v2040_v44 = vpack.c.bf16 %v2036_v42, %v2036_v42  ;;  %2042 = vrot.lane.b32.xlu2 %v2036_v42, %s4089_s15 }
0x1b02   : > { %v2114_v46 = vunpack.c.l.b16 %v2040_v44 }
0x1b04   : > { %v3865_v47 = vpack.c.b16 %v2114_v46, %v2114_v46 }
0x1b07   : > { %v2038_v48 = vpop.f32.mrf.mxu3 }
0x1b08   : > { %2138 = vrot.lane.b32.xlu2 %v3865_v47, %s4091_s0  ;;  %s3250_s0 = scalar_lea.hbm %s4039_s10, 16 }
0x1b10   : > { %2194 = vrot.lane.b32.xlu2 %v3865_v47, %s4090_s22 }
0x1b5a   : > { %v2043_v50 = vpop.permute.xlu2 %2042 }
0x1b5b   : > { %2045 = vxpose.xlu1.b32.start.end [1/1] (short) (narrow) %v2043_v50, 32 }
0x1b62   : > { %v2139_v57 = vpop.permute.xlu2 %2138 }
0x1b6a   : > { %v2195_v4 = vpop.permute.xlu2 %2194 }
0x1bff   : > { %v2061_v51 = vpop.trf.xlu1 }
0x1c00   : > { %v2077_v52 = vpack.c.bf16 %v2061_v51, %v2061_v51 }
0x1c02   : > { %v2085_v53 = vsel %vm472_vm5, %v2077_v52, 0 }
0x1c03   : > { %2094 = vmatpush.bf16.msra.mxu0 %v2085_v53 }
0x1c06   : > { %2935 = vmatmul.msk.bf16.vlgmr.msra.gmra.mxu0 %vm468_vm6, %v2040_v44 }
0x1c07   : > { %v2062_v54 = vpop.trf.xlu1 }
0x1c08   : > { %v2078_v55 = vpack.c.bf16 %v2062_v54, %v2062_v54 }
0x1c0a   : > { %v2144_v56 = vsel %vm472_vm5, %v2078_v55, 0 }
0x1c0b   : > { %2153 = vmatpush.bf16.msra.mxu3 %v2144_v56 }
0x1c0e   : > { %2937 = vmatmul.msk.bf16.vlgmr.msra.gmra.mxu3 %vm468_vm6, %v2139_v57 }
0x1c0f   : > { %v2063_v27 = vpop.trf.xlu1 }
0x1c10   : > { %v2079_v17 = vpack.c.bf16 %v2063_v27, %v2063_v27 }
0x1c12   : > { %v2200_v18 = vsel %vm472_vm5, %v2079_v17, 0 }
0x1c17   : > { %v2064_v31 = vpop.trf.xlu1 }
0x1c18   : > { %v2080_v19 = vpack.c.bf16 %v2064_v31, %v2064_v31  ;;  %v3076_v31 = vld [vmem:[%s4032_s3 + $0x38] sm:$0xff] }
0x1c1a   : > { %v2256_v20 = vsel %vm472_vm5, %v2080_v19, 0  ;;  %v3075_v19 = vld [vmem:[%s4032_s3 + $0x30] sm:$0xff] }
0x1c1b   : > { %2265 = vmatpush.bf16.msrb.mxu3 %v2256_v20 }
0x1c83   : > { %v2096_v58 = vpop.f32.mrf.mxu0 }
0x1c84   : > { %v2100_v59 = vsel %vm3450_vm7, %v2096_v58, -1e+30 }
0x1c85   : > { %v2101_v60 = vsel %vm468_vm6, %v2100_v59, -inf }
0x1c86   : > { %2102 = vmax.xlane.f32.xlu0 %v2101_v60 }
0x1c8b   : > { %v2098_v61 = vpop.f32.mrf.mxu0 }
0x1c91   : > { %v2155_v62 = vpop.f32.mrf.mxu3 }
0x1c92   : > { %v2159_v63 = vsel %vm3450_vm7, %v2155_v62, -1e+30 }
0x1c93   : > { %v2160_v1 = vsel %vm468_vm6, %v2159_v63, -inf }
0x1c94   : > { %2161 = vmax.xlane.f32.xlu2 %v2160_v1 }
0x1c99   : > { %v2157_v43 = vpop.f32.mrf.mxu3 }
0x1c9a   : > { %2116 = vrot.lane.b32.xlu0 %v3865_v47, %s4082_s21 }
0x1cf9   : > { %v2103_v38 = vpop.xlane.xlu0 %2102 }
0x1cfa   : > { %v2104_v2 = vsub.f32 %v2100_v59, %v2103_v38 }
0x1cfc   : > { %v2105_v3 = vmul.f32 1.442695, %v2104_v2 }
0x1cfe   : > { %3210 = vpow2.f32 %v2105_v3 }
0x1d04   : > { %v3211_v5 = vpop.eup %3210 }
0x1d05   : > { %v2107_v45 = vsel %vm468_vm6, %v3211_v5, 0.0 }
0x1d06   : > { %2108 = vadd.xlane.f32.xlu0 %v2107_v45 }
0x1d07   : > { %v2162_v6 = vpop.xlane.xlu2 %2161 }
0x1d08   : > { %v2163_v7 = vsub.f32 %v2159_v63, %v2162_v6 }
0x1d0a   : > { %v2164_v8 = vmul.f32 1.442695, %v2163_v7 }
0x1d0c   : > { %3212 = vpow2.f32 %v2164_v8  ;;  %v2117_v9 = vpop.permute.xlu0 %2116 }
0x1d0d   : > { %v2122_v11 = vsel %vm472_vm5, %v2117_v9, 0 }
0x1d0e   : > { %2131 = vmatpush.bf16.msrb.mxu1 %v2122_v11 }
0x1d12   : > { %v3213_v14 = vpop.eup %3212  ;;  %2209 = vmatpush.bf16.msra.mxu1 %v2200_v18 }
0x1d13   : > { %v2166_v25 = vsel %vm468_vm6, %v3213_v14, 0.0 }
0x1d14   : > { %2167 = vadd.xlane.f32.xlu2 %v2166_v25 }
0x1d1a   : > { %2250 = vrot.lane.b32.xlu0 %v3865_v47, %s4081_s20 }
0x1d2c   : > { %2172 = vrot.lane.b32.xlu2 %v3865_v47, %s4083_s30  ;;  %s4092_s30 = sld [smem:[#allocation12_spill]] }
0x1d34   : > { %2284 = vrot.lane.b32.xlu2 %v3865_v47, %s4085_s26 }
0x1d79   : > { %v2109_v21 = vpop.xlane.xlu0 %2108 }
0x1d7a   : > { %3214 = vrcp.f32 %v2109_v21 }
0x1d80   : > { %v3215_v22 = vpop.eup %3214 }
0x1d81   : > { %v2111_v23 = vmul.f32 %v3215_v22, %v3211_v5 }
0x1d83   : > { %v2112_v24 = vpack.c.bf16 %v2111_v23, %v2111_v23 }
0x1d85   : > { %2936 = vmatmul.msk.bf16.vlgmr.msrb.gmra.mxu1 %vm468_vm6, %v2112_v24 }
0x1d86   : > { %2353 = vmatpush.bf16.msrb.mxu1 %v3076_v31  ;;  %v3088_v31 = vld [vmem:[%s4037_s8 + $0x8] sm:$0xff] }
0x1d87   : > { %v2168_v26 = vpop.xlane.xlu2 %2167 }
0x1d88   : > { %3216 = vrcp.f32 %v2168_v26 }
0x1d8a   : > { %2354 = vmatpush.bf16.msrb.mxu1 %v3075_v19 }
0x1d8c   : > { %v2251_v28 = vpop.permute.xlu0 %2250 }
0x1d8d   : > { %2941 = vmatmul.msk.bf16.vlgmr.msrb.gmra.mxu3 %vm468_vm6, %v2251_v28 }
0x1d8e   : > { %v3217_v29 = vpop.eup %3216 }
0x1d8f   : > { %v2170_v30 = vmul.f32 %v3217_v29, %v3213_v14  ;;  %v2173_v32 = vpop.permute.xlu2 %2172  ;;  %v2361_v29 = vperm.slane %v3858_v16, 2 }
0x1d90   : > { %v2178_v33 = vsel %vm472_vm5, %v2173_v32, 0 }
0x1d91   : > { %v2171_v0 = vpack.c.bf16 %v2170_v30, %v2170_v30  ;;  %2187 = vmatpush.bf16.msrb.mxu0 %v2178_v33 }
0x1d94   : > { %2938 = vmatmul.msk.bf16.vlgmr.msrb.gmra.mxu0 %vm468_vm6, %v2171_v0 }
0x1d95   : > { %2939 = vmatmul.msk.bf16.vlgmr.msra.gmra.mxu1 %vm468_vm6, %v2195_v4 }
0x1d97   : > { %v2285_v34 = vpop.permute.xlu2 %2284 }
0x1d98   : > { %v2290_v10 = vsel %vm472_vm5, %v2285_v34, 0 }
0x1d99   : > { %2299 = vmatpush.bf16.msra.mxu0 %v2290_v10 }
0x1d9d   : > { %2571 = vmatpush.bf16.msrb.mxu0 %v3088_v31 }
0x1e02   : > { %v3900_v35 = vpop.f32.mrf.mxu1 }
0x1e03   : > { %v2137_v21 = vpack.c.bf16 %v3900_v35, %v3900_v35 }
0x1e0a   : > { %v2135_v12 = vpop.f32.mrf.mxu1 }
0x1e0b   : > { %v3078_v12 = vld [vmem:[%s4033_s4 + $0x38] sm:$0xff] }
0x1e10   : > { %v2267_v36 = vpop.f32.mrf.mxu3 }
0x1e11   : > { %v2271_v37 = vsel %vm3450_vm7, %v2267_v36, -1e+30  ;;  %v2189_v39 = vpop.f32.mrf.mxu0 }
0x1e12   : > { %v2193_v40 = vpack.c.bf16 %v2189_v39, %v2189_v39  ;;  %v2211_v41 = vpop.f32.mrf.mxu1  ;;  %v2272_v42 = vsel %vm468_vm6, %v2271_v37, -inf }
0x1e13   : > { %v2215_v44 = vsel %vm3450_vm7, %v2211_v41, -1e+30  ;;  %2273 = vmax.xlane.f32.xlu1 %v2272_v42  ;;  %v3086_v42 = vld [vmem:[%s4035_s6 + $0xf8] sm:$0xff] }
0x1e14   : > { %v2307_v46 = vunpack.c.l.b16 %v2193_v40  ;;  %v2216_v48 = vsel %vm468_vm6, %v2215_v44, -inf  ;;  %2498 = vmatpush.bf16.msra.mxu3 %v3086_v42 }
0x1e15   : > { %2217 = vmax.xlane.f32.xlu0 %v2216_v48 }
0x1e16   : > { %v2308_v50 = vpack.c.b16 %v2307_v46, %v2307_v46  ;;  %v3085_v46 = vld [vmem:[%s4035_s6 + $0xf0] sm:$0xff] }
0x1e18   : > { %2309 = vrot.lane.b32.xlu2 %v2308_v50, %s4086_s29  ;;  %v2269_v51 = vpop.f32.mrf.mxu3  ;;  %2499 = vmatpush.bf16.msra.mxu3 %v3085_v46  ;;  %v3084_v50 = vld [vmem:[%s4035_s6 + $0xe8] sm:$0xff]  ;;  %s2594_s29 = sshll.u32 %s2590_s24, 4  ;;  %s2595_s29 = int_to_ptr.hbm [resolvable:$true] %s2594_s29 }
0x1e19   : > { %v2191_v52 = vpop.f32.mrf.mxu0  ;;  %v3083_v51 = vld [vmem:[%s4035_s6 + $0xe0] sm:$0xff]  ;;  %s3244_s17 = sshra.s32 %s2595_s29, 4  ;;  %s3245_s17 = int_to_ptr.hbm [resolvable:$true] %s3244_s17 }
0x1e1a   : > { %v2213_v53 = vpop.f32.mrf.mxu1  ;;  %p3251_p0 = scmp.lt.s32.totalorder %s3245_s17, %s4039_s10 }
0x1e1c   : > { %2500 = vmatpush.bf16.msra.mxu3 %v3084_v50 }
0x1e20   : > { %2501 = vmatpush.bf16.msra.mxu3 %v3083_v51 }
0x1e72   : > { %v2310_v20 = vpop.permute.xlu2 %2309 }
0x1e73   : > { %v2323_v22 = vsel %vm468_vm6, %v2137_v21, %v2310_v20 }
0x1e86   : > { %v2274_v54 = vpop.xlane.xlu1 %2273 }
0x1e87   : > { %v2275_v55 = vsub.f32 %v2271_v37, %v2274_v54  ;;  %v3082_v54 = vld [vmem:[%s4035_s6 + $0xd8] sm:$0xff] }
0x1e88   : > { %v2218_v56 = vpop.xlane.xlu0 %2217  ;;  %2502 = vmatpush.bf16.msra.mxu3 %v3082_v54 }
0x1e89   : > { %v2276_v57 = vmul.f32 1.442695, %v2275_v55  ;;  %v2219_v58 = vsub.f32 %v2215_v44, %v2218_v56 }
0x1e8b   : > { %3218 = vpow2.f32 %v2276_v57  ;;  %v2220_v59 = vmul.f32 1.442695, %v2219_v58  ;;  %v3081_v57 = vld [vmem:[%s4035_s6 + $0xd0] sm:$0xff] }
0x1e8c   : > { %2503 = vmatpush.bf16.msra.mxu3 %v3081_v57 }
0x1e8d   : > { %3220 = vpow2.f32 %v2220_v59 }
0x1e91   : > { %v3219_v49 = vpop.eup %3218 }
0x1e92   : > { %v2278_v60 = vsel %vm468_vm6, %v3219_v49, 0.0 }
0x1e93   : > { %2279 = vadd.xlane.f32.xlu0 %v2278_v60  ;;  %v3221_v61 = vpop.eup %3220  ;;  %v2387_v60 = vperm.slane %v3858_v16, 3 }
0x1e94   : > { %v2222_v62 = vsel %vm468_vm6, %v3221_v61, 0.0 }
0x1e9b   : > { %2223 = vadd.xlane.f32.xlu0 %v2222_v62 }
0x1eaf   : > { %2228 = vrot.lane.b32.xlu0 %v3865_v47, %s4084_s11  ;;  %s350_s11 = scalar_lea.vmem [#allocation2], %s2658_s9 }
0x1eb0   : > { %s2592_s26 = sshll.u32 %s350_s11, 4  ;;  %s2593_s26 = int_to_ptr.vmem [resolvable:$true] %s2592_s26 }
0x1f06   : > { %v2280_v63 = vpop.xlane.xlu0 %2279 }
0x1f07   : > { %3222 = vrcp.f32 %v2280_v63  ;;  %v2389_v63 = vperm.slane %v3858_v16, 4 }
0x1f0d   : > { %v3223_v1 = vpop.eup %3222 }
0x1f0e   : > { %v2282_v43 = vmul.f32 %v3223_v1, %v3219_v49  ;;  %v2224_v2 = vpop.xlane.xlu0 %2223 }
0x1f0f   : > { %3224 = vrcp.f32 %v2224_v2  ;;  %v3080_v2 = vld [vmem:[%s4035_s6 + $0xc8] sm:$0xff] }
0x1f10   : > { %v2283_v38 = vpack.c.bf16 %v2282_v43, %v2282_v43  ;;  %2504 = vmatpush.bf16.msra.mxu3 %v3080_v2 }
0x1f12   : > { %2942 = vmatmul.msk.bf16.vlgmr.msra.gmra.mxu0 %vm468_vm6, %v2283_v38 }
0x1f15   : > { %v3225_v3 = vpop.eup %3224 }
0x1f16   : > { %v2226_v4 = vmul.f32 %v3225_v3, %v3221_v61  ;;  %v3079_v3 = vld [vmem:[%s4035_s6 + $0xc0] sm:$0xff] }
0x1f17   : > { %2505 = vmatpush.bf16.msra.mxu3 %v3079_v3 }
0x1f18   : > { %v2227_v6 = vpack.c.bf16 %v2226_v4, %v2226_v4  ;;  %v3144_v4 = vld [vmem:[%s4034_s5 + $0x3] ss:$0 sm:$0xff] }
0x1f21   : > { %v2229_v5 = vpop.permute.xlu0 %2228 }
0x1f22   : > { %v2234_v45 = vsel %vm472_vm5, %v2229_v5, 0 }
0x1f23   : > { %2243 = vmatpush.bf16.msra.mxu2 %v2234_v45 }
0x1f26   : > { %2940 = vmatmul.msk.bf16.vlgmr.msra.gmra.mxu2 %vm468_vm6, %v2227_v6 }
0x1f27   : > { %2423 = vmatpush.bf16.msrb.mxu2 %v3078_v12 }
0x1f8f   : > { %v2301_v7 = vpop.f32.mrf.mxu0 }
0x1f90   : > { %v2305_v47 = vpack.c.bf16 %v2301_v7, %v2301_v7 }
0x1f92   : > { %v2317_v8 = vunpack.c.l.b16 %v2305_v47 }
0x1f94   : > { %v2318_v9 = vpack.c.b16 %v2317_v8, %v2317_v8  ;;  %v2449_v8 = vperm.slane %v3858_v16, 5  ;;  %v3087_v16 = vld [vmem:[%s4037_s8] sm:$0xff] }
0x1f95   : > { %2572 = vmatpush.bf16.msrb.mxu0 %v3087_v16 }
0x1f96   : > { %2319 = vrot.lane.b32.xlu2 %v2318_v9, %s4088_s18  ;;  %s3246_s18 = scalar_lea.hbm %s3245_s17, 8 }
0x1f97   : > { %v2303_v11 = vpop.f32.mrf.mxu0  ;;  %p3247_p11 = scmp.ne.s32.totalorder %s3245_s17, %s3246_s18  ;;  %p3252_p1 = scmp.lt.s32.totalorder %s3250_s0, %s3246_s18 }
0x1f99   : > { %p3248_p12 = pnand %p3247_p11, %p3399_p5  ;;  %p3253_p2 = por %p3252_p1, %p3251_p0 }
0x1f9b   : > { %p3249_p13 = pneg %p3248_p12 }
0x1f9d   : > { %p3254_p3 = pnand %p3253_p2, %p3249_p13 }
0x1fa9   : > { %v2245_v14 = vpop.f32.mrf.mxu2 }
0x1faa   : > { %v2249_v25 = vpack.c.bf16 %v2245_v14, %v2245_v14 }
0x1fac   : > { %v2312_v27 = vunpack.c.l.b16 %v2249_v25 }
0x1fae   : > { %v2313_v17 = vpack.c.b16 %v2312_v27, %v2312_v27 }
0x1fb0   : > { %2314 = vrot.lane.b32.xlu0 %v2313_v17, %s4087_s12  ;;  %s2580_s12 = scalar_lea.sflag [#allocation3], %s348_s28 }
0x1fb1   : > { %v2247_v18 = vpop.f32.mrf.mxu2 }
0x1ff0   : > { %v2320_v24 = vpop.permute.xlu2 %2319 }
0x2022   : > { %v2315_v23 = vpop.permute.xlu0 %2314 }
0x2023   : > { %v2325_v26 = vsel %vm718_vm8, %v2323_v22, %v2315_v23 }
0x2024   : > { %v2327_v28 = vsel %vm721_vm9, %v2325_v26, %v2320_v24 }
0x2025   : > { %2955 = vmatmul.msk.bf16.vlgmr.msrb.gmra.mxu1 %vm358_vm0, %v2327_v28 }
0x20a2   : > { %v2356_v30 = vpop.f32.mrf.mxu1 }
0x20a3   : > { %v2360_v32 = vadd.f32 %v2356_v30, %v3840_v15  ;;  %v3077_v15 = vld [vmem:[%s4033_s4 + $0x30] sm:$0xff] }
0x20a4   : > { %2424 = vmatpush.bf16.msrb.mxu2 %v3077_v15 }
0x20a5   : > { %v3932_v33 = vadd.f32 %v2361_v29, %v2360_v32 }
0x20a7   : > { %v2363_v0 = vsel %vm358_vm0, %v3932_v33, 0.0  ;;  %v2367_v34 = vmul.f32 %v3932_v33, %v3932_v33 }
0x20a8   : > { %2364 = vadd.xlane.f32.xlu0 %v2363_v0 }
0x20a9   : > { %v2368_v10 = vsel %vm358_vm0, %v2367_v34, 0.0 }
0x20aa   : > { %2369 = vadd.xlane.f32.xlu2 %v2368_v10  ;;  %v2358_v35 = vpop.f32.mrf.mxu1 }
0x211b   : > { %v2365_v36 = vpop.xlane.xlu0 %2364 }
0x211c   : > { %v2366_v37 = vmul.f32 %v2365_v36, %v3427_v13 }
0x211d   : > { %v2370_v39 = vpop.xlane.xlu2 %2369 }
0x211e   : > { %v2372_v40 = vmul.f32 %v2366_v37, %v2366_v37  ;;  %v2371_v41 = vmul.f32 %v2370_v39, %v3427_v13  ;;  %v2374_v49 = vsub.f32 %v3932_v33, %v2366_v37 }
0x2120   : > { %v2373_v44 = vsub.f32 %v2371_v41, %v2372_v40  ;;  %v3145_v40 = vld [vmem:[%s4092_s30] ss:$0 sm:$0xff] }
0x2122   : > { %v2375_v48 = vadd.f32 1e-05, %v2373_v44 }
0x2124   : > { %3226 = vrsqrt.f32 %v2375_v48  ;;  %vm2382_vm6 = vweird.f32 %v2375_v48 }
0x212a   : > { %v3227_v52 = vpop.eup %3226 }
0x212b   : > { %v2377_v53 = vmul.f32 %v3227_v52, %v2375_v48  ;;  %vm2383_vm5 = vweird.f32 %v3227_v52 }
0x212c   : > { %vm2384_vm7 = vmor %vm2382_vm6, %vm2383_vm5 }
0x212d   : > { %v2378_v55 = vmul.f32 %v3227_v52, %v2377_v53 }
0x212f   : > { %v2379_v56 = vmul.f32 0.5, %v2378_v55 }
0x2131   : > { %v2380_v58 = vsub.f32 1.5, %v2379_v56 }
0x2133   : > { %v2381_v59 = vmul.f32 %v3227_v52, %v2380_v58 }
0x2135   : > { %v2385_v61 = vsel %vm2384_vm7, %v3227_v52, %v2381_v59 }
0x2136   : > { %v2386_v62 = vmul.f32 %v2385_v61, %v2374_v49 }
0x2138   : > { %v2388_v1 = vmul.f32 %v2387_v60, %v2386_v62 }
0x213a   : > { %v2390_v43 = vadd.f32 %v2389_v63, %v2388_v1 }
0x213c   : > { %v2391_v38 = vpack.c.bf16 %v2390_v43, %v2390_v43 }
0x213e   : > { %2969 = vmatmul.msk.bf16.vlgmr.msrb.gmra.mxu2 %vm358_vm0, %v2391_v38 }
0x21c1   : > { %v2426_v5 = vpop.f32.mrf.mxu2 }
0x21c2   : > { %v2427_v45 = vadd.f32 %v3144_v4, %v2426_v5 }
0x21c4   : > { %v2430_v6 = vmax.f32 %v2427_v45, 0.0 }
0x21c6   : > { %v2431_v7 = vpack.c.bf16 %v2430_v6, %v2430_v6 }
0x21c8   : > { %2506 = vmatmul.bf16.vlgmr.msra.gmra.mxu3 %v2431_v7 }
0x21c9   : > { %v2428_v47 = vpop.f32.mrf.mxu2 }
0x224b   : > { %v2507_v9 = vpop.f32.mrf.mxu3 }
0x224c   : > { %v2508_v11 = vadd.f32 %v2507_v9, %v2449_v8 }
0x224e   : > { %v2511_v14 = vadd.f32 %v2508_v11, %v3932_v33  ;;  %v2512_v33 = vld [vmem:[%s4036_s7] sm:$0x3] }
0x224f   : > { %v2537_v35 = vperm.slane %v2512_v33, 0  ;;  %v2539_v15 = vperm.slane %v2512_v33, 1 }
0x2250   : > { %v2513_v25 = vsel %vm358_vm0, %v2511_v14, 0.0  ;;  %v2517_v27 = vmul.f32 %v2511_v14, %v2511_v14 }
0x2251   : > { %2514 = vadd.xlane.f32.xlu0 %v2513_v25 }
0x2252   : > { %v2518_v17 = vsel %vm358_vm0, %v2517_v27, 0.0 }
0x2253   : > { %v2509_v18 = vpop.f32.mrf.mxu3  ;;  %2519 = vadd.xlane.f32.xlu2 %v2518_v17 }
0x22c4   : > { %v2515_v19 = vpop.xlane.xlu0 %2514 }
0x22c5   : > { %v2516_v20 = vmul.f32 %v2515_v19, %v3427_v13 }
0x22c6   : > { %v2520_v21 = vpop.xlane.xlu2 %2519 }
0x22c7   : > { %v2522_v22 = vmul.f32 %v2516_v20, %v2516_v20  ;;  %v2521_v23 = vmul.f32 %v2520_v21, %v3427_v13  ;;  %v2524_v10 = vsub.f32 %v2511_v14, %v2516_v20 }
0x22c9   : > { %v2523_v24 = vsub.f32 %v2521_v23, %v2522_v22 }
0x22cb   : > { %v2525_v26 = vadd.f32 1e-05, %v2523_v24 }
0x22cd   : > { %3228 = vrsqrt.f32 %v2525_v26  ;;  %vm2532_vm9 = vweird.f32 %v2525_v26 }
0x22d3   : > { %v3229_v28 = vpop.eup %3228 }
0x22d4   : > { %v2527_v29 = vmul.f32 %v3229_v28, %v2525_v26  ;;  %vm2533_vm8 = vweird.f32 %v3229_v28 }
0x22d5   : > { %vm2534_vm3 = vmor %vm2532_vm9, %vm2533_vm8 }
0x22d6   : > { %v2528_v30 = vmul.f32 %v3229_v28, %v2527_v29 }
0x22d8   : > { %v2529_v32 = vmul.f32 0.5, %v2528_v30 }
0x22da   : > { %v2530_v0 = vsub.f32 1.5, %v2529_v32 }
0x22dc   : > { %v2531_v34 = vmul.f32 %v3229_v28, %v2530_v0 }
0x22de   : > { %v2535_v13 = vsel %vm2534_vm3, %v3229_v28, %v2531_v34 }
0x22df   : > { %v2536_v12 = vmul.f32 %v2535_v13, %v2524_v10 }
0x22e1   : > { %v2538_v36 = vmul.f32 %v2537_v35, %v2536_v12 }
0x22e3   : > { %v2540_v37 = vadd.f32 %v2539_v15, %v2538_v36 }
0x22e5   : > { %v2541_v39 = vpack.c.bf16 %v2540_v37, %v2540_v37 }
0x22e7   : > { %3026 = vmatmul.msk.bf16.vlgmr.msrb.gmra.mxu0 %vm358_vm0, %v2541_v39 }
0x2364   : > { %v2574_v41 = vpop.f32.mrf.mxu0 }
0x2365   : > { %v2575_v42 = vadd.f32 %v3145_v40, %v2574_v41 }
0x2367   : > { %2578 = vst [vmem:[%s350_s11] sm:$0xff] %v2575_v42 }
0x2368   : > { %3257 = shalt.err (!%p3254_p3)
}
0x2369   : > { %3089 = dma.vmem_to_hbm [thread:$0]  (%p3399_p5), %s2593_s26, 128, %s2595_s29, %s2580_s12  }
0x236c   : > { %v2576_v44 = vpop.f32.mrf.mxu0 }
0x236d PF: > { %s4093_s28 = sld [smem:[#allocation7_spill]] }
0x236e   : > { %s4094_s25 = sld [smem:[#allocation5_spill]] }
0x2373   : > { %p3095_p4 = scmp.ge.s32.totalorder %s4093_s28, 2 }
0x2374   : > { %s2606_s16 = sand.u32 1, %s4094_s25  }
0x2375   : > { %p3092_p7 = pnand %p3095_p4, %p3403_p6  ;;  %s2607_s19 = scalar_lea.sflag [#allocation3], %s2606_s16 }
0x2377   : > { %p3093_p8 = pneg %p3092_p7 }
0x2379   : > { %3275 = dma.done.wait (%p3093_p8), %s2607_s19, 128  }
0x237a   : > { %3277 = vsyncadd (%p3093_p8), %s2607_s19, 4294967168  ;;  %s4096_s16 = sld [smem:[#allocation8_spill]]  ;;  %s4099_s13 = smov %s3284_s14 }
0x237b   : > { %s4097_s24 = sld [smem:[#allocation6_spill]] }
0x237c   : > { %s4098_s15 = sld [smem:[#allocation9_spill]] }
0x2380   : > { %p20_p9 = scmp.ge.s32.totalorder %s4096_s16, 4  }
0x2381   : > { %s4100_s14 = smov %s4097_s24 }
0x2382   :  { %22 = sbr.rel (!%p20_p9) target bundleno = 6 (0x6), region = 113 }
0x2387   :  { %2613 = vsyncpa [#allocation3], 1 }
0x2388   :  { %2615 = vsyncpa [#allocation3 + $0x1], 1 }

</bundles_post_ra>
